<compile_context>
chip_gen: v6e
topology: v6e:2x2x1
jax: 0.10.0
libtpu: 0.0.40
codegen_flags: <defaults>
</compile_context>

<pallas_src>
import functools

import jax
import jax.numpy as jnp
from jax.experimental import pallas as pl
from jax.experimental.pallas import tpu as pltpu

EMBED = 256                  # embed_size used by the original file's model
HEADS = 8
HEAD_DIM = EMBED // HEADS    # 32
FF_DIM = 4 * EMBED           # forward_expansion = 4
LN_EPS = 1e-5                # nn.LayerNorm default


# ----------------------------- fused kernel -----------------------------

def _transformer_block_kernel(v_ref, k_ref, q_ref,
                              wq_ref, wk_ref, wv_ref, wo_ref, bo_ref,
                              g1_ref, b1_ref,
                              w1_ref, bb1_ref, w2_ref, bb2_ref,
                              g2_ref, b2_ref,
                              o_ref, *, heads, scale):
    f32 = jnp.float32
    bf16 = jnp.bfloat16

    q_in = q_ref[...]                                  # (Sq, E) f32
    k_in = k_ref[...]                                  # (Sk, E) f32
    v_in = v_ref[...]                                  # (Sk, E) f32
    sq, e = q_in.shape
    sk = k_in.shape[0]
    hd = e // heads

    # --- q/k/v projections: block-diagonal (E, E) weights -> K=256 matmuls ---
    q = jnp.dot(q_in.astype(bf16), wq_ref[...], preferred_element_type=f32)
    k = jnp.dot(k_in.astype(bf16), wk_ref[...], preferred_element_type=f32)
    v = jnp.dot(v_in.astype(bf16), wv_ref[...], preferred_element_type=f32)

    # --- multi-head scaled-dot-product attention (all heads in one step) ---
    q3 = jnp.swapaxes(q.reshape(sq, heads, hd), 0, 1)   # (H, Sq, hd)
    k3 = jnp.swapaxes(k.reshape(sk, heads, hd), 0, 1)   # (H, Sk, hd)
    v3 = jnp.swapaxes(v.reshape(sk, heads, hd), 0, 1)   # (H, Sk, hd)

    energy = jnp.einsum("hqd,hkd->hqk", q3, k3,
                        preferred_element_type=f32) * scale      # (H, Sq, Sk)
    energy = energy - jnp.max(energy, axis=-1, keepdims=True)
    p = jnp.exp(energy)
    p = p * pl.reciprocal(jnp.sum(p, axis=-1, keepdims=True), approx=True)
    ctx = jnp.einsum("hqk,hkd->hqd", p, v3,
                     preferred_element_type=f32)                  # (H, Sq, hd)
    attn = jnp.swapaxes(ctx, 0, 1).reshape(sq, e)                 # (Sq, E)

    # --- fc_out (output projection, with bias) ---
    attn = jnp.dot(attn.astype(bf16), wo_ref[...],
                   preferred_element_type=f32) + bo_ref[...]

    # --- x = LayerNorm(attention + query)   (dropout = identity at eval) ---
    y = attn + q_in
    mu = jnp.mean(y, axis=-1, keepdims=True)
    var = jnp.mean((y - mu) ** 2, axis=-1, keepdims=True)
    x = (y - mu) * jax.lax.rsqrt(var + LN_EPS) * g1_ref[...] + b1_ref[...]

    # --- feed-forward: Linear(E->F) + ReLU + Linear(F->E) ---
    h = jnp.dot(x.astype(bf16), w1_ref[...],
                preferred_element_type=f32) + bb1_ref[...]
    h = jnp.maximum(h, 0.0)
    ff = jnp.dot(h.astype(bf16), w2_ref[...],
                 preferred_element_type=f32) + bb2_ref[...]

    # --- out = LayerNorm(ff + x) ---
    z = ff + x
    mu2 = jnp.mean(z, axis=-1, keepdims=True)
    var2 = jnp.mean((z - mu2) ** 2, axis=-1, keepdims=True)
    o_ref[...] = (z - mu2) * jax.lax.rsqrt(var2 + LN_EPS) * g2_ref[...] + b2_ref[...]


def transformer_block_forward(value, key, query, p):
    """Fused TransformerBlock.forward.  value/key: (N, Sk, E); query: (N, Sq, E)."""
    n, sq, e = query.shape
    sk = key.shape[1]
    f = p["w1"].shape[1]

    kern = functools.partial(_transformer_block_kernel,
                             heads=HEADS, scale=1.0 / (float(e) ** 0.5))

    def seq_spec(s):
        # One batch element per grid step; kernel sees a lane-dense (s, E) slab.
        return pl.BlockSpec((pl.Squeezed(), s, e), lambda i: (i, 0, 0))

    def wspec(shape):
        # Weights: constant block index -> stay resident across the grid.
        return pl.BlockSpec(shape, lambda i, _shape=shape: (0,) * len(_shape))

    return pl.pallas_call(
        kern,
        out_shape=jax.ShapeDtypeStruct((n, sq, e), jnp.float32),
        grid=(n,),
        in_specs=[seq_spec(sk), seq_spec(sk), seq_spec(sq),
                  wspec((e, e)), wspec((e, e)), wspec((e, e)),
                  wspec((e, e)), wspec((1, e)),
                  wspec((1, e)), wspec((1, e)),
                  wspec((e, f)), wspec((1, f)),
                  wspec((f, e)), wspec((1, e)),
                  wspec((1, e)), wspec((1, e))],
        out_specs=pl.BlockSpec((pl.Squeezed(), sq, e), lambda i: (i, 0, 0)),
        compiler_params=pltpu.CompilerParams(
            dimension_semantics=("parallel",)),
    )(value, key, query,
      p["wq_bd"], p["wk_bd"], p["wv_bd"], p["wo"], p["bo"],
      p["g1"], p["b1"], p["w1"], p["bb1"], p["w2"], p["bb2"],
      p["g2"], p["b2"])


# ----------------------------- reference (pure jnp) -----------------------------

def _layer_norm(x, g, b):
    mu = jnp.mean(x, axis=-1, keepdims=True)
    var = jnp.mean((x - mu) ** 2, axis=-1, keepdims=True)
    return (x - mu) * jax.lax.rsqrt(var + LN_EPS) * g + b


def reference_forward(value, key, query, p):
    """Pure-jnp mirror of the PyTorch TransformerBlock.forward (f32)."""
    n, sq, e = query.shape
    h, hd = HEADS, HEAD_DIM
    v4 = value.reshape(n, -1, h, hd) @ p["wv"]
    k4 = key.reshape(n, -1, h, hd) @ p["wk"]
    q4 = query.reshape(n, -1, h, hd) @ p["wq"]
    energy = jnp.einsum("nqhd,nkhd->nhqk", q4, k4)
    a = jax.nn.softmax(energy / (float(e) ** 0.5), axis=3)
    ctx = jnp.einsum("nhqk,nkhd->nqhd", a, v4).reshape(n, sq, e)
    attn = ctx @ p["wo_f32"] + p["bo"]
    x = _layer_norm(attn + query, p["g1"], p["b1"])
    hh = jnp.maximum(x @ p["w1_f32"] + p["bb1"], 0.0)
    ff = hh @ p["w2_f32"] + p["bb2"]
    return _layer_norm(ff + x, p["g2"], p["b2"])


# ----------------------------- deterministic init -----------------------------

def init_params(rng):
    ks = jax.random.split(rng, 9)

    def randn(k, shape, scale=0.02):
        # round-trip through bf16 so kernel (bf16) and reference (f32) see the
        # same weight values.
        w = jax.random.normal(k, shape, jnp.float32) * scale
        return w.astype(jnp.bfloat16).astype(jnp.float32)

    wq = randn(ks[0], (HEAD_DIM, HEAD_DIM))      # per-head projections (no bias)
    wk = randn(ks[1], (HEAD_DIM, HEAD_DIM))
    wv = randn(ks[2], (HEAD_DIM, HEAD_DIM))
    wo = randn(ks[3], (EMBED, EMBED))            # fc_out weight (in, out) + bias
    bo = randn(ks[4], (1, EMBED))
    w1 = randn(ks[5], (EMBED, FF_DIM))
    bb1 = randn(ks[6], (1, FF_DIM))
    w2 = randn(ks[7], (FF_DIM, EMBED))
    bb2 = randn(ks[8], (1, EMBED))

    eye_h = jnp.eye(HEADS, dtype=jnp.float32)
    bf16 = jnp.bfloat16
    return dict(
        # f32 copies for the pure-jnp reference
        wq=wq, wk=wk, wv=wv, wo_f32=wo, w1_f32=w1, w2_f32=w2,
        # kernel weights: block-diagonal per-head projections, bf16 operands
        wq_bd=jnp.kron(eye_h, wq).astype(bf16),
        wk_bd=jnp.kron(eye_h, wk).astype(bf16),
        wv_bd=jnp.kron(eye_h, wv).astype(bf16),
        wo=wo.astype(bf16), bo=bo,
        w1=w1.astype(bf16), bb1=bb1,
        w2=w2.astype(bf16), bb2=bb2,
        g1=jnp.ones((1, EMBED), jnp.float32), b1=jnp.zeros((1, EMBED), jnp.float32),
        g2=jnp.ones((1, EMBED), jnp.float32), b2=jnp.zeros((1, EMBED), jnp.float32),
    )


# ----------------------------- demo / self-check -----------------------------

if __name__ == "__main__":
    N, S = 2, 8
    root = jax.random.PRNGKey(0)
    kp, kv, kk, kq = jax.random.split(root, 4)

    params = init_params(kp)
    value = jax.random.normal(kv, (N, S, EMBED), jnp.float32)
    key_t = jax.random.normal(kk, (N, S, EMBED), jnp.float32)
    query = jax.random.normal(kq, (N, S, EMBED), jnp.float32)

    out = jax.jit(transformer_block_forward)(value, key_t, query, params)
    jax.block_until_ready(out)

    assert out.shape == (N, S, EMBED)
    assert bool(jnp.all(jnp.isfinite(out)))

    ref = reference_forward(value, key_t, query, params)
    max_err = float(jnp.max(jnp.abs(out - ref)))
    assert max_err < 5e-2, f"kernel/reference mismatch: max abs err {max_err}"

    print("KERNEL_OK")
</pallas_src>

<mosaic_0001>
module attributes {stable_mosaic.version = 11 : i64} {
  func.func @_transformer_block_kernel(%arg0: i32, %arg1: memref<1x8x256xf32, #tpu.memory_space<vmem>>, %arg2: memref<1x8x256xf32, #tpu.memory_space<vmem>>, %arg3: memref<1x8x256xf32, #tpu.memory_space<vmem>>, %arg4: memref<256x256xbf16, #tpu.memory_space<vmem>>, %arg5: memref<256x256xbf16, #tpu.memory_space<vmem>>, %arg6: memref<256x256xbf16, #tpu.memory_space<vmem>>, %arg7: memref<256x256xbf16, #tpu.memory_space<vmem>>, %arg8: memref<1x256xf32, #tpu.memory_space<vmem>>, %arg9: memref<1x256xf32, #tpu.memory_space<vmem>>, %arg10: memref<1x256xf32, #tpu.memory_space<vmem>>, %arg11: memref<256x1024xbf16, #tpu.memory_space<vmem>>, %arg12: memref<1x1024xf32, #tpu.memory_space<vmem>>, %arg13: memref<1024x256xbf16, #tpu.memory_space<vmem>>, %arg14: memref<1x256xf32, #tpu.memory_space<vmem>>, %arg15: memref<1x256xf32, #tpu.memory_space<vmem>>, %arg16: memref<1x256xf32, #tpu.memory_space<vmem>>, %arg17: memref<1x8x256xf32, #tpu.memory_space<vmem>>) attributes {dimension_semantics = [#tpu.dimension_semantics<parallel>], iteration_bounds = array<i64: 2>, scalar_prefetch = 0 : i64, scratch_operands = 0 : i64, tpu.core_type = #tpu.core_type<tc>, window_params = [{transform_indices = @transform_0, window_bounds = array<i64: 1, 8, 256>}, {transform_indices = @transform_1, window_bounds = array<i64: 1, 8, 256>}, {transform_indices = @transform_2, window_bounds = array<i64: 1, 8, 256>}, {pipeline_mode = #tpu.pipeline_mode<synchronous>, transform_indices = @transform_3, window_bounds = array<i64: 256, 256>}, {pipeline_mode = #tpu.pipeline_mode<synchronous>, transform_indices = @transform_4, window_bounds = array<i64: 256, 256>}, {pipeline_mode = #tpu.pipeline_mode<synchronous>, transform_indices = @transform_5, window_bounds = array<i64: 256, 256>}, {pipeline_mode = #tpu.pipeline_mode<synchronous>, transform_indices = @transform_6, window_bounds = array<i64: 256, 256>}, {pipeline_mode = #tpu.pipeline_mode<synchronous>, transform_indices = @transform_7, window_bounds = array<i64: 1, 256>}, {pipeline_mode = #tpu.pipeline_mode<synchronous>, transform_indices = @transform_8, window_bounds = array<i64: 1, 256>}, {pipeline_mode = #tpu.pipeline_mode<synchronous>, transform_indices = @transform_9, window_bounds = array<i64: 1, 256>}, {pipeline_mode = #tpu.pipeline_mode<synchronous>, transform_indices = @transform_10, window_bounds = array<i64: 256, 1024>}, {pipeline_mode = #tpu.pipeline_mode<synchronous>, transform_indices = @transform_11, window_bounds = array<i64: 1, 1024>}, {pipeline_mode = #tpu.pipeline_mode<synchronous>, transform_indices = @transform_12, window_bounds = array<i64: 1024, 256>}, {pipeline_mode = #tpu.pipeline_mode<synchronous>, transform_indices = @transform_13, window_bounds = array<i64: 1, 256>}, {pipeline_mode = #tpu.pipeline_mode<synchronous>, transform_indices = @transform_14, window_bounds = array<i64: 1, 256>}, {pipeline_mode = #tpu.pipeline_mode<synchronous>, transform_indices = @transform_15, window_bounds = array<i64: 1, 256>}, {transform_indices = @transform_16, window_bounds = array<i64: 1, 8, 256>}]} {
    %c0 = arith.constant 0 : index
    %c0_0 = arith.constant 0 : index
    %c0_1 = arith.constant 0 : index
    %0 = vector.load %arg3[%c0, %c0_0, %c0_1] : memref<1x8x256xf32, #tpu.memory_space<vmem>>, vector<1x8x256xf32>
    %1 = vector.shape_cast %0 : vector<1x8x256xf32> to vector<8x256xf32>
    %c0_2 = arith.constant 0 : index
    %c0_3 = arith.constant 0 : index
    %c0_4 = arith.constant 0 : index
    %2 = vector.load %arg2[%c0_2, %c0_3, %c0_4] : memref<1x8x256xf32, #tpu.memory_space<vmem>>, vector<1x8x256xf32>
    %3 = vector.shape_cast %2 : vector<1x8x256xf32> to vector<8x256xf32>
    %c0_5 = arith.constant 0 : index
    %c0_6 = arith.constant 0 : index
    %c0_7 = arith.constant 0 : index
    %4 = vector.load %arg1[%c0_5, %c0_6, %c0_7] : memref<1x8x256xf32, #tpu.memory_space<vmem>>, vector<1x8x256xf32>
    %5 = vector.shape_cast %4 : vector<1x8x256xf32> to vector<8x256xf32>
    %6 = arith.truncf %1 : vector<8x256xf32> to vector<8x256xbf16>
    %c0_8 = arith.constant 0 : index
    %c0_9 = arith.constant 0 : index
    %7 = vector.load %arg4[%c0_8, %c0_9] : memref<256x256xbf16, #tpu.memory_space<vmem>>, vector<256x256xbf16>
    %cst = arith.constant dense<0.000000e+00> : vector<8x256xf32>
    %8 = tpu.matmul %6, %7, %cst {dimension_numbers = #tpu.dot_dimension_numbers<[1], [0], [0], [1], [0, 0, 1, 1], [], []>} : vector<8x256xbf16>, vector<256x256xbf16>, vector<8x256xf32> -> vector<8x256xf32>
    %9 = arith.truncf %3 : vector<8x256xf32> to vector<8x256xbf16>
    %c0_10 = arith.constant 0 : index
    %c0_11 = arith.constant 0 : index
    %10 = vector.load %arg5[%c0_10, %c0_11] : memref<256x256xbf16, #tpu.memory_space<vmem>>, vector<256x256xbf16>
    %cst_12 = arith.constant dense<0.000000e+00> : vector<8x256xf32>
    %11 = tpu.matmul %9, %10, %cst_12 {dimension_numbers = #tpu.dot_dimension_numbers<[1], [0], [0], [1], [0, 0, 1, 1], [], []>} : vector<8x256xbf16>, vector<256x256xbf16>, vector<8x256xf32> -> vector<8x256xf32>
    %12 = arith.truncf %5 : vector<8x256xf32> to vector<8x256xbf16>
    %c0_13 = arith.constant 0 : index
    %c0_14 = arith.constant 0 : index
    %13 = vector.load %arg6[%c0_13, %c0_14] : memref<256x256xbf16, #tpu.memory_space<vmem>>, vector<256x256xbf16>
    %cst_15 = arith.constant dense<0.000000e+00> : vector<8x256xf32>
    %14 = tpu.matmul %12, %13, %cst_15 {dimension_numbers = #tpu.dot_dimension_numbers<[1], [0], [0], [1], [0, 0, 1, 1], [], []>} : vector<8x256xbf16>, vector<256x256xbf16>, vector<8x256xf32> -> vector<8x256xf32>
    %15 = vector.shape_cast %8 : vector<8x256xf32> to vector<8x8x32xf32>
    %16 = tpu.transpose %15, [1, 0, 2] : vector<8x8x32xf32> -> vector<8x8x32xf32>
    %17 = vector.shape_cast %11 : vector<8x256xf32> to vector<8x8x32xf32>
    %18 = tpu.transpose %17, [1, 0, 2] : vector<8x8x32xf32> -> vector<8x8x32xf32>
    %19 = vector.shape_cast %14 : vector<8x256xf32> to vector<8x8x32xf32>
    %20 = tpu.transpose %19, [1, 0, 2] : vector<8x8x32xf32> -> vector<8x8x32xf32>
    "tpu.trace_start"() <{level = 10 : i32, message = "hqd,hkd->hqk"}> : () -> ()
    %cst_16 = arith.constant dense<0.000000e+00> : vector<8x8x8xf32>
    %21 = tpu.matmul %16, %18, %cst_16 {dimension_numbers = #tpu.dot_dimension_numbers<[2], [2], [1], [1], [0, 0, 0, 1, 1, 1], [0], [0]>} : vector<8x8x32xf32>, vector<8x8x32xf32>, vector<8x8x8xf32> -> vector<8x8x8xf32>
    "tpu.trace_stop"() : () -> ()
    %cst_17 = arith.constant 6.250000e-02 : f32
    %22 = vector.broadcast %cst_17 : f32 to vector<8x8x8xf32>
    %23 = arith.mulf %21, %22 : vector<8x8x8xf32>
    %cst_18 = arith.constant dense<0xFF800000> : vector<8x8xf32>
    %24 = vector.multi_reduction <maximumf>, %23, %cst_18 [2] : vector<8x8x8xf32> to vector<8x8xf32>
    %25 = vector.shape_cast %24 : vector<8x8xf32> to vector<8x8x1xf32>
    %26 = vector.broadcast %25 : vector<8x8x1xf32> to vector<8x8x8xf32>
    %27 = arith.subf %23, %26 : vector<8x8x8xf32>
    %28 = math.exp %27 : vector<8x8x8xf32>
    %cst_19 = arith.constant dense<0.000000e+00> : vector<8x8xf32>
    %29 = vector.multi_reduction <add>, %28, %cst_19 [2] : vector<8x8x8xf32> to vector<8x8xf32>
    %30 = vector.shape_cast %29 : vector<8x8xf32> to vector<8x8x1xf32>
    %31 = tpu.reciprocal %30 {approx = true} : vector<8x8x1xf32> -> vector<8x8x1xf32>
    %32 = vector.broadcast %31 : vector<8x8x1xf32> to vector<8x8x8xf32>
    %33 = arith.mulf %28, %32 : vector<8x8x8xf32>
    "tpu.trace_start"() <{level = 10 : i32, message = "hqk,hkd->hqd"}> : () -> ()
    %cst_20 = arith.constant dense<0.000000e+00> : vector<8x8x32xf32>
    %34 = tpu.matmul %33, %20, %cst_20 {dimension_numbers = #tpu.dot_dimension_numbers<[2], [1], [1], [2], [0, 0, 0, 1, 1, 2], [0], [0]>} : vector<8x8x8xf32>, vector<8x8x32xf32>, vector<8x8x32xf32> -> vector<8x8x32xf32>
    "tpu.trace_stop"() : () -> ()
    %35 = tpu.transpose %34, [1, 0, 2] : vector<8x8x32xf32> -> vector<8x8x32xf32>
    %36 = vector.shape_cast %35 : vector<8x8x32xf32> to vector<8x256xf32>
    %37 = arith.truncf %36 : vector<8x256xf32> to vector<8x256xbf16>
    %c0_21 = arith.constant 0 : index
    %c0_22 = arith.constant 0 : index
    %38 = vector.load %arg7[%c0_21, %c0_22] : memref<256x256xbf16, #tpu.memory_space<vmem>>, vector<256x256xbf16>
    %cst_23 = arith.constant dense<0.000000e+00> : vector<8x256xf32>
    %39 = tpu.matmul %37, %38, %cst_23 {dimension_numbers = #tpu.dot_dimension_numbers<[1], [0], [0], [1], [0, 0, 1, 1], [], []>} : vector<8x256xbf16>, vector<256x256xbf16>, vector<8x256xf32> -> vector<8x256xf32>
    %c0_24 = arith.constant 0 : index
    %c0_25 = arith.constant 0 : index
    %40 = vector.load %arg8[%c0_24, %c0_25] : memref<1x256xf32, #tpu.memory_space<vmem>>, vector<1x256xf32>
    %41 = vector.broadcast %40 : vector<1x256xf32> to vector<8x256xf32>
    %42 = arith.addf %39, %41 : vector<8x256xf32>
    %43 = arith.addf %42, %1 : vector<8x256xf32>
    %cst_26 = arith.constant dense<0.000000e+00> : vector<8xf32>
    %44 = vector.multi_reduction <add>, %43, %cst_26 [1] : vector<8x256xf32> to vector<8xf32>
    %45 = vector.shape_cast %44 : vector<8xf32> to vector<8x1xf32>
    %cst_27 = arith.constant 2.560000e+02 : f32
    %46 = vector.broadcast %cst_27 : f32 to vector<8x1xf32>
    %47 = arith.divf %45, %46 : vector<8x1xf32>
    %48 = vector.broadcast %47 : vector<8x1xf32> to vector<8x256xf32>
    %49 = arith.subf %43, %48 : vector<8x256xf32>
    %50 = arith.mulf %49, %49 : vector<8x256xf32>
    %cst_28 = arith.constant dense<0.000000e+00> : vector<8xf32>
    %51 = vector.multi_reduction <add>, %50, %cst_28 [1] : vector<8x256xf32> to vector<8xf32>
    %52 = vector.shape_cast %51 : vector<8xf32> to vector<8x1xf32>
    %cst_29 = arith.constant 2.560000e+02 : f32
    %53 = vector.broadcast %cst_29 : f32 to vector<8x1xf32>
    %54 = arith.divf %52, %53 : vector<8x1xf32>
    %55 = vector.broadcast %47 : vector<8x1xf32> to vector<8x256xf32>
    %56 = arith.subf %43, %55 : vector<8x256xf32>
    %cst_30 = arith.constant 9.99999974E-6 : f32
    %57 = vector.broadcast %cst_30 : f32 to vector<8x1xf32>
    %58 = arith.addf %54, %57 : vector<8x1xf32>
    %59 = math.rsqrt %58 : vector<8x1xf32>
    %60 = vector.broadcast %59 : vector<8x1xf32> to vector<8x256xf32>
    %61 = arith.mulf %56, %60 : vector<8x256xf32>
    %c0_31 = arith.constant 0 : index
    %c0_32 = arith.constant 0 : index
    %62 = vector.load %arg9[%c0_31, %c0_32] : memref<1x256xf32, #tpu.memory_space<vmem>>, vector<1x256xf32>
    %63 = vector.broadcast %62 : vector<1x256xf32> to vector<8x256xf32>
    %64 = arith.mulf %61, %63 : vector<8x256xf32>
    %c0_33 = arith.constant 0 : index
    %c0_34 = arith.constant 0 : index
    %65 = vector.load %arg10[%c0_33, %c0_34] : memref<1x256xf32, #tpu.memory_space<vmem>>, vector<1x256xf32>
    %66 = vector.broadcast %65 : vector<1x256xf32> to vector<8x256xf32>
    %67 = arith.addf %64, %66 : vector<8x256xf32>
    %68 = arith.truncf %67 : vector<8x256xf32> to vector<8x256xbf16>
    %c0_35 = arith.constant 0 : index
    %c0_36 = arith.constant 0 : index
    %69 = vector.load %arg11[%c0_35, %c0_36] : memref<256x1024xbf16, #tpu.memory_space<vmem>>, vector<256x1024xbf16>
    %cst_37 = arith.constant dense<0.000000e+00> : vector<8x1024xf32>
    %70 = tpu.matmul %68, %69, %cst_37 {dimension_numbers = #tpu.dot_dimension_numbers<[1], [0], [0], [1], [0, 0, 1, 1], [], []>} : vector<8x256xbf16>, vector<256x1024xbf16>, vector<8x1024xf32> -> vector<8x1024xf32>
    %c0_38 = arith.constant 0 : index
    %c0_39 = arith.constant 0 : index
    %71 = vector.load %arg12[%c0_38, %c0_39] : memref<1x1024xf32, #tpu.memory_space<vmem>>, vector<1x1024xf32>
    %72 = vector.broadcast %71 : vector<1x1024xf32> to vector<8x1024xf32>
    %73 = arith.addf %70, %72 : vector<8x1024xf32>
    %cst_40 = arith.constant 0.000000e+00 : f32
    %74 = vector.broadcast %cst_40 : f32 to vector<8x1024xf32>
    %75 = arith.maximumf %73, %74 : vector<8x1024xf32>
    %76 = arith.truncf %75 : vector<8x1024xf32> to vector<8x1024xbf16>
    %c0_41 = arith.constant 0 : index
    %c0_42 = arith.constant 0 : index
    %77 = vector.load %arg13[%c0_41, %c0_42] : memref<1024x256xbf16, #tpu.memory_space<vmem>>, vector<1024x256xbf16>
    %cst_43 = arith.constant dense<0.000000e+00> : vector<8x256xf32>
    %78 = tpu.matmul %76, %77, %cst_43 {dimension_numbers = #tpu.dot_dimension_numbers<[1], [0], [0], [1], [0, 0, 1, 1], [], []>} : vector<8x1024xbf16>, vector<1024x256xbf16>, vector<8x256xf32> -> vector<8x256xf32>
    %c0_44 = arith.constant 0 : index
    %c0_45 = arith.constant 0 : index
    %79 = vector.load %arg14[%c0_44, %c0_45] : memref<1x256xf32, #tpu.memory_space<vmem>>, vector<1x256xf32>
    %80 = vector.broadcast %79 : vector<1x256xf32> to vector<8x256xf32>
    %81 = arith.addf %78, %80 : vector<8x256xf32>
    %82 = arith.addf %81, %67 : vector<8x256xf32>
    %cst_46 = arith.constant dense<0.000000e+00> : vector<8xf32>
    %83 = vector.multi_reduction <add>, %82, %cst_46 [1] : vector<8x256xf32> to vector<8xf32>
    %84 = vector.shape_cast %83 : vector<8xf32> to vector<8x1xf32>
    %cst_47 = arith.constant 2.560000e+02 : f32
    %85 = vector.broadcast %cst_47 : f32 to vector<8x1xf32>
    %86 = arith.divf %84, %85 : vector<8x1xf32>
    %87 = vector.broadcast %86 : vector<8x1xf32> to vector<8x256xf32>
    %88 = arith.subf %82, %87 : vector<8x256xf32>
    %89 = arith.mulf %88, %88 : vector<8x256xf32>
    %cst_48 = arith.constant dense<0.000000e+00> : vector<8xf32>
    %90 = vector.multi_reduction <add>, %89, %cst_48 [1] : vector<8x256xf32> to vector<8xf32>
    %91 = vector.shape_cast %90 : vector<8xf32> to vector<8x1xf32>
    %cst_49 = arith.constant 2.560000e+02 : f32
    %92 = vector.broadcast %cst_49 : f32 to vector<8x1xf32>
    %93 = arith.divf %91, %92 : vector<8x1xf32>
    %94 = vector.broadcast %86 : vector<8x1xf32> to vector<8x256xf32>
    %95 = arith.subf %82, %94 : vector<8x256xf32>
    %cst_50 = arith.constant 9.99999974E-6 : f32
    %96 = vector.broadcast %cst_50 : f32 to vector<8x1xf32>
    %97 = arith.addf %93, %96 : vector<8x1xf32>
    %98 = math.rsqrt %97 : vector<8x1xf32>
    %99 = vector.broadcast %98 : vector<8x1xf32> to vector<8x256xf32>
    %100 = arith.mulf %95, %99 : vector<8x256xf32>
    %c0_51 = arith.constant 0 : index
    %c0_52 = arith.constant 0 : index
    %101 = vector.load %arg15[%c0_51, %c0_52] : memref<1x256xf32, #tpu.memory_space<vmem>>, vector<1x256xf32>
    %102 = vector.broadcast %101 : vector<1x256xf32> to vector<8x256xf32>
    %103 = arith.mulf %100, %102 : vector<8x256xf32>
    %c0_53 = arith.constant 0 : index
    %c0_54 = arith.constant 0 : index
    %104 = vector.load %arg16[%c0_53, %c0_54] : memref<1x256xf32, #tpu.memory_space<vmem>>, vector<1x256xf32>
    %105 = vector.broadcast %104 : vector<1x256xf32> to vector<8x256xf32>
    %106 = arith.addf %103, %105 : vector<8x256xf32>
    %c0_55 = arith.constant 0 : index
    %c0_56 = arith.constant 0 : index
    %c0_57 = arith.constant 0 : index
    %107 = vector.load %arg17[%c0_55, %c0_56, %c0_57] : memref<1x8x256xf32, #tpu.memory_space<vmem>>, vector<1x8x256xf32>
    %108 = vector.shape_cast %107 : vector<1x8x256xf32> to vector<8x256xf32>
    %109 = vector.shape_cast %106 : vector<8x256xf32> to vector<1x8x256xf32>
    tpu.vector_store %arg17[%c0_55, %c0_56, %c0_57], %109 {strides = array<i32>} : memref<1x8x256xf32, #tpu.memory_space<vmem>>, vector<1x8x256xf32>,
    return
  }
  func.func @transform_0(%arg0: i32) -> (i32, i32, i32) {
    %c0_i32 = arith.constant 0 : i32
    %c0_i32_0 = arith.constant 0 : i32
    %c0_i32_1 = arith.constant 0 : i32
    return %arg0, %c0_i32, %c0_i32_0 : i32, i32, i32
  }
  func.func @transform_1(%arg0: i32) -> (i32, i32, i32) {
    %c0_i32 = arith.constant 0 : i32
    %c0_i32_0 = arith.constant 0 : i32
    %c0_i32_1 = arith.constant 0 : i32
    return %arg0, %c0_i32, %c0_i32_0 : i32, i32, i32
  }
  func.func @transform_2(%arg0: i32) -> (i32, i32, i32) {
    %c0_i32 = arith.constant 0 : i32
    %c0_i32_0 = arith.constant 0 : i32
    %c0_i32_1 = arith.constant 0 : i32
    return %arg0, %c0_i32, %c0_i32_0 : i32, i32, i32
  }
  func.func @transform_3(%arg0: i32) -> (i32, i32) {
    %c0_i32 = arith.constant 0 : i32
    %c0_i32_0 = arith.constant 0 : i32
    %c0_i32_1 = arith.constant 0 : i32
    return %c0_i32, %c0_i32_0 : i32, i32
  }
  func.func @transform_4(%arg0: i32) -> (i32, i32) {
    %c0_i32 = arith.constant 0 : i32
    %c0_i32_0 = arith.constant 0 : i32
    %c0_i32_1 = arith.constant 0 : i32
    return %c0_i32, %c0_i32_0 : i32, i32
  }
  func.func @transform_5(%arg0: i32) -> (i32, i32) {
    %c0_i32 = arith.constant 0 : i32
    %c0_i32_0 = arith.constant 0 : i32
    %c0_i32_1 = arith.constant 0 : i32
    return %c0_i32, %c0_i32_0 : i32, i32
  }
  func.func @transform_6(%arg0: i32) -> (i32, i32) {
    %c0_i32 = arith.constant 0 : i32
    %c0_i32_0 = arith.constant 0 : i32
    %c0_i32_1 = arith.constant 0 : i32
    return %c0_i32, %c0_i32_0 : i32, i32
  }
  func.func @transform_7(%arg0: i32) -> (i32, i32) {
    %c0_i32 = arith.constant 0 : i32
    %c0_i32_0 = arith.constant 0 : i32
    %c0_i32_1 = arith.constant 0 : i32
    return %c0_i32, %c0_i32_0 : i32, i32
  }
  func.func @transform_8(%arg0: i32) -> (i32, i32) {
    %c0_i32 = arith.constant 0 : i32
    %c0_i32_0 = arith.constant 0 : i32
    %c0_i32_1 = arith.constant 0 : i32
    return %c0_i32, %c0_i32_0 : i32, i32
  }
  func.func @transform_9(%arg0: i32) -> (i32, i32) {
    %c0_i32 = arith.constant 0 : i32
    %c0_i32_0 = arith.constant 0 : i32
    %c0_i32_1 = arith.constant 0 : i32
    return %c0_i32, %c0_i32_0 : i32, i32
  }
  func.func @transform_10(%arg0: i32) -> (i32, i32) {
    %c0_i32 = arith.constant 0 : i32
    %c0_i32_0 = arith.constant 0 : i32
    %c0_i32_1 = arith.constant 0 : i32
    return %c0_i32, %c0_i32_0 : i32, i32
  }
  func.func @transform_11(%arg0: i32) -> (i32, i32) {
    %c0_i32 = arith.constant 0 : i32
    %c0_i32_0 = arith.constant 0 : i32
    %c0_i32_1 = arith.constant 0 : i32
    return %c0_i32, %c0_i32_0 : i32, i32
  }
  func.func @transform_12(%arg0: i32) -> (i32, i32) {
    %c0_i32 = arith.constant 0 : i32
    %c0_i32_0 = arith.constant 0 : i32
    %c0_i32_1 = arith.constant 0 : i32
    return %c0_i32, %c0_i32_0 : i32, i32
  }
  func.func @transform_13(%arg0: i32) -> (i32, i32) {
    %c0_i32 = arith.constant 0 : i32
    %c0_i32_0 = arith.constant 0 : i32
    %c0_i32_1 = arith.constant 0 : i32
    return %c0_i32, %c0_i32_0 : i32, i32
  }
  func.func @transform_14(%arg0: i32) -> (i32, i32) {
    %c0_i32 = arith.constant 0 : i32
    %c0_i32_0 = arith.constant 0 : i32
    %c0_i32_1 = arith.constant 0 : i32
    return %c0_i32, %c0_i32_0 : i32, i32
  }
  func.func @transform_15(%arg0: i32) -> (i32, i32) {
    %c0_i32 = arith.constant 0 : i32
    %c0_i32_0 = arith.constant 0 : i32
    %c0_i32_1 = arith.constant 0 : i32
    return %c0_i32, %c0_i32_0 : i32, i32
  }
  func.func @transform_16(%arg0: i32) -> (i32, i32, i32) {
    %c0_i32 = arith.constant 0 : i32
    %c0_i32_0 = arith.constant 0 : i32
    %c0_i32_1 = arith.constant 0 : i32
    return %arg0, %c0_i32, %c0_i32_0 : i32, i32, i32
  }
}

</mosaic_0001>

<bundles_post_ra>
// kernel: transformer_block_forward.1
= control target key start
LH: loop header
LB: loop body
LE: loop exit
PB: predicated region body
PF: predicated region fallthrough
CT: control target
= control target key end

     0   :  { %s8940_s0 = inlined_call_operand.hbm [shape: f32[2,8,256], index: 0, kind: input, shape index: {}]   ;;  %s8941_s1 = inlined_call_operand.hbm [shape: f32[2,8,256], index: 1, kind: input, shape index: {}]   ;;  %s8942_s2 = inlined_call_operand.hbm [shape: f32[2,8,256], index: 2, kind: input, shape index: {}]   ;;  %s8943_s3 = inlined_call_operand.hbm [shape: bf16[256,256], index: 3, kind: input, shape index: {}]   ;;  %s8944_s4 = inlined_call_operand.hbm [shape: bf16[256,256], index: 4, kind: input, shape index: {}]   ;;  %s8945_s5 = inlined_call_operand.hbm [shape: bf16[256,256], index: 5, kind: input, shape index: {}]   ;;  %s8946_s6 = inlined_call_operand.hbm [shape: bf16[256,256], index: 6, kind: input, shape index: {}]   ;;  %s8947_s7 = inlined_call_operand.vmem [shape: f32[1,256], index: 7, kind: input, shape index: {}]   ;;  %s8948_s8 = inlined_call_operand.vmem [shape: f32[1,256], index: 8, kind: input, shape index: {}]   ;;  %s8949_s9 = inlined_call_operand.hbm [shape: f32[1,256], index: 9, kind: input, shape index: {}]   ;;  %s8950_s10 = inlined_call_operand.hbm [shape: bf16[256,1024], index: 10, kind: input, shape index: {}]   ;;  %s8951_s11 = inlined_call_operand.vmem [shape: f32[1,1024], index: 11, kind: input, shape index: {}]   ;;  %s8952_s12 = inlined_call_operand.hbm [shape: bf16[1024,256], index: 12, kind: input, shape index: {}]   ;;  %s8953_s13 = inlined_call_operand.hbm [shape: f32[1,256], index: 13, kind: input, shape index: {}]   ;;  %s8954_s14 = inlined_call_operand.vmem [shape: f32[1,256], index: 14, kind: input, shape index: {}]   ;;  %s8955_s15 = inlined_call_operand.hbm [shape: f32[1,256], index: 15, kind: input, shape index: {}]   ;;  %s8956_s16 = inlined_call_operand.hbm [shape: f32[2,8,256], index: 16, kind: output, shape index: {}]  }
   0x1   :  { %8983 = sst [smem:[#allocation37_spill]] %s8940_s0 }
   0x2   :  { %8984 = sst [smem:[#allocation38_spill]] %s8941_s1 }
   0x3   :  { %8985 = sst [smem:[#allocation39_spill]] %s8943_s3 }
   0x4   :  { %8986 = sst [smem:[#allocation40_spill]] %s8944_s4 }
   0x5   :  { %8987 = sst [smem:[#allocation41_spill]] %s8945_s5 }
   0x6   :  { %8988 = sst [smem:[#allocation42_spill]] %s8948_s8 }
   0x7   :  { %8989 = sst [smem:[#allocation43_spill]] %s8949_s9 }
   0x8   :  { %8990 = sst [smem:[#allocation44_spill]] %s8951_s11 }
   0x9   :  { %8991 = sst [smem:[#allocation45_spill]] %s8952_s12 }
   0xa   :  { %8992 = sst [smem:[#allocation46_spill]] %s8954_s14 }
   0xb   :  { %8993 = sst [smem:[#allocation47_spill]] %s8956_s16 }
   0xc   :  { %21 = vsyncpa [#allocation3], 0 }
   0xd   :  { %23 = vsyncpa [#allocation3 + $0x1], 0 }
   0xe   :  { %24 = vsyncpa [#allocation6], 0 }
   0xf   :  { %26 = vsyncpa [#allocation6 + $0x1], 0 }
  0x10   :  { %27 = vsyncpa [#allocation9], 0 }
  0x11   :  { %28 = vsyncpa [#allocation12], 0 }
  0x12   :  { %29 = vsyncpa [#allocation15], 0 }
  0x13   :  { %30 = vsyncpa [#allocation18], 0 }
  0x14   :  { %31 = vsyncpa [#allocation21], 0 }
  0x15   :  { %32 = vsyncpa [#allocation4], 0 }
  0x16   :  { %34 = vsyncpa [#allocation4 + $0x1], 0  ;;  %s8117_s21 = smov 0   ;;  %s8119_s22 = smov 0  }
  0x17   :  { %s8121_s23 = smov 0   ;;  %s8123_s24 = smov 0  }
  0x18 LB: > { %8994 = sst [smem:[#allocation31_spill]] %s7994_s21  ;;  %s8008_s25 = smov [#allocation8]   ;;  %s8006_s24 = sphi %s8123_s24, %s9045_s24   ;;  %s8002_s23 = sphi %s8121_s23, %s9049_s23   ;;  %s7998_s22 = sphi %s8119_s22, %s9048_s22   ;;  %s7994_s21 = sphi %s8117_s21, %s9047_s21  }
  0x19   : > { %8995 = sst [smem:[#allocation32_spill]] %s8006_s24  ;;  %s434_s26 = sshll.u32 %s8008_s25, 4  ;;  %s435_s26 = int_to_ptr.vmem [resolvable:$true] %s434_s26 }
  0x1a   : > { %s8138_s27 = sadd.s32 4294967295, %s8006_s24   ;;  %p6410_p0 = scmp.ge.s32.totalorder %s8006_s24, 1 }
  0x1b   : > { %p8972_p1 = scmp.eq.s32.totalorder %s8138_s27, 0  ;;  %p422_p2 = scmp.lt.s32.totalorder %s8006_s24, 3 }
  0x1c   : > { %s8009_s29 = smov [#allocation11]   ;;  %s8010_s17 = smov [#allocation14]  }
  0x1d   : > { %p8143_p3 = pnand %p6410_p0, %p422_p2  ;;  %s460_s30 = sshll.u32 %s8009_s29, 4  ;;  %s8156_s30 = int_to_ptr.vmem [resolvable:$true] %s460_s30 }
  0x1e   : > { %s493_s18 = sshll.u32 %s8010_s17, 4  ;;  %s7611_s20 = scalar_lea.vmem %s435_s26, 4096  ;;  %s8158_s18 = int_to_ptr.vmem [resolvable:$true] %s493_s18 }
  0x1f   : > { %s8996_s28 = scalar_select %p8143_p3, 1, 0 }
  0x20   : > { %p7049_p5 = pneg %p8143_p3  ;;  %p7612_p8 = scmp.ne.s32.totalorder %s435_s26, %s7611_s20 }
  0x21   : > { %p7619_p11 = scmp.lt.s32.totalorder %s435_s26, %s435_s26  ;;  %p7620_p12 = scmp.lt.s32.totalorder %s7611_s20, %s7611_s20 }
  0x22   : > { %p8152_p6 = pnand %p7049_p5, %p8972_p1 }
  0x23   : > { %p7621_p13 = por %p7620_p12, %p7619_p11 }
  0x24   : > { %s8997_s0 = scalar_select %p8152_p6, 1, 0 }
  0x25   : > { %p8162_p7 = pneg %p8152_p6 }
  0x27   : > { %s8998_s19 = scalar_select %p8162_p7, 1, 0 }
  0x28   : > { %p7614_p9 = pnand %p7612_p8, %p8162_p7 }
  0x2a   : > { %p7615_p10 = pneg %p7614_p9 }
  0x2c   : > { %p7622_p0 = pnand %p7621_p13, %p7615_p10 }
  0x2e   : > { %7625 = shalt.err (!%p7622_p0)
}
  0x2f   : > { %s8959_s25 = smov 128   ;;  %s8962_s29 = smov 8  }
  0x30   : > { %s8999_s3 = sld [smem:[#allocation39_spill]]  ;;  %s7637_s14 = scalar_lea.vmem %s8156_s30, 4096 }
  0x31   : > { %p7638_p2 = scmp.ne.s32.totalorder %s8156_s30, %s7637_s14  ;;  %p7645_p9 = scmp.lt.s32.totalorder %s8156_s30, %s8156_s30 }
  0x32   : > { %p7646_p10 = scmp.lt.s32.totalorder %s7637_s14, %s7637_s14 }
  0x33   : > { %p7640_p5 = pnand %p7638_p2, %p8162_p7 }
  0x34   : > { %p7647_p11 = por %p7646_p10, %p7645_p9 }
  0x35   : > { %p7641_p8 = pneg %p7640_p5 }
  0x36   : > { %7052 = dma.hbm_to_vmem [thread:$0]  (!%p8152_p6), %s8999_s3, 4096, %s435_s26, [#allocation9], %s8959_s25, %s8959_s25, %s8962_s29  }
  0x37   : > { %p7648_p12 = pnand %p7647_p11, %p7641_p8 }
  0x39   : > { %7651 = shalt.err (!%p7648_p12)
}
  0x3a   : > { %s9000_s5 = sld [smem:[#allocation41_spill]]  ;;  %s7663_s26 = scalar_lea.vmem %s8158_s18, 32 }
  0x3b   : > { %p7664_p13 = scmp.ne.s32.totalorder %s8158_s18, %s7663_s26  ;;  %p7671_p5 = scmp.lt.s32.totalorder %s8158_s18, %s8158_s18 }
  0x3c   : > { %p7672_p8 = scmp.lt.s32.totalorder %s7663_s26, %s7663_s26 }
  0x3d   : > { %p7666_p0 = pnand %p7664_p13, %p8162_p7 }
  0x3e   : > { %p7673_p9 = por %p7672_p8, %p7671_p5 }
  0x3f   : > { %p7667_p2 = pneg %p7666_p0 }
  0x40   : > { %7058 = dma.hbm_to_vmem [thread:$0]  (!%p8152_p6), %s9000_s5, 4096, %s8156_s30, [#allocation12], %s8959_s25, %s8959_s25, %s8962_s29  }
  0x41   : > { %p7674_p10 = pnand %p7673_p9, %p7667_p2 }
  0x43   : > { %7677 = shalt.err (!%p7674_p10)
}
  0x44   : > { %s9001_s9 = sld [smem:[#allocation43_spill]]  ;;  %s8013_s30 = smov [#allocation17]  }
  0x45   : > { %s519_s20 = sshll.u32 %s8013_s30, 4  ;;  %s520_s20 = int_to_ptr.vmem [resolvable:$true] %s519_s20 }
  0x46   : > { %s7689_s16 = scalar_lea.vmem %s520_s20, 16384  ;;  %p7697_p0 = scmp.lt.s32.totalorder %s520_s20, %s520_s20 }
  0x47   : > { %p7690_p11 = scmp.ne.s32.totalorder %s520_s20, %s7689_s16  ;;  %p7698_p5 = scmp.lt.s32.totalorder %s7689_s16, %s7689_s16 }
  0x49   : > { %p7692_p12 = pnand %p7690_p11, %p8162_p7  ;;  %p7699_p2 = por %p7698_p5, %p7697_p0 }
  0x4a   : > { %7064 = dma.hbm_to_vmem [thread:$0]  (!%p8152_p6), %s9001_s9, 32, %s8158_s18, [#allocation15]  }
  0x4b   : > { %p7693_p13 = pneg %p7692_p12 }
  0x4d   : > { %p7700_p8 = pnand %p7699_p2, %p7693_p13 }
  0x4f   : > { %7703 = shalt.err (!%p7700_p8)
}
  0x50   : > { %s9002_s12 = sld [smem:[#allocation45_spill]]  ;;  %s6409_s14 = sadd.s32 4294967294, %s8006_s24  }
  0x51   : > { %s8215_s17 = sadd.s32 1, %s8006_s24   ;;  %s47_s16 = sadd.s32 1, %s8002_s23 }
  0x52   : > { %9003 = sst [smem:[#allocation33_spill]] %s8215_s17  ;;  %s44_s30 = ssub.s32 %s8006_s24, %s8215_s17 }
  0x53   : > { %p45_p9 = scmp.eq.s32.totalorder %s44_s30, 0  ;;  %p54_p10 = scmp.ne.s32.totalorder %s8002_s23, %s7998_s22 }
  0x54   : > { %p55_p11 = scmp.eq.s32.totalorder %s8006_s24, 0  ;;  %p60_p12 = scmp.ne.s32.totalorder %s7998_s22, %s7994_s21 }
  0x55   : > { %s8226_s26 = scalar_select %p45_p9, %s8002_s23, %s47_s16  }
  0x56   : > { %7070 = dma.hbm_to_vmem [thread:$0]  (!%p8152_p6), %s9002_s12, 16384, %s520_s20, [#allocation18], %s8959_s25, %s8959_s25, %s8962_s29  }
  0x57   : > { %9004 = sst [smem:[#allocation34_spill]] %s8226_s26  ;;  %p56_p13 = por %p55_p11, %p54_p10 }
  0x58   : > { %p8230_p0 = por %p8972_p1, %p60_p12  ;;  %p409_p5 = scmp.eq.s32.totalorder %s8138_s27, 1 }
  0x59   : > { %p415_p2 = scmp.eq.s32.totalorder %s6409_s14, 1  ;;  %p7100_p8 = scmp.lt.s32.totalorder %s8006_s24, 2 }
  0x5a   : > { %s9005_s18 = scalar_select %p8230_p0, 1, 0 }
  0x5b   : > { %s8964_s20 = sand.u32 1, %s8002_s23   ;;  %p8237_p4 = por %p409_p5, %p54_p10 }
  0x5c   : > { %p8241_p3 = por %p415_p2, %p60_p12  ;;  %s8247_s16 = sshll.u32 %s8964_s20, 4 }
  0x5d   : > { %s9006_s25 = scalar_select %p8237_p4, 1, 0 }
  0x5e   : > { %s9008_s30 = scalar_select %p8241_p3, 1, 0 }
  0x5f   : > { %9007 = sst [smem:[#allocation35_spill]] %s9006_s25  ;;  %s8250_s29 = sshll.u32 %s8006_s24, 8 }
  0x60   : > { %9009 = sst [smem:[#allocation36_spill]] %s9008_s30  ;;  %p8252_p9 = pnand %p7100_p8, %p56_p13 }
  0x61   : > { %s577_s14 = sand.u32 1, %s8006_s24   ;;  %s9011_s1 = sld [smem:[#allocation38_spill]] }
  0x62   : > { %s9010_s3 = scalar_select %p8252_p9, 1, 0 }
  0x63   : > { %s581_s20 = scalar_lea.vmem [#allocation5], %s8247_s16  ;;  %s8014_s17 = smov [#allocation10]  }
  0x64   : > { %s589_s26 = sshll.u32 %s581_s20, 4  ;;  %s447_s30 = sshll.u32 %s8014_s17, 4  ;;  %s8264_s26 = int_to_ptr.vmem [resolvable:$true] %s589_s26  ;;  %s448_s30 = int_to_ptr.vmem [resolvable:$true] %s447_s30 }
  0x65   : > { %s8266_s21 = scalar_lea.sflag [#allocation6], %s577_s14  ;;  %p8272_p11 = pneg %p8252_p9 }
  0x67   : > { %s8261_s12 = scalar_lea.hbm %s9011_s1, %s8250_s29  ;;  %s7709_s20 = scalar_lea.hbm %s9011_s1, 512 }
  0x68   : > { %s7704_s25 = scalar_lea.hbm %s8261_s12, 256  ;;  %p7710_p5 = scmp.lt.s32.totalorder %s8261_s12, %s9011_s1 }
  0x69   : > { %p7705_p10 = scmp.ne.s32.totalorder %s8261_s12, %s7704_s25  ;;  %p7711_p2 = scmp.lt.s32.totalorder %s7709_s20, %s7704_s25 }
  0x6a   : > { %s9012_s24 = scalar_select %p8272_p11, 1, 0 }
  0x6b   : > { %p7707_p12 = pnand %p8272_p11, %p7705_p10  ;;  %p7712_p8 = por %p7711_p2, %p7710_p5 }
  0x6d   : > { %p7708_p13 = pneg %p7707_p12 }
  0x6f   : > { %p7713_p1 = pnand %p7712_p8, %p7708_p13 }
  0x71   : > { %7716 = shalt.err (!%p7713_p1)
}
  0x72   : > { %s7717_s17 = scalar_lea.vmem %s8264_s26, 256  ;;  %s8015_s14 = smov [#allocation5]  }
  0x73   : > { %p7718_p3 = scmp.ne.s32.totalorder %s8264_s26, %s7717_s17  ;;  %s7722_s5 = sshll.u32 %s8015_s14, 4  ;;  %s7723_s5 = int_to_ptr.vmem [resolvable:$false] %s7722_s5 }
  0x74   : > { %s7724_s9 = scalar_lea.vmem %s7723_s5, 512  ;;  %p7725_p4 = scmp.lt.s32.totalorder %s8264_s26, %s7723_s5 }
  0x75   : > { %p7720_p10 = pnand %p7718_p3, %p8272_p11  ;;  %p7726_p0 = scmp.lt.s32.totalorder %s7724_s9, %s7717_s17 }
  0x77   : > { %p7721_p12 = pneg %p7720_p10  ;;  %p7727_p6 = por %p7726_p0, %p7725_p4 }
  0x79   : > { %p7728_p7 = pnand %p7727_p6, %p7721_p12 }
  0x7b   : > { %7731 = shalt.err (!%p7728_p7)
}
  0x7c   : > { %7083 = dma.hbm_to_vmem [thread:$0]  (!%p8252_p9), %s8261_s12, 256, %s8264_s26, %s8266_s21  }
  0x7d   : > { %s7743_s8 = scalar_lea.vmem %s448_s30, 4096  ;;  %p9013_p3 = scmp.ne.s32.totalorder %s8998_s19, 0 }
  0x7e   : > { %p7744_p1 = scmp.ne.s32.totalorder %s448_s30, %s7743_s8  ;;  %p7751_p2 = scmp.lt.s32.totalorder %s448_s30, %s448_s30 }
  0x7f   : > { %p7752_p8 = scmp.lt.s32.totalorder %s7743_s8, %s7743_s8 }
  0x80   : > { %p7746_p13 = pnand %p7744_p1, %p9013_p3 }
  0x81   : > { %p7753_p10 = por %p7752_p8, %p7751_p2 }
  0x82   : > { %p7747_p5 = pneg %p7746_p13 }
  0x84   : > { %p7754_p11 = pnand %p7753_p10, %p7747_p5 }
  0x86   : > { %7757 = shalt.err (!%p7754_p11)
}
  0x87   : > { %p9014_p4 = scmp.ne.s32.totalorder %s8997_s0, 0  ;;  %s9015_s11 = smov 8  }
  0x88   : > { %s9016_s25 = smov 128   ;;  %s9017_s4 = sld [smem:[#allocation40_spill]] }
  0x89   : > { %s8016_s12 = smov [#allocation13]   ;;  %s8017_s14 = smov [#allocation16]  }
  0x8a   : > { %s473_s26 = sshll.u32 %s8016_s12, 4  ;;  %s503_s5 = sshll.u32 %s8017_s14, 4  ;;  %s474_s26 = int_to_ptr.vmem [resolvable:$true] %s473_s26  ;;  %s504_s5 = int_to_ptr.vmem [resolvable:$true] %s503_s5 }
  0x8b   : > { %s7769_s9 = scalar_lea.vmem %s474_s26, 4096  ;;  %p7777_p11 = scmp.lt.s32.totalorder %s474_s26, %s474_s26 }
  0x8c   : > { %p7770_p6 = scmp.ne.s32.totalorder %s474_s26, %s7769_s9  ;;  %p7778_p12 = scmp.lt.s32.totalorder %s7769_s9, %s7769_s9 }
  0x8e   : > { %7055 = dma.hbm_to_vmem [thread:$0]  (!%p9014_p4), %s9017_s4, 4096, %s448_s30, [#allocation9], %s9016_s25, %s9016_s25, %s9015_s11  }
  0x8f   : > { %p7772_p7 = pnand %p7770_p6, %p9013_p3  ;;  %p7779_p1 = por %p7778_p12, %p7777_p11 }
  0x91   : > { %p7773_p0 = pneg %p7772_p7 }
  0x93   : > { %p7780_p13 = pnand %p7779_p1, %p7773_p0 }
  0x95   : > { %7783 = shalt.err (!%p7780_p13)
}
  0x96   : > { %7061 = dma.hbm_to_vmem [thread:$0]  (!%p9014_p4), %s8946_s6, 4096, %s474_s26, [#allocation12], %s9016_s25, %s9016_s25, %s9015_s11  }
  0x97   : > { %s7795_s20 = scalar_lea.vmem %s504_s5, 16384  ;;  %p7803_p10 = scmp.lt.s32.totalorder %s504_s5, %s504_s5 }
  0x98   : > { %p7796_p5 = scmp.ne.s32.totalorder %s504_s5, %s7795_s20  ;;  %p7804_p6 = scmp.lt.s32.totalorder %s7795_s20, %s7795_s20 }
  0x9a   : > { %p7798_p2 = pnand %p7796_p5, %p9013_p3  ;;  %p7805_p7 = por %p7804_p6, %p7803_p10 }
  0x9c   : > { %p7799_p8 = pneg %p7798_p2 }
  0x9e   : > { %p7806_p0 = pnand %p7805_p7, %p7799_p8 }
  0xa0   : > { %7809 = shalt.err (!%p7806_p0)
}
  0xa1   : > { %s8018_s17 = smov 512   ;;  %s8019_s12 = smov 32  }
  0xa2   : > { %7067 = dma.hbm_to_vmem [thread:$0]  (!%p9014_p4), %s8950_s10, 16384, %s504_s5, [#allocation15], %s8018_s17, %s8018_s17, %s8019_s12  }
  0xa3   : > { %s8020_s11 = smov [#allocation19]   ;;  %s8021_s26 = smov [#allocation20]  }
  0xa4   : > { %s533_s25 = sshll.u32 %s8020_s11, 4  ;;  %s547_s30 = sshll.u32 %s8021_s26, 4  ;;  %s534_s25 = int_to_ptr.vmem [resolvable:$true] %s533_s25  ;;  %s548_s30 = int_to_ptr.vmem [resolvable:$true] %s547_s30 }
  0xa5   : > { %s7821_s8 = scalar_lea.vmem %s534_s25, 32  ;;  %p7829_p13 = scmp.lt.s32.totalorder %s534_s25, %s534_s25 }
  0xa6   : > { %p7822_p11 = scmp.ne.s32.totalorder %s534_s25, %s7821_s8  ;;  %p7830_p5 = scmp.lt.s32.totalorder %s7821_s8, %s7821_s8 }
  0xa8   : > { %p7824_p12 = pnand %p7822_p11, %p9013_p3  ;;  %p7831_p2 = por %p7830_p5, %p7829_p13 }
  0xaa   : > { %p7825_p1 = pneg %p7824_p12 }
  0xac   : > { %p7832_p8 = pnand %p7831_p2, %p7825_p1 }
  0xae   : > { %7835 = shalt.err (!%p7832_p8)
}
  0xaf   : > { %7073 = dma.hbm_to_vmem [thread:$0]  (!%p9014_p4), %s8953_s13, 32, %s534_s25, [#allocation18]  }
  0xb0   : > { %s7847_s5 = scalar_lea.vmem %s548_s30, 32  ;;  %p7855_p0 = scmp.lt.s32.totalorder %s548_s30, %s548_s30 }
  0xb1   : > { %p7848_p10 = scmp.ne.s32.totalorder %s548_s30, %s7847_s5  ;;  %p7856_p11 = scmp.lt.s32.totalorder %s7847_s5, %s7847_s5 }
  0xb3   : > { %p7850_p6 = pnand %p7848_p10, %p9013_p3  ;;  %p7857_p12 = por %p7856_p11, %p7855_p0 }
  0xb5   : > { %p7851_p7 = pneg %p7850_p6 }
  0xb7   : > { %p7858_p9 = pnand %p7857_p12, %p7851_p7 }
  0xb9   : > { %7861 = shalt.err (!%p7858_p9)
}
  0xba   : > { %7076 = dma.hbm_to_vmem [thread:$0]  (!%p9014_p4), %s8955_s15, 32, %s548_s30, [#allocation21]  }
  0xbb   : > { %s9018_s11 = sld [smem:[#allocation37_spill]]  ;;  %s562_s26 = scalar_lea.vmem [#allocation2], %s8247_s16 }
  0xbc   : > { %s570_s8 = sshll.u32 %s562_s26, 4  ;;  %s8347_s14 = scalar_lea.hbm %s8942_s2, %s8250_s29  ;;  %s571_s8 = int_to_ptr.vmem [resolvable:$true] %s570_s8 }
  0xbd   : > { %s9019_s5 = sand.u32 1, %s8002_s23   ;;  %p9020_p3 = scmp.ne.s32.totalorder %s9012_s24, 0 }
  0xbe   : > { %s559_s17 = scalar_lea.sflag [#allocation3], %s9019_s5 }
  0xc1   : > { %s8340_s25 = scalar_lea.hbm %s9018_s11, %s8250_s29  ;;  %s7867_s19 = scalar_lea.hbm %s9018_s11, 512 }
  0xc2   : > { %s7862_s12 = scalar_lea.hbm %s8340_s25, 256  ;;  %p7868_p13 = scmp.lt.s32.totalorder %s8340_s25, %s9018_s11 }
  0xc3   : > { %p7863_p9 = scmp.ne.s32.totalorder %s8340_s25, %s7862_s12  ;;  %p7869_p5 = scmp.lt.s32.totalorder %s7867_s19, %s7862_s12 }
  0xc5   : > { %p7865_p4 = pnand %p7863_p9, %p9020_p3  ;;  %p7870_p2 = por %p7869_p5, %p7868_p13 }
  0xc7   : > { %p7866_p1 = pneg %p7865_p4 }
  0xc9   : > { %p7871_p8 = pnand %p7870_p2, %p7866_p1 }
  0xcb   : > { %7874 = shalt.err (!%p7871_p8)
}
  0xcc   : > { %s7875_s29 = scalar_lea.vmem %s571_s8, 256  ;;  %s8022_s26 = smov [#allocation2]  }
  0xcd   : > { %p7876_p10 = scmp.ne.s32.totalorder %s571_s8, %s7875_s29  ;;  %s7880_s0 = sshll.u32 %s8022_s26, 4  ;;  %s7881_s0 = int_to_ptr.vmem [resolvable:$false] %s7880_s0 }
  0xce   : > { %s7882_s20 = scalar_lea.vmem %s7881_s0, 512  ;;  %p7883_p0 = scmp.lt.s32.totalorder %s571_s8, %s7881_s0 }
  0xcf   : > { %p7878_p6 = pnand %p7876_p10, %p9020_p3  ;;  %p7884_p11 = scmp.lt.s32.totalorder %s7882_s20, %s7875_s29 }
  0xd1   : > { %p7879_p7 = pneg %p7878_p6  ;;  %p7885_p12 = por %p7884_p11, %p7883_p0 }
  0xd3   : > { %p7886_p9 = pnand %p7885_p12, %p7879_p7 }
  0xd5   : > { %7889 = shalt.err (!%p7886_p9)
}
  0xd6   : > { %p9021_p4 = scmp.ne.s32.totalorder %s9010_s3, 0  ;;  %s600_s1 = scalar_lea.vmem [#allocation7], %s8247_s16 }
  0xd7   : > { %s608_s4 = sshll.u32 %s600_s1, 4  ;;  %s7890_s5 = scalar_lea.hbm %s8347_s14, 256  ;;  %s609_s4 = int_to_ptr.vmem [resolvable:$true] %s608_s4 }
  0xd8   : > { %7080 = dma.hbm_to_vmem [thread:$0]  (!%p9021_p4), %s8340_s25, 256, %s571_s8, %s559_s17  }
  0xd9   : > { %p7891_p1 = scmp.ne.s32.totalorder %s8347_s14, %s7890_s5  ;;  %s7895_s9 = scalar_lea.hbm %s8942_s2, 512 }
  0xda   : > { %p7896_p2 = scmp.lt.s32.totalorder %s8347_s14, %s8942_s2  ;;  %p7897_p8 = scmp.lt.s32.totalorder %s7895_s9, %s7890_s5 }
  0xdb   : > { %p7893_p13 = pnand %p7891_p1, %p9020_p3 }
  0xdc   : > { %p7898_p10 = por %p7897_p8, %p7896_p2 }
  0xdd   : > { %p7894_p5 = pneg %p7893_p13 }
  0xdf   : > { %p7899_p6 = pnand %p7898_p10, %p7894_p5 }
  0xe1   : > { %7902 = shalt.err (!%p7899_p6)
}
  0xe2   : > { %s7903_s16 = scalar_lea.vmem %s609_s4, 256  ;;  %s8023_s25 = smov [#allocation7]  }
  0xe3   : > { %p7904_p7 = scmp.ne.s32.totalorder %s609_s4, %s7903_s16  ;;  %s7908_s8 = sshll.u32 %s8023_s25, 4  ;;  %s7909_s8 = int_to_ptr.vmem [resolvable:$false] %s7908_s8 }
  0xe4   : > { %s7910_s17 = scalar_lea.vmem %s7909_s8, 512  ;;  %p7911_p12 = scmp.lt.s32.totalorder %s609_s4, %s7909_s8 }
  0xe5   : > { %p7906_p0 = pnand %p7904_p7, %p9020_p3  ;;  %p7912_p9 = scmp.lt.s32.totalorder %s7910_s17, %s7903_s16 }
  0xe7   : > { %p7907_p11 = pneg %p7906_p0  ;;  %p7913_p1 = por %p7912_p9, %p7911_p12 }
  0xe9   : > { %p7914_p13 = pnand %p7913_p1, %p7907_p11 }
  0xeb   : > { %7917 = shalt.err (!%p7914_p13)
}
  0xec   : > { %7086 = dma.hbm_to_vmem [thread:$0]  (!%p9021_p4), %s8347_s14, 256, %s609_s4, %s8266_s21  }
  0xed   : > { %p9022_p5 = scmp.ne.s32.totalorder %s8996_s28, 0 }
  0xee   : > { %s8388_s24 = sand.u32 (!%p9022_p5), 1, %s7998_s22   ;;  %p9023_p3 = scmp.ne.s32.totalorder (!%p9022_p5), %s9005_s18, 0 }
  0xef   : > { %617 = sbr.rel (%p9022_p5) target bundleno = 2891 (0xb4b), region = 84  ;;  %s8391_s26 = sshll.u32 (!%p9022_p5), %s8388_s24, 4 }
  0xf0   : > { %s620_s0 = scalar_lea.sflag (!%p9022_p5), [#allocation3], %s8388_s24  ;;  %s623_s20 = scalar_lea.vmem (!%p9022_p5), [#allocation2], %s8391_s26 }
  0xf4   : > { %7961 = dma.done.wait (%p9023_p3), %s620_s0, 256  }
  0xf5   : > { %7963 = vsyncadd (%p9023_p3), %s620_s0, 4294967040  ;;  %s628_s3 = sand.u32 1, %s8138_s27   ;;  %s632_s28 = scalar_lea.vmem [#allocation5], %s8391_s26 }
  0xf6   : > { %s629_s21 = scalar_lea.sflag [#allocation6], %s628_s3 }
  0xf7   : > { %7965 = dma.done.wait (%p9023_p3), %s629_s21, 512  }
  0xf8   : > { %7967 = vsyncadd (%p9023_p3), %s629_s21, 4294966784  ;;  %s8406_s14 = scalar_lea.vmem [#allocation7], %s8391_s26  ;;  %p9024_p4 = scmp.eq.s32.totalorder %s8138_s27, 0 }
  0xfa   : > { %7969 = dma.done.wait (%p9024_p4), [#allocation9], 8192   ;;  %p9025_p2 = pmov %p9024_p4 }
  0xfc   : > { %7971 = vsyncadd (%p9025_p2), [#allocation9], 4294959104  ;;  %p9026_p8 = pmov %p9025_p2 }
  0xfd   : > { %p9027_p10 = pmov %p9025_p2 }
  0xfe   : > { %7973 = dma.done.wait (%p9026_p8), [#allocation12], 8192  }
  0xff   : > { %7975 = vsyncadd (%p9027_p10), [#allocation12], 4294959104  ;;  %p9028_p6 = pmov %p9025_p2 }
 0x100   : > { %p9029_p7 = pmov %p9025_p2 }
 0x101   : > { %7977 = dma.done.wait (%p9028_p6), [#allocation15], 16416  }
 0x102   : > { %7979 = vsyncadd (%p9029_p7), [#allocation15], 4294950880  ;;  %p9030_p0 = pmov %p9025_p2 }
 0x104   : > { %7981 = dma.done.wait (%p9030_p0), [#allocation18], 16416   ;;  %p9031_p11 = pmov %p9030_p0 }
 0x105   : > { %p9032_p12 = pmov %p9030_p0 }
 0x106   : > { %7983 = vsyncadd (%p9031_p11), [#allocation18], 4294950880 }
 0x107   : > { %7985 = dma.done.wait (%p9032_p12), [#allocation21], 32   ;;  %p9033_p9 = pmov %p9030_p0 }
 0x108   : > { %v7178_v0 = vld [vmem:[#allocation10 + $0x74] ss:$8 sps:$4 sm:$0xff]   ;;  %v7180_v1 = vld [vmem:[#allocation10 + $0x70] ss:$8 sps:$4 sm:$0xff]   ;;  %v7184_v4 = vld [vmem:[#allocation10 + $0x64] ss:$8 sps:$4 sm:$0xff]  }
 0x109   : > { %7987 = vsyncadd (%p9033_p9), [#allocation21], 4294967264  ;;  %1171 = vmatprep.subr.bf16.mxu1 %v7178_v0  ;;  %v7181_v2 = vld [vmem:[#allocation8 + $0x74] ss:$8 sps:$4 sm:$0xff]   ;;  %v7183_v3 = vld [vmem:[#allocation8 + $0x70] ss:$8 sps:$4 sm:$0xff]  }
 0x10a   : > { %1172 = vmatpush1.bf16.msra.mxu1 %v7180_v1  ;;  %v7186_v5 = vld [vmem:[#allocation10 + $0x60] ss:$8 sps:$4 sm:$0xff]   ;;  %936 = vmatprep.subr.bf16.mxu0 %v7181_v2  ;;  %v7187_v6 = vld [vmem:[#allocation8 + $0x64] ss:$8 sps:$4 sm:$0xff]   ;;  %v7190_v8 = vld [vmem:[#allocation10 + $0x54] ss:$8 sps:$4 sm:$0xff]  }
 0x10b   : > { %937 = vmatpush1.bf16.msra.mxu0 %v7183_v3  ;;  %1173 = vmatprep.subr.bf16.mxu1 %v7184_v4  ;;  %v7189_v7 = vld [vmem:[#allocation8 + $0x60] ss:$8 sps:$4 sm:$0xff]   ;;  %v7192_v9 = vld [vmem:[#allocation10 + $0x50] ss:$8 sps:$4 sm:$0xff]   ;;  %v7193_v10 = vld [vmem:[#allocation8 + $0x54] ss:$8 sps:$4 sm:$0xff]  }
 0x10c   : > { %938 = vmatprep.subr.bf16.mxu0 %v7187_v6  ;;  %v7196_v11 = vld [vmem:[#allocation10 + $0x44] ss:$8 sps:$4 sm:$0xff]   ;;  %v7195_v12 = vld [vmem:[#allocation8 + $0x50] ss:$8 sps:$4 sm:$0xff]   ;;  %v7198_v14 = vld [vmem:[#allocation10 + $0x40] ss:$8 sps:$4 sm:$0xff]  }
 0x10d   : > { %v7199_v13 = vld [vmem:[#allocation8 + $0x44] ss:$8 sps:$4 sm:$0xff]   ;;  %v7202_v15 = vld [vmem:[#allocation10 + $0x34] ss:$8 sps:$4 sm:$0xff]   ;;  %v7201_v16 = vld [vmem:[#allocation8 + $0x40] ss:$8 sps:$4 sm:$0xff]  }
 0x10e   : > { %1174 = vmatpush1.bf16.msra.mxu1 %v7186_v5  ;;  %v7205_v17 = vld [vmem:[#allocation8 + $0x34] ss:$8 sps:$4 sm:$0xff]   ;;  %v7204_v18 = vld [vmem:[#allocation10 + $0x30] ss:$8 sps:$4 sm:$0xff]   ;;  %v7208_v19 = vld [vmem:[#allocation10 + $0x24] ss:$8 sps:$4 sm:$0xff]  }
 0x10f   : > { %1175 = vmatprep.subr.bf16.mxu1 %v7190_v8  ;;  %939 = vmatpush1.bf16.msra.mxu0 %v7189_v7  ;;  %v7207_v20 = vld [vmem:[#allocation8 + $0x30] ss:$8 sps:$4 sm:$0xff]   ;;  %v7211_v21 = vld [vmem:[#allocation8 + $0x24] ss:$8 sps:$4 sm:$0xff]   ;;  %v7210_v22 = vld [vmem:[#allocation10 + $0x20] ss:$8 sps:$4 sm:$0xff]  }
 0x110   : > { %940 = vmatprep.subr.bf16.mxu0 %v7193_v10  ;;  %v7214_v23 = vld [vmem:[#allocation10 + $0x14] ss:$8 sps:$4 sm:$0xff]   ;;  %v7213_v24 = vld [vmem:[#allocation8 + $0x20] ss:$8 sps:$4 sm:$0xff]   ;;  %v7216_v26 = vld [vmem:[#allocation10 + $0x10] ss:$8 sps:$4 sm:$0xff]  }
 0x111   : > { %v7217_v25 = vld [vmem:[#allocation8 + $0x14] ss:$8 sps:$4 sm:$0xff]   ;;  %v7220_v27 = vld [vmem:[#allocation10 + $0x4] ss:$8 sps:$4 sm:$0xff]   ;;  %v7219_v28 = vld [vmem:[#allocation8 + $0x10] ss:$8 sps:$4 sm:$0xff]  }
 0x112   : > { %1176 = vmatpush1.bf16.msra.mxu1 %v7192_v9  ;;  %v7223_v29 = vld [vmem:[#allocation8 + $0x4] ss:$8 sps:$4 sm:$0xff]   ;;  %v7222_v30 = vld [vmem:[#allocation10] ss:$8 sps:$4 sm:$0xff]   ;;  %v7226_v31 = vld [vmem:[#allocation10 + $0xf4] ss:$8 sps:$4 sm:$0xff]  }
 0x113   : > { %1177 = vmatprep.subr.bf16.mxu1 %v7196_v11  ;;  %941 = vmatpush1.bf16.msra.mxu0 %v7195_v12  ;;  %v7225_v32 = vld [vmem:[#allocation8] ss:$8 sps:$4 sm:$0xff]   ;;  %v7229_v33 = vld [vmem:[#allocation8 + $0xf4] ss:$8 sps:$4 sm:$0xff]   ;;  %v7228_v34 = vld [vmem:[#allocation10 + $0xf0] ss:$8 sps:$4 sm:$0xff]  }
 0x114   : > { %942 = vmatprep.subr.bf16.mxu0 %v7199_v13  ;;  %v7232_v35 = vld [vmem:[#allocation10 + $0xe4] ss:$8 sps:$4 sm:$0xff]   ;;  %v7231_v36 = vld [vmem:[#allocation8 + $0xf0] ss:$8 sps:$4 sm:$0xff]   ;;  %v7234_v38 = vld [vmem:[#allocation10 + $0xe0] ss:$8 sps:$4 sm:$0xff]  }
 0x115   : > { %v7235_v37 = vld [vmem:[#allocation8 + $0xe4] ss:$8 sps:$4 sm:$0xff]   ;;  %v7238_v39 = vld [vmem:[#allocation10 + $0xd4] ss:$8 sps:$4 sm:$0xff]   ;;  %v7237_v40 = vld [vmem:[#allocation8 + $0xe0] ss:$8 sps:$4 sm:$0xff]  }
 0x116   : > { %1178 = vmatpush1.bf16.msra.mxu1 %v7198_v14  ;;  %v7241_v41 = vld [vmem:[#allocation8 + $0xd4] ss:$8 sps:$4 sm:$0xff]   ;;  %v7240_v42 = vld [vmem:[#allocation10 + $0xd0] ss:$8 sps:$4 sm:$0xff]   ;;  %v7244_v43 = vld [vmem:[#allocation10 + $0xc4] ss:$8 sps:$4 sm:$0xff]  }
 0x117   : > { %1179 = vmatprep.subr.bf16.mxu1 %v7202_v15  ;;  %943 = vmatpush1.bf16.msra.mxu0 %v7201_v16  ;;  %v7243_v44 = vld [vmem:[#allocation8 + $0xd0] ss:$8 sps:$4 sm:$0xff]   ;;  %v7246_v45 = vld [vmem:[#allocation10 + $0xc0] ss:$8 sps:$4 sm:$0xff]   ;;  %v7247_v46 = vld [vmem:[#allocation8 + $0xc4] ss:$8 sps:$4 sm:$0xff]  }
 0x118   : > { %944 = vmatprep.subr.bf16.mxu0 %v7205_v17  ;;  %v739_v47 = vld [vmem:[%s632_s28 + $0x8] sm:$0xff]  ;;  %v738_v3 = vld [vmem:[%s632_s28] sm:$0xff]  ;;  %s8024_s18 = smov 32   ;;  %s8025_s1 = smov 96   ;;  %vm8028_vm0 = vmmov 0   ;;  %vm2323_vm1 = vcmask 261120  }
 0x119   : > { %v7249_v48 = vld [vmem:[#allocation8 + $0xc0] ss:$8 sps:$4 sm:$0xff]   ;;  %v7250_v49 = vld [vmem:[#allocation10 + $0xb4] ss:$8 sps:$4 sm:$0xff]   ;;  %v978_v50 = vpack.c.bf16 %v739_v47, %v739_v47  ;;  %v7252_v54 = vld [vmem:[#allocation10 + $0xb0] ss:$8 sps:$4 sm:$0xff]   ;;  %v977_v6 = vpack.c.bf16 %v738_v3, %v738_v3 }
 0x11a   : > { %1180 = vmatpush1.bf16.msra.mxu1 %v7204_v18  ;;  %v737_v51 = vld [vmem:[%s8406_s14 + $0x8] sm:$0xff]  ;;  %v736_v5 = vld [vmem:[%s8406_s14] sm:$0xff]  ;;  %s8026_s4 = smov 64   ;;  %vm2940_vm2 = vcmask 64512   ;;  %vm3910_vm3 = vcmask 523264   ;;  %vm3912_vm4 = vcmask 785408  }
 0x11b   : > { %1181 = vmatprep.subr.bf16.mxu1 %v7208_v19  ;;  %945 = vmatpush1.bf16.msra.mxu0 %v7207_v20  ;;  %v7253_v52 = vld [vmem:[#allocation8 + $0xb4] ss:$8 sps:$4 sm:$0xff]   ;;  %v743_v53 = vpack.c.bf16 %v737_v51, %v737_v51  ;;  %v7256_v55 = vld [vmem:[#allocation10 + $0xa4] ss:$8 sps:$4 sm:$0xff]   ;;  %v7255_v56 = vld [vmem:[#allocation8 + $0xb0] ss:$8 sps:$4 sm:$0xff]   ;;  %v742_v7 = vpack.c.bf16 %v736_v5, %v736_v5 }
 0x11c   : > { %946 = vmatprep.subr.bf16.mxu0 %v7211_v21  ;;  %1203 = vmatprep.mubr.bf16.mxu1 %v978_v50  ;;  %v7259_v57 = vld [vmem:[#allocation8 + $0xa4] ss:$8 sps:$4 sm:$0xff]   ;;  %v7258_v58 = vld [vmem:[#allocation10 + $0xa0] ss:$8 sps:$4 sm:$0xff]   ;;  %v7262_v59 = vld [vmem:[#allocation10 + $0x94] ss:$8 sps:$4 sm:$0xff]  }
 0x11d   : > { %968 = vmatprep.mubr.bf16.mxu0 %v743_v53  ;;  %v7261_v60 = vld [vmem:[#allocation8 + $0xa0] ss:$8 sps:$4 sm:$0xff]   ;;  %v7265_v61 = vld [vmem:[#allocation8 + $0x94] ss:$8 sps:$4 sm:$0xff]   ;;  %v7264_v62 = vld [vmem:[#allocation10 + $0x90] ss:$8 sps:$4 sm:$0xff]  }
 0x11e   : > { %1182 = vmatpush1.bf16.msra.mxu1 %v7210_v22  ;;  %v7268_v63 = vld [vmem:[#allocation10 + $0x84] ss:$8 sps:$4 sm:$0xff]   ;;  %v7267_v0 = vld [vmem:[#allocation8 + $0x90] ss:$8 sps:$4 sm:$0xff]   ;;  %v7270_v2 = vld [vmem:[#allocation10 + $0x80] ss:$8 sps:$4 sm:$0xff]  }
 0x11f   : > { %1183 = vmatprep.subr.bf16.mxu1 %v7214_v23  ;;  %947 = vmatpush1.bf16.msra.mxu0 %v7213_v24  ;;  %v7271_v1 = vld [vmem:[#allocation8 + $0x84] ss:$8 sps:$4 sm:$0xff]   ;;  %v7273_v4 = vld [vmem:[#allocation8 + $0x80] ss:$8 sps:$4 sm:$0xff]   ;;  %v7276_v16 = vld [vmem:[#allocation11 + $0x74] ss:$8 sps:$4 sm:$0xff]  }
 0x120   : > { %948 = vmatprep.subr.bf16.mxu0 %v7217_v25  ;;  %v7274_v17 = vld [vmem:[#allocation11 + $0x70] ss:$8 sps:$4 sm:$0xff]   ;;  %v7279_v18 = vld [vmem:[#allocation11 + $0x64] ss:$8 sps:$4 sm:$0xff]   ;;  %v7277_v19 = vld [vmem:[#allocation11 + $0x60] ss:$8 sps:$4 sm:$0xff]  }
 0x121   : > { %v8027_v20 = vmov 0.0   ;;  %v7280_v21 = vld [vmem:[#allocation11 + $0x50] ss:$8 sps:$4 sm:$0xff]   ;;  %v7282_v22 = vld [vmem:[#allocation11 + $0x54] ss:$8 sps:$4 sm:$0xff]   ;;  %s9034_s19 = sld [smem:[#allocation42_spill]] }
 0x122   : > { %1184 = vmatpush1.bf16.msra.mxu1 %v7216_v26  ;;  %v7283_v23 = vld [vmem:[#allocation11 + $0x40] ss:$8 sps:$4 sm:$0xff]   ;;  %v7285_v24 = vld [vmem:[#allocation11 + $0x44] ss:$8 sps:$4 sm:$0xff]   ;;  %v7286_v25 = vld [vmem:[#allocation11 + $0x30] ss:$8 sps:$4 sm:$0xff]  }
 0x123   : > { %1185 = vmatprep.subr.bf16.mxu1 %v7220_v27  ;;  %949 = vmatpush1.bf16.msra.mxu0 %v7219_v28  ;;  %v7288_v26 = vld [vmem:[#allocation11 + $0x34] ss:$8 sps:$4 sm:$0xff]   ;;  %v7289_v27 = vld [vmem:[#allocation11 + $0x20] ss:$8 sps:$4 sm:$0xff]   ;;  %v7291_v28 = vld [vmem:[#allocation11 + $0x24] ss:$8 sps:$4 sm:$0xff]  }
 0x124   : > { %950 = vmatprep.subr.bf16.mxu0 %v7223_v29  ;;  %v7292_v29 = vld [vmem:[#allocation11 + $0x10] ss:$8 sps:$4 sm:$0xff]   ;;  %v7318_v47 = vld [vmem:[#allocation11 + $0x94] ss:$8 sps:$4 sm:$0xff]   ;;  %v7319_v50 = vld [vmem:[#allocation11 + $0x80] ss:$8 sps:$4 sm:$0xff]  }
 0x125   : > { %v740_v51 = vld [vmem:[%s623_s20] sm:$0xff]  ;;  %v8029_v53 = vmov 1983009808   ;;  %s9035_s25 = sld [smem:[#allocation44_spill]]  ;;  %s6892_s3 = sshll.u32 %s8138_s27, 8 }
 0x126   : > { %1186 = vmatpush1.bf16.msra.mxu1 %v7222_v30  ;;  %v7294_v30 = vld [vmem:[#allocation11 + $0x14] ss:$8 sps:$4 sm:$0xff]   ;;  %s9036_s0 = sld [smem:[#allocation46_spill]]  ;;  %s735_s21 = scalar_lea.vmem [#allocation22], %s8391_s26 }
 0x127   : > { %1187 = vmatprep.subr.bf16.mxu1 %v7226_v31  ;;  %951 = vmatpush1.bf16.msra.mxu0 %v7225_v32  ;;  %v7295_v31 = vld [vmem:[#allocation11] ss:$8 sps:$4 sm:$0xff]   ;;  %v7297_v32 = vld [vmem:[#allocation11 + $0x4] ss:$8 sps:$4 sm:$0xff]   ;;  %s6210_s28 = sshll.u32 %s735_s21, 4  ;;  %s6196_s5 = scalar_lea.sflag [#allocation4], %s8388_s24  ;;  %s6211_s28 = int_to_ptr.vmem [resolvable:$true] %s6210_s28 }
 0x128   : > { %952 = vmatprep.subr.bf16.mxu0 %v7229_v33  ;;  %v7298_v33 = vld [vmem:[#allocation11 + $0xf0] ss:$8 sps:$4 sm:$0xff]   ;;  %s7918_s12 = scalar_lea.vmem %s6211_s28, 256  ;;  %s8031_s27 = smov [#allocation22]  }
 0x129   : > { %p7919_p1 = scmp.ne.s32.totalorder %s6211_s28, %s7918_s12  ;;  %s7922_s26 = sshll.u32 %s8031_s27, 4  ;;  %s7923_s26 = int_to_ptr.vmem [resolvable:$false] %s7922_s26 }
 0x12a   : > { %1188 = vmatpush2.bf16.msra.mxu1 %v7228_v34  ;;  %v7300_v34 = vld [vmem:[#allocation11 + $0xf4] ss:$8 sps:$4 sm:$0xff]   ;;  %s7924_s30 = scalar_lea.vmem %s7923_s26, 512  ;;  %p7925_p4 = scmp.lt.s32.totalorder %s6211_s28, %s7923_s26 }
 0x12b   : > { %1189 = vmatprep.subr.bf16.mxu1 %v7232_v35  ;;  %953 = vmatpush2.bf16.msra.mxu0 %v7231_v36  ;;  %v7301_v35 = vld [vmem:[#allocation11 + $0xe0] ss:$8 sps:$4 sm:$0xff]   ;;  %v7303_v36 = vld [vmem:[#allocation11 + $0xe4] ss:$8 sps:$4 sm:$0xff]   ;;  %p7926_p2 = scmp.lt.s32.totalorder %s7924_s30, %s7918_s12 }
 0x12c   : > { %954 = vmatprep.subr.bf16.mxu0 %v7235_v37  ;;  %v7304_v37 = vld [vmem:[#allocation11 + $0xd0] ss:$8 sps:$4 sm:$0xff]  }
 0x12d   : > { %p7927_p8 = por %p7926_p2, %p7925_p4 }
 0x12e   : > { %1190 = vmatpush2.bf16.msra.mxu1 %v7234_v38  ;;  %v7306_v38 = vld [vmem:[#allocation11 + $0xd4] ss:$8 sps:$4 sm:$0xff]  }
 0x12f   : > { %1191 = vmatprep.subr.bf16.mxu1 %v7238_v39  ;;  %955 = vmatpush2.bf16.msra.mxu0 %v7237_v40  ;;  %v7309_v39 = vld [vmem:[#allocation11 + $0xc4] ss:$8 sps:$4 sm:$0xff]   ;;  %v7307_v40 = vld [vmem:[#allocation11 + $0xc0] ss:$8 sps:$4 sm:$0xff]  }
 0x130   : > { %956 = vmatprep.subr.bf16.mxu0 %v7241_v41  ;;  %v741_v41 = vld [vmem:[%s623_s20 + $0x8] sm:$0xff]  ;;  %s9037_s20 = sld [smem:[#allocation35_spill]] }
 0x132   : > { %1192 = vmatpush2.bf16.msra.mxu1 %v7240_v42  ;;  %v7312_v42 = vld [vmem:[#allocation11 + $0xb4] ss:$8 sps:$4 sm:$0xff]  }
 0x133   : > { %1193 = vmatprep.subr.bf16.mxu1 %v7244_v43  ;;  %957 = vmatpush2.bf16.msra.mxu0 %v7243_v44  ;;  %v1213_v43 = vpack.c.bf16 %v741_v41, %v741_v41  ;;  %v7310_v44 = vld [vmem:[#allocation11 + $0xb0] ss:$8 sps:$4 sm:$0xff]  }
 0x134   : > { %958 = vmatprep.subr.bf16.mxu0 %v7247_v46  ;;  %v7313_v46 = vld [vmem:[#allocation11 + $0xa0] ss:$8 sps:$4 sm:$0xff]  }
 0x136   : > { %1194 = vmatpush2.bf16.msra.mxu1 %v7246_v45  ;;  %v7315_v45 = vld [vmem:[#allocation11 + $0xa4] ss:$8 sps:$4 sm:$0xff]   ;;  %p9039_p13 = scmp.ne.s32.totalorder %s9037_s20, 0 }
 0x137   : > { %1195 = vmatprep.subr.bf16.mxu1 %v7250_v49  ;;  %959 = vmatpush2.bf16.msra.mxu0 %v7249_v48  ;;  %v7316_v48 = vld [vmem:[#allocation11 + $0x90] ss:$8 sps:$4 sm:$0xff]   ;;  %v7321_v49 = vld [vmem:[#allocation11 + $0x84] ss:$8 sps:$4 sm:$0xff]  }
 0x138   : > { %960 = vmatprep.subr.bf16.mxu0 %v7253_v52  ;;  %v1212_v52 = vpack.c.bf16 %v740_v51, %v740_v51  ;;  %p7920_p5 = pnand %p7919_p1, %p9039_p13 }
 0x13a   : > { %1196 = vmatpush2.bf16.msra.mxu1 %v7252_v54  ;;  %v1470_v54 = vunpack.c.l.s4 %v8029_v53  ;;  %p7921_p3 = pneg %p7920_p5 }
 0x13b   : > { %1197 = vmatprep.subr.bf16.mxu1 %v7256_v55  ;;  %961 = vmatpush2.bf16.msra.mxu0 %v7255_v56  ;;  %v1472_v55 = vlaneseq }
 0x13c   : > { %962 = vmatprep.subr.bf16.mxu0 %v7259_v57  ;;  %v1471_v56 = vunpack.c.0.s8 %v1470_v54  ;;  %p7928_p10 = pnand %p7927_p8, %p7921_p3 }
 0x13d   : > { %v8473_v57 = vshrl.u32 %v1472_v55, 7 }
 0x13e   : > { %1198 = vmatpush2.bf16.msra.mxu1 %v7258_v58 }
 0x13f   : > { %1199 = vmatprep.subr.bf16.mxu1 %v7262_v59  ;;  %963 = vmatpush2.bf16.msra.mxu0 %v7261_v60  ;;  %v8030_v60 = vmov 1934713408  }
 0x140   : > { %964 = vmatprep.subr.bf16.mxu0 %v7265_v61  ;;  %v1534_v61 = vunpack.c.l.s4 %v8030_v60 }
 0x142   : > { %1200 = vmatpush2.bf16.msra.mxu1 %v7264_v62  ;;  %v8476_v62 = vsub.s32 %v1471_v56, %v8473_v57 }
 0x143   : > { %1201 = vmatprep.subr.bf16.mxu1 %v7268_v63  ;;  %965 = vmatpush2.bf16.msra.mxu0 %v7267_v0 }
 0x144   : > { %966 = vmatprep.subr.bf16.mxu0 %v7271_v1  ;;  %v1535_v1 = vunpack.c.0.s8 %v1534_v61 }
 0x146   : > { %1202 = vmatpush2.bf16.msra.mxu1 %v7270_v2 }
 0x147   : > { %967 = vmatpush2.bf16.msra.mxu0 %v7273_v4  ;;  %6925 = vmatprep.subr.mxu1 %v8027_v20 }
 0x148   : > { %1406 = vmatprep.subr.bf16.mxu0 %v7276_v16 }
 0x149   : > { %1204 = vmatmul.mubr.bf16.vlgmr.msra.gmra.mxu1 %v977_v6 }
 0x14a   : > { %969 = vmatmul.mubr.bf16.vlgmr.msra.gmra.mxu0 %v742_v7  ;;  %6927 = vmatprep.mubr.msk.f32.mxu1 %vm8028_vm0, %v8027_v20 }
 0x14b   : > { %1407 = vmatpush1.bf16.msra.mxu0 %v7274_v17  ;;  %1438 = vmatprep.mubr.bf16.mxu0 %v1213_v43 }
 0x14c   : > { %1408 = vmatprep.subr.bf16.mxu0 %v7279_v18 }
 0x14f   : > { %1409 = vmatpush1.bf16.msra.mxu0 %v7277_v19 }
 0x150   : > { %1410 = vmatprep.subr.bf16.mxu0 %v7282_v22 }
 0x153   : > { %1411 = vmatpush1.bf16.msra.mxu0 %v7280_v21 }
 0x154   : > { %1412 = vmatprep.subr.bf16.mxu0 %v7285_v24 }
 0x157   : > { %1413 = vmatpush1.bf16.msra.mxu0 %v7283_v23 }
 0x158   : > { %1414 = vmatprep.subr.bf16.mxu0 %v7288_v26 }
 0x15b   : > { %1415 = vmatpush1.bf16.msra.mxu0 %v7286_v25 }
 0x15c   : > { %1416 = vmatprep.subr.bf16.mxu0 %v7291_v28 }
 0x15f   : > { %1417 = vmatpush1.bf16.msra.mxu0 %v7289_v27 }
 0x160   : > { %1418 = vmatprep.subr.bf16.mxu0 %v7294_v30 }
 0x163   : > { %1419 = vmatpush1.bf16.msra.mxu0 %v7292_v29 }
 0x164   : > { %1420 = vmatprep.subr.bf16.mxu0 %v7297_v32 }
 0x167   : > { %1421 = vmatpush1.bf16.msra.mxu0 %v7295_v31 }
 0x168   : > { %1422 = vmatprep.subr.bf16.mxu0 %v7300_v34 }
 0x16b   : > { %1423 = vmatpush2.bf16.msra.mxu0 %v7298_v33 }
 0x16c   : > { %1424 = vmatprep.subr.bf16.mxu0 %v7303_v36 }
 0x16f   : > { %1425 = vmatpush2.bf16.msra.mxu0 %v7301_v35 }
 0x170   : > { %1426 = vmatprep.subr.bf16.mxu0 %v7306_v38 }
 0x173   : > { %1427 = vmatpush2.bf16.msra.mxu0 %v7304_v37 }
 0x174   : > { %1428 = vmatprep.subr.bf16.mxu0 %v7309_v39 }
 0x177   : > { %1429 = vmatpush2.bf16.msra.mxu0 %v7307_v40 }
 0x178   : > { %1430 = vmatprep.subr.bf16.mxu0 %v7312_v42 }
 0x17b   : > { %1431 = vmatpush2.bf16.msra.mxu0 %v7310_v44 }
 0x17c   : > { %1432 = vmatprep.subr.bf16.mxu0 %v7315_v45 }
 0x17f   : > { %1433 = vmatpush2.bf16.msra.mxu0 %v7313_v46 }
 0x180   : > { %1434 = vmatprep.subr.bf16.mxu0 %v7318_v47 }
 0x183   : > { %1435 = vmatpush2.bf16.msra.mxu0 %v7316_v48 }
 0x184   : > { %1436 = vmatprep.subr.bf16.mxu0 %v7321_v49 }
 0x187   : > { %1437 = vmatpush2.bf16.msra.mxu0 %v7319_v50 }
 0x18a   : > { %1439 = vmatmul.mubr.bf16.vlgmr.msra.gmra.mxu0 %v1212_v52 }
 0x209   : > { %v8434_v8 = vpop.f32.mrf.mxu1 }
 0x20a   : > { %1746 = vrot.lane.b32.xlu1 %v8434_v8, %s8024_s18  ;;  %1740 = vrot.lane.b32.xlu0 %v8434_v8, %s8025_s1  ;;  %v8440_v9 = vpop.f32.mrf.mxu0 }
 0x20b   : > { %v8442_v10 = vpop.f32.mrf.mxu1 }
 0x20c   : > { %v8444_v11 = vpop.f32.mrf.mxu0 }
 0x20d   : > { %v1209_v12 = vpop.f32.mrf.mxu1 }
 0x20e   : > { %1743 = vrot.lane.b32.xlu0 %v8434_v8, %s8026_s4  ;;  %1448 = vrot.lane.b32.xlu1 %v8440_v9, %s8025_s1  ;;  %v974_v13 = vpop.f32.mrf.mxu0 }
 0x20f   : > { %v1210_v14 = vpop.f32.mrf.mxu1 }
 0x210   : > { %v975_v15 = vpop.f32.mrf.mxu0  ;;  %v8485_v14 = vsub.s32 %v1535_v1, %v8473_v57 }
 0x212   : > { %1451 = vrot.lane.b32.xlu0 %v8440_v9, %s8026_s4  ;;  %1454 = vrot.lane.b32.xlu1 %v8440_v9, %s8024_s18 }
 0x216   : > { %1750 = vrot.lane.b32.xlu0 %v8442_v10, %s8025_s1  ;;  %1753 = vrot.lane.b32.xlu1 %v8442_v10, %s8026_s4 }
 0x21a   : > { %1756 = vrot.lane.b32.xlu0 %v8442_v10, %s8024_s18  ;;  %1458 = vrot.lane.b32.xlu1 %v8444_v11, %s8025_s1 }
 0x21e   : > { %1461 = vrot.lane.b32.xlu0 %v8444_v11, %s8026_s4  ;;  %1464 = vrot.lane.b32.xlu1 %v8444_v11, %s8024_s18 }
 0x27c   : > { %v1747_v58 = vpop.permute.xlu1 %1746  ;;  %v1741_v59 = vpop.permute.xlu0 %1740 }
 0x27d   : > { %v1775_v63 = vcombine.low %v1741_v59, %v1747_v58  ;;  %v1776_v0 = vcombine.high %v1741_v59, %v1747_v58 }
 0x27f   : > { %v1783_v6 = vrot.slane %v1775_v63, %v8476_v62  ;;  %v1790_v7 = vrot.slane %v1776_v0, %v8476_v62 }
 0x280   : > { %v1744_v2 = vpop.permute.xlu0 %1743  ;;  %v1449_v3 = vpop.permute.xlu1 %1448 }
 0x281   : > { %v1759_v4 = vcombine.low %v8434_v8, %v1744_v2  ;;  %v1760_v5 = vcombine.high %v8434_v8, %v1744_v2 }
 0x283   : > { %v1767_v12 = vrot.slane %v1759_v4, %v8476_v62  ;;  %v1774_v13 = vrot.slane %v1760_v5, %v8476_v62 }
 0x284   : > { %v1452_v15 = vpop.permute.xlu0 %1451  ;;  %v1455_v16 = vpop.permute.xlu1 %1454 }
 0x285   : > { %v1823_v17 = vcombine.low %v1767_v12, %v1783_v6  ;;  %v1824_v18 = vcombine.high %v1767_v12, %v1783_v6  ;;  %v1839_v19 = vcombine.low %v1774_v13, %v1790_v7  ;;  %v1840_v21 = vcombine.high %v1774_v13, %v1790_v7 }
 0x286   : > { %v1467_v22 = vcombine.low %v8440_v9, %v1452_v15  ;;  %v1468_v8 = vcombine.high %v8440_v9, %v1452_v15  ;;  %v1483_v23 = vcombine.low %v1449_v3, %v1455_v16  ;;  %v1484_v24 = vcombine.high %v1449_v3, %v1455_v16 }
 0x287   : > { %v1831_v31 = vrot.slane %v1823_v17, %v8485_v14  ;;  %v1838_v32 = vrot.slane %v1824_v18, %v8485_v14  ;;  %v1847_v33 = vrot.slane %v1839_v19, %v8485_v14  ;;  %v1854_v9 = vrot.slane %v1840_v21, %v8485_v14 }
 0x288   : > { %v1475_v25 = vrot.slane %v1467_v22, %v8476_v62  ;;  %v1482_v26 = vrot.slane %v1468_v8, %v8476_v62  ;;  %v1491_v27 = vrot.slane %v1483_v23, %v8476_v62  ;;  %v1498_v28 = vrot.slane %v1484_v24, %v8476_v62  ;;  %v1751_v29 = vpop.permute.xlu0 %1750  ;;  %v1754_v30 = vpop.permute.xlu1 %1753 }
 0x289   : > { %v6548_v44 = vcombine.low %v1831_v31, %v1838_v32  ;;  %v6550_v45 = vcombine.high %v1831_v31, %v1838_v32  ;;  %v6552_v46 = vcombine.low %v1847_v33, %v1854_v9  ;;  %v6554_v47 = vcombine.high %v1847_v33, %v1854_v9 }
 0x28a   : > { %v1531_v34 = vcombine.low %v1475_v25, %v1491_v27  ;;  %v1532_v35 = vcombine.high %v1475_v25, %v1491_v27  ;;  %v1547_v36 = vcombine.low %v1482_v26, %v1498_v28  ;;  %v1548_v37 = vcombine.high %v1482_v26, %v1498_v28 }
 0x28b   : > { %v1791_v52 = vcombine.low %v8442_v10, %v1754_v30  ;;  %v1792_v53 = vcombine.high %v8442_v10, %v1754_v30  ;;  %v8504_v56 = vrot.slane %v6548_v44, %v8476_v62  ;;  %v8507_v58 = vrot.slane %v6550_v45, %v8476_v62 }
 0x28c   : > { %v1539_v38 = vrot.slane %v1531_v34, %v8485_v14  ;;  %v1546_v39 = vrot.slane %v1532_v35, %v8485_v14  ;;  %v1555_v40 = vrot.slane %v1547_v36, %v8485_v14  ;;  %v1562_v41 = vrot.slane %v1548_v37, %v8485_v14  ;;  %v1757_v42 = vpop.permute.xlu0 %1756  ;;  %v1459_v43 = vpop.permute.xlu1 %1458 }
 0x28d   : > { %v1807_v54 = vcombine.low %v1751_v29, %v1757_v42  ;;  %v1808_v55 = vcombine.high %v1751_v29, %v1757_v42  ;;  %v8512_v0 = vrot.slane %v6552_v46, %v8476_v62  ;;  %v8515_v1 = vrot.slane %v6554_v47, %v8476_v62 }
 0x28e   : > { %v6540_v48 = vcombine.low %v1539_v38, %v1546_v39  ;;  %v6542_v49 = vcombine.high %v1539_v38, %v1546_v39  ;;  %v6544_v50 = vcombine.low %v1555_v40, %v1562_v41  ;;  %v6546_v51 = vcombine.high %v1555_v40, %v1562_v41 }
 0x28f   : > { %v1815_v59 = vrot.slane %v1807_v54, %v8476_v62  ;;  %v1822_v60 = vrot.slane %v1808_v55, %v8476_v62  ;;  %v1799_v5 = vrot.slane %v1791_v52, %v8476_v62  ;;  %v1806_v6 = vrot.slane %v1792_v53, %v8476_v62 }
 0x290   : > { %v1462_v61 = vpop.permute.xlu0 %1461  ;;  %v1465_v63 = vpop.permute.xlu1 %1464  ;;  %v8518_v10 = vrot.slane %v6540_v48, %v8476_v62  ;;  %v8521_v2 = vrot.slane %v6542_v49, %v8476_v62  ;;  %v8524_v3 = vrot.slane %v6544_v50, %v8476_v62  ;;  %v8527_v4 = vrot.slane %v6546_v51, %v8476_v62 }
 0x291   : > { %v1499_v7 = vcombine.low %v8444_v11, %v1462_v61  ;;  %v1500_v12 = vcombine.high %v8444_v11, %v1462_v61  ;;  %v1515_v13 = vcombine.low %v1459_v43, %v1465_v63  ;;  %v1516_v15 = vcombine.high %v1459_v43, %v1465_v63 }
 0x292   : > { %v1855_v16 = vcombine.low %v1799_v5, %v1815_v59  ;;  %v1856_v17 = vcombine.high %v1799_v5, %v1815_v59  ;;  %v1871_v18 = vcombine.low %v1806_v6, %v1822_v60  ;;  %v1872_v19 = vcombine.high %v1806_v6, %v1822_v60 }
 0x293   : > { %v1507_v21 = vrot.slane %v1499_v7, %v8476_v62  ;;  %v1514_v22 = vrot.slane %v1500_v12, %v8476_v62  ;;  %v1523_v8 = vrot.slane %v1515_v13, %v8476_v62  ;;  %v1530_v23 = vrot.slane %v1516_v15, %v8476_v62 }
 0x294   : > { %v1959_v11 = vcombine.low %v8504_v56, %v8507_v58  ;;  %v1991_v28 = vcombine.low %v8512_v0, %v8515_v1  ;;  %v1667_v29 = vcombine.low %v8518_v10, %v8521_v2  ;;  %v1699_v30 = vcombine.low %v8524_v3, %v8527_v4 }
 0x295   : > { %v1563_v24 = vcombine.low %v1507_v21, %v1523_v8  ;;  %v1564_v25 = vcombine.high %v1507_v21, %v1523_v8  ;;  %v1579_v26 = vcombine.low %v1514_v22, %v1530_v23  ;;  %v1580_v27 = vcombine.high %v1514_v22, %v1530_v23 }
 0x296   : > { %v1863_v31 = vrot.slane %v1855_v16, %v8485_v14  ;;  %v1870_v32 = vrot.slane %v1856_v17, %v8485_v14  ;;  %v1879_v33 = vrot.slane %v1871_v18, %v8485_v14  ;;  %v1886_v9 = vrot.slane %v1872_v19, %v8485_v14 }
 0x297   : > { %v1571_v34 = vrot.slane %v1563_v24, %v8485_v14  ;;  %v1578_v35 = vrot.slane %v1564_v25, %v8485_v14  ;;  %v1587_v36 = vrot.slane %v1579_v26, %v8485_v14  ;;  %v1594_v37 = vrot.slane %v1580_v27, %v8485_v14 }
 0x298   : > { %v1967_v38 = vrot.slane %v1959_v11, %v8485_v14  ;;  %v1999_v39 = vrot.slane %v1991_v28, %v8485_v14  ;;  %v1675_v40 = vrot.slane %v1667_v29, %v8485_v14  ;;  %v1707_v41 = vrot.slane %v1699_v30, %v8485_v14 }
 0x299   : > { %v6549_v42 = vcombine.low %v1863_v31, %v1870_v32  ;;  %v6551_v43 = vcombine.high %v1863_v31, %v1870_v32  ;;  %v6553_v44 = vcombine.low %v1879_v33, %v1886_v9  ;;  %v1960_v45 = vcombine.high %v8504_v56, %v8507_v58 }
 0x29a   : > { %v1992_v46 = vcombine.high %v8512_v0, %v8515_v1  ;;  %v6555_v47 = vcombine.high %v1879_v33, %v1886_v9  ;;  %v2023_v48 = vcombine.low %v1967_v38, %v1999_v39  ;;  %v1668_v49 = vcombine.high %v8518_v10, %v8521_v2 }
 0x29b   : > { %v1731_v50 = vcombine.low %v1675_v40, %v1707_v41  ;;  %v1700_v51 = vcombine.high %v8524_v3, %v8527_v4  ;;  %v6541_v52 = vcombine.low %v1571_v34, %v1578_v35  ;;  %v6543_v53 = vcombine.high %v1571_v34, %v1578_v35 }
 0x29c   : > { %v6545_v54 = vcombine.low %v1587_v36, %v1594_v37  ;;  %6926 = vmatpush3.xpose.msk.msra.mxu1 %vm2323_vm1, %v2023_v48  ;;  %v1910_v55 = vrot.slane %v6549_v42, %v8476_v62  ;;  %v1926_v56 = vrot.slane %v6551_v43, %v8476_v62  ;;  %v1942_v58 = vrot.slane %v6553_v44, %v8476_v62 }
 0x29d   : > { %v6547_v59 = vcombine.high %v1587_v36, %v1594_v37  ;;  %6930 = vmatprep.subr.mxu1 %v8027_v20  ;;  %v1958_v60 = vrot.slane %v6555_v47, %v8476_v62  ;;  %v2024_v61 = vcombine.high %v1967_v38, %v1999_v39  ;;  %v1974_v63 = vrot.slane %v1960_v45, %v8485_v14  ;;  %v8625_v38 = vpop.f32.mrf.mxu0 }
 0x29e   : > { %v2006_v0 = vrot.slane %v1992_v46, %v8485_v14  ;;  %v1618_v1 = vrot.slane %v6541_v52, %v8476_v62  ;;  %v1634_v10 = vrot.slane %v6543_v53, %v8476_v62  ;;  %v1650_v2 = vrot.slane %v6545_v54, %v8476_v62 }
 0x29f   : > { %6928 = vmatmul.mubr.msk.f32.vlgmr.msra.gmra.mxu1 %vm2323_vm1, %v1731_v50  ;;  %v1666_v3 = vrot.slane %v6547_v59, %v8476_v62  ;;  %v1732_v4 = vcombine.high %v1675_v40, %v1707_v41  ;;  %v1682_v5 = vrot.slane %v1668_v49, %v8485_v14  ;;  %v1714_v6 = vrot.slane %v1700_v51, %v8485_v14  ;;  %v8627_v39 = vpop.f32.mrf.mxu0 }
 0x2a0   : > { %6931 = vmatpush3.xpose.msk.msra.mxu1 %vm2323_vm1, %v2024_v61  ;;  %6932 = vmatprep.mubr.msk.f32.mxu1 %vm8028_vm0, %v8027_v20  ;;  %v1975_v7 = vcombine.low %v1910_v55, %v1926_v56  ;;  %v2007_v12 = vcombine.low %v1942_v58, %v1958_v60  ;;  %v2025_v13 = vcombine.low %v1974_v63, %v2006_v0 }
 0x2a1   : > { %6935 = vmatprep.subr.mxu1 %v8027_v20  ;;  %v1683_v15 = vcombine.low %v1618_v1, %v1634_v10  ;;  %v1715_v16 = vcombine.low %v1650_v2, %v1666_v3  ;;  %v1733_v17 = vcombine.low %v1682_v5, %v1714_v6  ;;  %v2026_v18 = vcombine.high %v1974_v63, %v2006_v0  ;;  %v1444_v40 = vpop.f32.mrf.mxu0 }
 0x2a2   : > { %v1983_v19 = vrot.slane %v1975_v7, %v8485_v14  ;;  %v2015_v21 = vrot.slane %v2007_v12, %v8485_v14  ;;  %v1734_v22 = vcombine.high %v1682_v5, %v1714_v6  ;;  %v1976_v24 = vcombine.high %v1910_v55, %v1926_v56 }
 0x2a3   : > { %6933 = vmatmul.mubr.msk.f32.vlgmr.msra.gmra.mxu1 %vm2323_vm1, %v1732_v4  ;;  %v1691_v8 = vrot.slane %v1683_v15, %v8485_v14  ;;  %v1723_v23 = vrot.slane %v1715_v16, %v8485_v14  ;;  %v2008_v25 = vcombine.high %v1942_v58, %v1958_v60  ;;  %v1684_v27 = vcombine.high %v1618_v1, %v1634_v10  ;;  %v1445_v41 = vpop.f32.mrf.mxu0 }
 0x2a4   : > { %6936 = vmatpush3.xpose.msk.msra.mxu1 %vm2323_vm1, %v2025_v13  ;;  %6937 = vmatprep.mubr.msk.f32.mxu1 %vm8028_vm0, %v8027_v20  ;;  %v2027_v26 = vcombine.low %v1983_v19, %v2015_v21  ;;  %v1716_v11 = vcombine.high %v1650_v2, %v1666_v3  ;;  %v2028_v29 = vcombine.high %v1983_v19, %v2015_v21 }
 0x2a5   : > { %6940 = vmatprep.subr.mxu1 %v8027_v20  ;;  %v1735_v28 = vcombine.low %v1691_v8, %v1723_v23  ;;  %v1990_v30 = vrot.slane %v1976_v24, %v8485_v14  ;;  %v2022_v31 = vrot.slane %v2008_v25, %v8485_v14  ;;  %v1736_v32 = vcombine.high %v1691_v8, %v1723_v23 }
 0x2a6   : > { %v1698_v33 = vrot.slane %v1684_v27, %v8485_v14  ;;  %v1730_v9 = vrot.slane %v1716_v11, %v8485_v14 }
 0x2a7   : > { %6938 = vmatmul.mubr.msk.f32.vlgmr.msra.gmra.mxu1 %vm2323_vm1, %v1733_v17  ;;  %v2029_v34 = vcombine.low %v1990_v30, %v2022_v31  ;;  %v2030_v36 = vcombine.high %v1990_v30, %v2022_v31 }
 0x2a8   : > { %6941 = vmatpush3.xpose.msk.msra.mxu1 %vm2323_vm1, %v2026_v18  ;;  %6942 = vmatprep.mubr.msk.f32.mxu1 %vm8028_vm0, %v8027_v20  ;;  %v1737_v35 = vcombine.low %v1698_v33, %v1730_v9  ;;  %v1738_v37 = vcombine.high %v1698_v33, %v1730_v9 }
 0x2a9   : > { %6945 = vmatprep.subr.mxu1 %v8027_v20 }
 0x2ab   : > { %6943 = vmatmul.mubr.msk.f32.vlgmr.msra.gmra.mxu1 %vm2323_vm1, %v1734_v22 }
 0x2ac   : > { %6946 = vmatpush3.xpose.msk.msra.mxu1 %vm2323_vm1, %v2027_v26  ;;  %6947 = vmatprep.mubr.msk.f32.mxu1 %vm8028_vm0, %v8027_v20 }
 0x2ad   : > { %6950 = vmatprep.subr.mxu1 %v8027_v20 }
 0x2af   : > { %6948 = vmatmul.mubr.msk.f32.vlgmr.msra.gmra.mxu1 %vm2323_vm1, %v1735_v28 }
 0x2b0   : > { %6951 = vmatpush3.xpose.msk.msra.mxu1 %vm2323_vm1, %v2028_v29  ;;  %6952 = vmatprep.mubr.msk.f32.mxu1 %vm8028_vm0, %v8027_v20 }
 0x2b1   : > { %6955 = vmatprep.subr.mxu1 %v8027_v20 }
 0x2b3   : > { %6953 = vmatmul.mubr.msk.f32.vlgmr.msra.gmra.mxu1 %vm2323_vm1, %v1736_v32 }
 0x2b4   : > { %6956 = vmatpush3.xpose.msk.msra.mxu1 %vm2323_vm1, %v2029_v34  ;;  %6957 = vmatprep.mubr.msk.f32.mxu1 %vm8028_vm0, %v8027_v20 }
 0x2b5   : > { %6960 = vmatprep.subr.mxu1 %v8027_v20 }
 0x2b7   : > { %6958 = vmatmul.mubr.msk.f32.vlgmr.msra.gmra.mxu1 %vm2323_vm1, %v1737_v35 }
 0x2b8   : > { %6961 = vmatpush3.xpose.msk.msra.mxu1 %vm2323_vm1, %v2030_v36  ;;  %6962 = vmatprep.mubr.msk.f32.mxu1 %vm8028_vm0, %v8027_v20 }
 0x2b9   : > { %6965 = vmatprep.subr.mxu1 %v8027_v20 }
 0x2bb   : > { %6963 = vmatmul.mubr.msk.f32.vlgmr.msra.gmra.mxu1 %vm2323_vm1, %v1738_v37 }
 0x2bc   : > { %6967 = vmatprep.mubr.msk.f32.mxu1 %vm8028_vm0, %v8027_v20 }
 0x35f   : > { %v2396_v42 = vpop.f32.mrf.mxu1 }
 0x360   : > { %v2932_v43 = vmul.f32 0.0625, %v2396_v42 }
 0x361   : > { %v6929_v44 = vpop.f32.mrf.mxu1 }
 0x362   : > { %v2941_v45 = vsel %vm2940_vm2, %v2932_v43, -inf }
 0x363   : > { %v2472_v46 = vpop.f32.mrf.mxu1  ;;  %2942 = vmax.xlane.f32.xlu0 %v2941_v45 }
 0x364   : > { %v2933_v47 = vmul.f32 0.0625, %v2472_v46 }
 0x365   : > { %v6934_v48 = vpop.f32.mrf.mxu1 }
 0x366   : > { %v2944_v49 = vsel %vm2940_vm2, %v2933_v47, -inf }
 0x367   : > { %v2548_v50 = vpop.f32.mrf.mxu1  ;;  %2945 = vmax.xlane.f32.xlu1 %v2944_v49 }
 0x368   : > { %v2934_v51 = vmul.f32 0.0625, %v2548_v50 }
 0x369   : > { %v6939_v52 = vpop.f32.mrf.mxu1 }
 0x36a   : > { %v2947_v53 = vsel %vm2940_vm2, %v2934_v51, -inf }
 0x36b   : > { %v2624_v54 = vpop.f32.mrf.mxu1  ;;  %2948 = vmax.xlane.f32.xlu0 %v2947_v53 }
 0x36c   : > { %v2935_v55 = vmul.f32 0.0625, %v2624_v54 }
 0x36d   : > { %v6944_v56 = vpop.f32.mrf.mxu1 }
 0x36e   : > { %v2950_v58 = vsel %vm2940_vm2, %v2935_v55, -inf }
 0x36f   : > { %2951 = vmax.xlane.f32.xlu0 %v2950_v58  ;;  %v2700_v59 = vpop.f32.mrf.mxu1 }
 0x370   : > { %v2936_v60 = vmul.f32 0.0625, %v2700_v59 }
 0x371   : > { %v6949_v61 = vpop.f32.mrf.mxu1 }
 0x372   : > { %v2953_v63 = vsel %vm2940_vm2, %v2936_v60, -inf }
 0x373   : > { %2954 = vmax.xlane.f32.xlu1 %v2953_v63  ;;  %v2776_v0 = vpop.f32.mrf.mxu1 }
 0x374   : > { %v2937_v1 = vmul.f32 0.0625, %v2776_v0 }
 0x375   : > { %v6954_v10 = vpop.f32.mrf.mxu1 }
 0x376   : > { %v2956_v2 = vsel %vm2940_vm2, %v2937_v1, -inf }
 0x377   : > { %2957 = vmax.xlane.f32.xlu0 %v2956_v2  ;;  %v2852_v3 = vpop.f32.mrf.mxu1 }
 0x378   : > { %v2938_v4 = vmul.f32 0.0625, %v2852_v3 }
 0x379   : > { %v6959_v5 = vpop.f32.mrf.mxu1 }
 0x37a   : > { %v2959_v6 = vsel %vm2940_vm2, %v2938_v4, -inf }
 0x37b   : > { %2960 = vmax.xlane.f32.xlu1 %v2959_v6  ;;  %v2928_v7 = vpop.f32.mrf.mxu1 }
 0x37c   : > { %v8636_v12 = vmul.f32 0.0625, %v2928_v7 }
 0x37d   : > { %v6964_v13 = vpop.f32.mrf.mxu1 }
 0x37e   : > { %v2962_v15 = vsel %vm2940_vm2, %v8636_v12, -inf }
 0x37f   : > { %2963 = vmax.xlane.f32.xlu0 %v2962_v15 }
 0x38c   : > { %2035 = vrot.lane.b32.xlu1 %v8625_v38, %s8026_s4 }
 0x390   : > { %2038 = vrot.lane.b32.xlu1 %v8625_v38, %s8024_s18 }
 0x394   : > { %2042 = vrot.lane.b32.xlu1 %v8627_v39, %s8025_s1 }
 0x395   : > { %2032 = vrot.lane.b32.xlu0 %v8625_v38, %s8025_s1 }
 0x3ec   : > { %v2943_v16 = vpop.xlane.xlu0 %2942 }
 0x3ed   : > { %v2965_v17 = vsub.f32 %v2932_v43, %v2943_v16 }
 0x3ef   : > { %v2973_v18 = vmul.f32 1.442695, %v2965_v17 }
 0x3f0   : > { %v2946_v19 = vpop.xlane.xlu1 %2945 }
 0x3f1   : > { %7562 = vpow2.f32 %v2973_v18  ;;  %v2966_v21 = vsub.f32 %v2933_v47, %v2946_v19 }
 0x3f3   : > { %v2975_v22 = vmul.f32 1.442695, %v2966_v21 }
 0x3f4   : > { %v2949_v8 = vpop.xlane.xlu0 %2948 }
 0x3f5   : > { %7564 = vpow2.f32 %v2975_v22  ;;  %v2967_v23 = vsub.f32 %v2934_v51, %v2949_v8 }
 0x3f7   : > { %v2977_v24 = vmul.f32 1.442695, %v2967_v23 }
 0x3f8   : > { %v2952_v25 = vpop.xlane.xlu0 %2951 }
 0x3f9   : > { %7566 = vpow2.f32 %v2977_v24  ;;  %v2968_v26 = vsub.f32 %v2935_v55, %v2952_v25 }
 0x3fb   : > { %v2979_v27 = vmul.f32 1.442695, %v2968_v26 }
 0x3fc   : > { %v2955_v11 = vpop.xlane.xlu1 %2954 }
 0x3fd   : > { %7568 = vpow2.f32 %v2979_v27  ;;  %v2969_v28 = vsub.f32 %v2936_v60, %v2955_v11 }
 0x3fe   : > { %v8648_v29 = vpop.eup %7562 }
 0x3ff   : > { %v2981_v30 = vmul.f32 1.442695, %v2969_v28  ;;  %v2989_v31 = vsel %vm2940_vm2, %v8648_v29, 0.0 }
 0x400   : > { %v2958_v32 = vpop.xlane.xlu0 %2957  ;;  %2990 = vadd.xlane.f32.xlu1 %v2989_v31 }
 0x401   : > { %7570 = vpow2.f32 %v2981_v30  ;;  %v2970_v33 = vsub.f32 %v2937_v1, %v2958_v32 }
 0x402   : > { %v8652_v9 = vpop.eup %7564 }
 0x403   : > { %v2983_v34 = vmul.f32 1.442695, %v2970_v33  ;;  %v2992_v35 = vsel %vm2940_vm2, %v8652_v9, 0.0 }
 0x404   : > { %v2961_v36 = vpop.xlane.xlu1 %2960  ;;  %2993 = vadd.xlane.f32.xlu0 %v2992_v35 }
 0x405   : > { %7572 = vpow2.f32 %v2983_v34  ;;  %v2971_v37 = vsub.f32 %v2938_v4, %v2961_v36 }
 0x406   : > { %v8656_v40 = vpop.eup %7566 }
 0x407   : > { %v2985_v41 = vmul.f32 1.442695, %v2971_v37  ;;  %v2995_v42 = vsel %vm2940_vm2, %v8656_v40, 0.0 }
 0x408   : > { %v2964_v43 = vpop.xlane.xlu0 %2963  ;;  %v2036_v44 = vpop.permute.xlu1 %2035  ;;  %2996 = vadd.xlane.f32.xlu1 %v2995_v42 }
 0x409   : > { %7574 = vpow2.f32 %v2985_v41  ;;  %v2051_v46 = vcombine.low %v8625_v38, %v2036_v44  ;;  %v2052_v47 = vcombine.high %v8625_v38, %v2036_v44  ;;  %v2972_v33 = vsub.f32 %v8636_v12, %v2964_v43 }
 0x40a   : > { %v8660_v45 = vpop.eup %7568 }
 0x40b   : > { %v2998_v48 = vsel %vm2940_vm2, %v8660_v45, 0.0  ;;  %v2059_v54 = vrot.slane %v2051_v46, %v8476_v62  ;;  %v2066_v55 = vrot.slane %v2052_v47, %v8476_v62  ;;  %v2987_v34 = vmul.f32 1.442695, %v2972_v33 }
 0x40c   : > { %v2039_v49 = vpop.permute.xlu1 %2038  ;;  %2999 = vadd.xlane.f32.xlu0 %v2998_v48  ;;  %v2033_v50 = vpop.permute.xlu0 %2032 }
 0x40d   : > { %v2067_v51 = vcombine.low %v2033_v50, %v2039_v49  ;;  %v2068_v52 = vcombine.high %v2033_v50, %v2039_v49  ;;  %7576 = vpow2.f32 %v2987_v34 }
 0x40e   : > { %v8666_v53 = vpop.eup %7570 }
 0x40f   : > { %v2075_v56 = vrot.slane %v2067_v51, %v8476_v62  ;;  %v2082_v58 = vrot.slane %v2068_v52, %v8476_v62  ;;  %v3001_v38 = vsel %vm2940_vm2, %v8666_v53, 0.0 }
 0x410   : > { %3002 = vadd.xlane.f32.xlu1 %v3001_v38  ;;  %v2043_v37 = vpop.permute.xlu1 %2042 }
 0x411   : > { %v2115_v59 = vcombine.low %v2059_v54, %v2075_v56  ;;  %v2116_v60 = vcombine.high %v2059_v54, %v2075_v56  ;;  %v2131_v61 = vcombine.low %v2066_v55, %v2082_v58  ;;  %v2132_v63 = vcombine.high %v2066_v55, %v2082_v58 }
 0x412   : > { %v8674_v0 = vpop.eup %7572 }
 0x413   : > { %v2123_v1 = vrot.slane %v2115_v59, %v8485_v14  ;;  %v2130_v10 = vrot.slane %v2116_v60, %v8485_v14  ;;  %v2139_v2 = vrot.slane %v2131_v61, %v8485_v14  ;;  %v2146_v3 = vrot.slane %v2132_v63, %v8485_v14 }
 0x414   : > { %v3004_v4 = vsel %vm2940_vm2, %v8674_v0, 0.0 }
 0x415   : > { %v6556_v5 = vcombine.low %v2123_v1, %v2130_v10  ;;  %v6558_v6 = vcombine.high %v2123_v1, %v2130_v10  ;;  %v6560_v7 = vcombine.low %v2139_v2, %v2146_v3  ;;  %v6562_v13 = vcombine.high %v2139_v2, %v2146_v3  ;;  %3005 = vadd.xlane.f32.xlu0 %v3004_v4 }
 0x416   : > { %v8682_v15 = vpop.eup %7574 }
 0x417   : > { %v2195_v16 = vrot.slane %v6556_v5, %v8476_v62  ;;  %v2211_v17 = vrot.slane %v6558_v6, %v8476_v62  ;;  %v2227_v18 = vrot.slane %v6560_v7, %v8476_v62  ;;  %v2243_v19 = vrot.slane %v6562_v13, %v8476_v62 }
 0x418   : > { %v3007_v21 = vsel %vm2940_vm2, %v8682_v15, 0.0 }
 0x419   : > { %3008 = vadd.xlane.f32.xlu0 %v3007_v21  ;;  %v2251_v22 = vcombine.low %v2195_v16, %v2211_v17  ;;  %v2283_v8 = vcombine.low %v2227_v18, %v2243_v19  ;;  %v2252_v23 = vcombine.high %v2195_v16, %v2211_v17  ;;  %v2284_v24 = vcombine.high %v2227_v18, %v2243_v19 }
 0x41a   : > { %v8700_v35 = vpop.eup %7576 }
 0x41b   : > { %v2259_v25 = vrot.slane %v2251_v22, %v8485_v14  ;;  %v2291_v26 = vrot.slane %v2283_v8, %v8485_v14  ;;  %v2266_v27 = vrot.slane %v2252_v23, %v8485_v14  ;;  %v2298_v11 = vrot.slane %v2284_v24, %v8485_v14 }
 0x41c   : > { %v3010_v36 = vsel %vm2940_vm2, %v8700_v35, 0.0 }
 0x41d   : > { %v2315_v28 = vcombine.low %v2259_v25, %v2291_v26  ;;  %v2316_v30 = vcombine.high %v2259_v25, %v2291_v26  ;;  %v2317_v31 = vcombine.low %v2266_v27, %v2298_v11  ;;  %v2318_v32 = vcombine.high %v2266_v27, %v2298_v11 }
 0x41f   : > { %6966 = vmatpush3.msra.mxu1 %v2315_v28 }
 0x420   : > { %6970 = vmatprep.subr.mxu1 %v8027_v20 }
 0x421   : > { %2048 = vrot.lane.b32.xlu1 %v8627_v39, %s8024_s18 }
 0x42f   : > { %2045 = vrot.lane.b32.xlu0 %v8627_v39, %s8026_s4 }
 0x445   : > { %3011 = vadd.xlane.f32.xlu1 %v3010_v36 }
 0x489   : > { %v2991_v41 = vpop.xlane.xlu1 %2990 }
 0x48a   : > { %7578 = vrcp.f32 %v2991_v41 }
 0x48d   : > { %v2994_v42 = vpop.xlane.xlu0 %2993 }
 0x48e   : > { %7580 = vrcp.f32 %v2994_v42 }
 0x491   : > { %v2997_v44 = vpop.xlane.xlu1 %2996 }
 0x492   : > { %7582 = vrcp.f32 %v2997_v44 }
 0x495   : > { %v3000_v46 = vpop.xlane.xlu0 %2999 }
 0x496   : > { %7584 = vrcp.f32 %v3000_v46 }
 0x497   : > { %v7579_v12 = vpop.eup %7578 }
 0x498   : > { %v3021_v43 = vmul.f32 %v7579_v12, %v8648_v29  ;;  %v7322_v12 = vld [vmem:[#allocation13 + $0x70] ss:$8 sps:$4 sm:$0xff]  }
 0x499   : > { %v3003_v48 = vpop.xlane.xlu1 %3002 }
 0x49a   : > { %6968 = vmatmul.mubr.msk.f32.vlgmr.msra.gmra.mxu1 %vm2940_vm2, %v3021_v43  ;;  %7586 = vrcp.f32 %v3003_v48  ;;  %v7324_v43 = vld [vmem:[#allocation13 + $0x74] ss:$8 sps:$4 sm:$0xff]  }
 0x49b   : > { %v7581_v47 = vpop.eup %7580  ;;  %6971 = vmatpush3.msra.mxu1 %v2316_v30  ;;  %6972 = vmatprep.mubr.msk.f32.mxu1 %vm8028_vm0, %v8027_v20  ;;  %v7330_v48 = vld [vmem:[#allocation13 + $0x54] ss:$8 sps:$4 sm:$0xff]  }
 0x49c   : > { %6975 = vmatprep.subr.mxu1 %v8027_v20  ;;  %v3022_v49 = vmul.f32 %v7581_v47, %v8652_v9  ;;  %v7327_v47 = vld [vmem:[#allocation13 + $0x64] ss:$8 sps:$4 sm:$0xff]   ;;  %4123 = vmatprep.subr.bf16.mxu0 %v7324_v43 }
 0x49d   : > { %v2049_v52 = vpop.permute.xlu1 %2048  ;;  %4124 = vmatpush1.bf16.msra.mxu0 %v7322_v12 }
 0x49e   : > { %v3006_v50 = vpop.xlane.xlu0 %3005  ;;  %6973 = vmatmul.mubr.msk.f32.vlgmr.msra.gmra.mxu1 %vm2940_vm2, %v3022_v49  ;;  %v2099_v56 = vcombine.low %v2043_v37, %v2049_v52  ;;  %v2100_v58 = vcombine.high %v2043_v37, %v2049_v52  ;;  %4125 = vmatprep.subr.bf16.mxu0 %v7327_v47  ;;  %v7328_v49 = vld [vmem:[#allocation13 + $0x50] ss:$8 sps:$4 sm:$0xff]   ;;  %v7337_v52 = vld [vmem:[#allocation13 + $0x20] ss:$8 sps:$4 sm:$0xff]  }
 0x49f   : > { %v7583_v51 = vpop.eup %7582  ;;  %6976 = vmatpush3.msra.mxu1 %v2317_v31  ;;  %6977 = vmatprep.mubr.msk.f32.mxu1 %vm8028_vm0, %v8027_v20  ;;  %7588 = vrcp.f32 %v3006_v50  ;;  %v7333_v50 = vld [vmem:[#allocation13 + $0x44] ss:$8 sps:$4 sm:$0xff]  }
 0x4a0   : > { %6980 = vmatprep.subr.mxu1 %v8027_v20  ;;  %v3023_v29 = vmul.f32 %v7583_v51, %v8656_v40  ;;  %v2107_v60 = vrot.slane %v2099_v56, %v8476_v62  ;;  %v2114_v61 = vrot.slane %v2100_v58, %v8476_v62  ;;  %v7336_v51 = vld [vmem:[#allocation13 + $0x34] ss:$8 sps:$4 sm:$0xff]   ;;  %v7343_v56 = vld [vmem:[#allocation13] ss:$8 sps:$4 sm:$0xff]  }
 0x4a1   : > { %v7348_v58 = vld [vmem:[#allocation13 + $0xf4] ss:$8 sps:$4 sm:$0xff]  }
 0x4a2   : > { %v3009_v54 = vpop.xlane.xlu0 %3008  ;;  %6978 = vmatmul.mubr.msk.f32.vlgmr.msra.gmra.mxu1 %vm2940_vm2, %v3023_v29  ;;  %v7339_v29 = vld [vmem:[#allocation13 + $0x24] ss:$8 sps:$4 sm:$0xff]  }
 0x4a3   : > { %v7585_v55 = vpop.eup %7584  ;;  %6981 = vmatpush3.msra.mxu1 %v2318_v32  ;;  %6982 = vmatprep.mubr.msk.f32.mxu1 %vm8028_vm0, %v8027_v20  ;;  %7590 = vrcp.f32 %v3009_v54  ;;  %v7342_v54 = vld [vmem:[#allocation13 + $0x14] ss:$8 sps:$4 sm:$0xff]  }
 0x4a4   : > { %v3024_v9 = vmul.f32 %v7585_v55, %v8660_v45  ;;  %6985 = vmatprep.subr.mxu1 %v8027_v20  ;;  %v7340_v55 = vld [vmem:[#allocation13 + $0x10] ss:$8 sps:$4 sm:$0xff]  }
 0x4a6   : > { %v2046_v38 = vpop.permute.xlu0 %2045  ;;  %6983 = vmatmul.mubr.msk.f32.vlgmr.msra.gmra.mxu1 %vm2940_vm2, %v3024_v9  ;;  %v7345_v9 = vld [vmem:[#allocation13 + $0x4] ss:$8 sps:$4 sm:$0xff]  }
 0x4a7   : > { %v2083_v40 = vcombine.low %v8627_v39, %v2046_v38  ;;  %v2084_v59 = vcombine.high %v8627_v39, %v2046_v38  ;;  %6987 = vmatprep.mubr.msk.f32.mxu1 %vm8028_vm0, %v8027_v20  ;;  %v7587_v24 = vpop.eup %7586 }
 0x4a8   : > { %v3025_v30 = vmul.f32 %v7587_v24, %v8666_v53 }
 0x4a9   : > { %v2091_v45 = vrot.slane %v2083_v40, %v8476_v62  ;;  %v2098_v63 = vrot.slane %v2084_v59, %v8476_v62  ;;  %v7346_v40 = vld [vmem:[#allocation13 + $0xf0] ss:$8 sps:$4 sm:$0xff]  }
 0x4ab   : > { %v2147_v1 = vcombine.low %v2091_v45, %v2107_v60  ;;  %v2148_v10 = vcombine.high %v2091_v45, %v2107_v60  ;;  %v2163_v2 = vcombine.low %v2098_v63, %v2114_v61  ;;  %v2164_v3 = vcombine.high %v2098_v63, %v2114_v61  ;;  %v7351_v60 = vld [vmem:[#allocation13 + $0xe4] ss:$8 sps:$4 sm:$0xff]   ;;  %v7349_v45 = vld [vmem:[#allocation13 + $0xe0] ss:$8 sps:$4 sm:$0xff]  }
 0x4ac   : > { %v7589_v31 = vpop.eup %7588 }
 0x4ad   : > { %v2155_v4 = vrot.slane %v2147_v1, %v8485_v14  ;;  %v2162_v39 = vrot.slane %v2148_v10, %v8485_v14  ;;  %v2171_v5 = vrot.slane %v2163_v2, %v8485_v14  ;;  %v2178_v6 = vrot.slane %v2164_v3, %v8485_v14  ;;  %v7354_v1 = vld [vmem:[#allocation13 + $0xd4] ss:$8 sps:$4 sm:$0xff]   ;;  %v7352_v2 = vld [vmem:[#allocation13 + $0xd0] ss:$8 sps:$4 sm:$0xff]  }
 0x4ae   : > { %v3026_v36 = vmul.f32 %v7589_v31, %v8674_v0 }
 0x4af   : > { %v6557_v7 = vcombine.low %v2155_v4, %v2162_v39  ;;  %v6559_v13 = vcombine.high %v2155_v4, %v2162_v39  ;;  %v6561_v16 = vcombine.low %v2171_v5, %v2178_v6  ;;  %v6563_v17 = vcombine.high %v2171_v5, %v2178_v6  ;;  %v7357_v4 = vld [vmem:[#allocation13 + $0xc4] ss:$8 sps:$4 sm:$0xff]  }
 0x4b0   : > { %v7591_v53 = vpop.eup %7590 }
 0x4b1   : > { %v2202_v18 = vrot.slane %v6557_v7, %v8476_v62  ;;  %v2218_v19 = vrot.slane %v6559_v13, %v8476_v62  ;;  %v2234_v21 = vrot.slane %v6561_v16, %v8476_v62  ;;  %v2250_v22 = vrot.slane %v6563_v17, %v8476_v62  ;;  %v7355_v16 = vld [vmem:[#allocation13 + $0xc0] ss:$8 sps:$4 sm:$0xff]  }
 0x4b2   : > { %v3027_v41 = vmul.f32 %v7591_v53, %v8682_v15  ;;  %v7325_v15 = vld [vmem:[#allocation13 + $0x60] ss:$8 sps:$4 sm:$0xff]  }
 0x4b3   : > { %v2267_v8 = vcombine.low %v2202_v18, %v2218_v19  ;;  %v2299_v23 = vcombine.low %v2234_v21, %v2250_v22  ;;  %v2268_v27 = vcombine.high %v2202_v18, %v2218_v19  ;;  %v2300_v11 = vcombine.high %v2234_v21, %v2250_v22  ;;  %4126 = vmatpush1.bf16.msra.mxu0 %v7325_v15  ;;  %v7360_v18 = vld [vmem:[#allocation13 + $0xb4] ss:$8 sps:$4 sm:$0xff]  }
 0x4b4   : > { %4127 = vmatprep.subr.bf16.mxu0 %v7330_v48 }
 0x4b5   : > { %v2275_v25 = vrot.slane %v2267_v8, %v8485_v14  ;;  %v2307_v26 = vrot.slane %v2299_v23, %v8485_v14  ;;  %v2282_v33 = vrot.slane %v2268_v27, %v8485_v14  ;;  %v2314_v34 = vrot.slane %v2300_v11, %v8485_v14  ;;  %v7358_v27 = vld [vmem:[#allocation13 + $0xb0] ss:$8 sps:$4 sm:$0xff]  }
 0x4b7   : > { %v2319_v28 = vcombine.low %v2275_v25, %v2307_v26  ;;  %v2320_v32 = vcombine.high %v2275_v25, %v2307_v26  ;;  %v2321_v37 = vcombine.low %v2282_v33, %v2314_v34  ;;  %v2322_v42 = vcombine.high %v2282_v33, %v2314_v34  ;;  %4128 = vmatpush1.bf16.msra.mxu0 %v7328_v49 }
 0x4b8   : > { %4129 = vmatprep.subr.bf16.mxu0 %v7333_v50 }
 0x4b9   : > { %6986 = vmatpush3.msra.mxu1 %v2319_v28 }
 0x4ba   : > { %6988 = vmatmul.mubr.msk.f32.vlgmr.msra.gmra.mxu1 %vm2940_vm2, %v3025_v30  ;;  %6990 = vmatprep.subr.mxu1 %v8027_v20 }
 0x4bb   : > { %6991 = vmatpush3.msra.mxu1 %v2320_v32  ;;  %6992 = vmatprep.mubr.msk.f32.mxu1 %vm8028_vm0, %v8027_v20 }
 0x4bc   : > { %6995 = vmatprep.subr.mxu1 %v8027_v20 }
 0x4be   : > { %6993 = vmatmul.mubr.msk.f32.vlgmr.msra.gmra.mxu1 %vm2940_vm2, %v3026_v36 }
 0x4bf   : > { %6996 = vmatpush3.msra.mxu1 %v2321_v37  ;;  %6997 = vmatprep.mubr.msk.f32.mxu1 %vm8028_vm0, %v8027_v20 }
 0x4c0   : > { %7000 = vmatprep.subr.mxu1 %v8027_v20 }
 0x4c2   : > { %6998 = vmatmul.mubr.msk.f32.vlgmr.msra.gmra.mxu1 %vm2940_vm2, %v3027_v41 }
 0x4c3   : > { %7001 = vmatpush3.msra.mxu1 %v2322_v42  ;;  %7002 = vmatprep.mubr.msk.f32.mxu1 %vm8028_vm0, %v8027_v20  ;;  %v7331_v20 = vld [vmem:[#allocation13 + $0x40] ss:$8 sps:$4 sm:$0xff]  }
 0x4c4   : > { %4130 = vmatpush1.bf16.msra.mxu0 %v7331_v20 }
 0x4c5   : > { %4131 = vmatprep.subr.bf16.mxu0 %v7336_v51 }
 0x4ce   : > { %v3012_v0 = vpop.xlane.xlu1 %3011 }
 0x4cf   : > { %7592 = vrcp.f32 %v3012_v0 }
 0x4dc   : > { %v7593_v44 = vpop.eup %7592 }
 0x4dd   : > { %v3028_v46 = vmul.f32 %v7593_v44, %v8700_v35  ;;  %v7334_v35 = vld [vmem:[#allocation13 + $0x30] ss:$8 sps:$4 sm:$0xff]  }
 0x4de   : > { %4132 = vmatpush1.bf16.msra.mxu0 %v7334_v35 }
 0x4df   : > { %7003 = vmatmul.mubr.msk.f32.vlgmr.msra.gmra.mxu1 %vm2940_vm2, %v3028_v46  ;;  %4133 = vmatprep.subr.bf16.mxu0 %v7339_v29 }
 0x4e2   : > { %4134 = vmatpush1.bf16.msra.mxu0 %v7337_v52 }
 0x4e3   : > { %4135 = vmatprep.subr.bf16.mxu0 %v7342_v54 }
 0x4e6   : > { %4136 = vmatpush1.bf16.msra.mxu0 %v7340_v55 }
 0x4e7   : > { %4137 = vmatprep.subr.bf16.mxu0 %v7345_v9 }
 0x4ea   : > { %4138 = vmatpush1.bf16.msra.mxu0 %v7343_v56 }
 0x4eb   : > { %4139 = vmatprep.subr.bf16.mxu0 %v7348_v58 }
 0x4ee   : > { %4140 = vmatpush2.bf16.msra.mxu0 %v7346_v40 }
 0x4ef   : > { %4141 = vmatprep.subr.bf16.mxu0 %v7351_v60 }
 0x4f2   : > { %4142 = vmatpush2.bf16.msra.mxu0 %v7349_v45 }
 0x4f3   : > { %4143 = vmatprep.subr.bf16.mxu0 %v7354_v1 }
 0x4f6   : > { %4144 = vmatpush2.bf16.msra.mxu0 %v7352_v2 }
 0x4f7   : > { %4145 = vmatprep.subr.bf16.mxu0 %v7357_v4 }
 0x4fa   : > { %4146 = vmatpush2.bf16.msra.mxu0 %v7355_v16 }
 0x4fb   : > { %4147 = vmatprep.subr.bf16.mxu0 %v7360_v18 }
 0x4fe   : > { %4148 = vmatpush2.bf16.msra.mxu0 %v7358_v27 }
 0x55a   : > { %v3098_v38 = vpop.f32.mrf.mxu1 }
 0x55c   : > { %v6969_v59 = vpop.f32.mrf.mxu1 }
 0x55e   : > { %v3171_v61 = vpop.f32.mrf.mxu1 }
 0x560   : > { %v6974_v63 = vpop.f32.mrf.mxu1 }
 0x562   : > { %v3244_v10 = vpop.f32.mrf.mxu1 }
 0x563   : > { %v3613_v39 = vcombine.low %v3098_v38, %v3244_v10  ;;  %v3614_v5 = vcombine.high %v3098_v38, %v3244_v10 }
 0x564   : > { %v6979_v3 = vpop.f32.mrf.mxu1 }
 0x565   : > { %v3621_v19 = vrot.slane %v3613_v39, %v8476_v62  ;;  %v3628_v21 = vrot.slane %v3614_v5, %v8476_v62 }
 0x566   : > { %v3317_v6 = vpop.f32.mrf.mxu1 }
 0x567   : > { %v3629_v7 = vcombine.low %v3171_v61, %v3317_v6  ;;  %v3630_v13 = vcombine.high %v3171_v61, %v3317_v6 }
 0x568   : > { %v6984_v17 = vpop.f32.mrf.mxu1 }
 0x569   : > { %v3637_v22 = vrot.slane %v3629_v7, %v8476_v62  ;;  %v3644_v8 = vrot.slane %v3630_v13, %v8476_v62 }
 0x56b   : > { %v3677_v23 = vcombine.low %v3621_v19, %v3637_v22  ;;  %v3678_v24 = vcombine.high %v3621_v19, %v3637_v22  ;;  %v3693_v25 = vcombine.low %v3628_v21, %v3644_v8  ;;  %v3694_v26 = vcombine.high %v3628_v21, %v3644_v8  ;;  %v7361_v19 = vld [vmem:[#allocation13 + $0xa0] ss:$8 sps:$4 sm:$0xff]   ;;  %v7363_v21 = vld [vmem:[#allocation13 + $0xa4] ss:$8 sps:$4 sm:$0xff]  }
 0x56c   : > { %4149 = vmatprep.subr.bf16.mxu0 %v7363_v21  ;;  %v4261_v21 = vld [vmem:[#allocation16 + $0x180] sm:$0xff] }
 0x56d   : > { %v3685_v11 = vrot.slane %v3677_v23, %v8485_v14  ;;  %v3692_v28 = vrot.slane %v3678_v24, %v8485_v14  ;;  %v3701_v30 = vrot.slane %v3693_v25, %v8485_v14  ;;  %v3708_v31 = vrot.slane %v3694_v26, %v8485_v14  ;;  %4150 = vmatpush2.bf16.msra.mxu0 %v7361_v19  ;;  %v4274_v19 = vld [vmem:[#allocation16 + $0x1e8] sm:$0xff] }
 0x56f   : > { %v6588_v32 = vcombine.low %v3685_v11, %v3692_v28  ;;  %v6590_v33 = vcombine.high %v3685_v11, %v3692_v28  ;;  %v6592_v34 = vcombine.low %v3701_v30, %v3708_v31  ;;  %v6594_v36 = vcombine.high %v3701_v30, %v3708_v31  ;;  %v7364_v28 = vld [vmem:[#allocation13 + $0x90] ss:$8 sps:$4 sm:$0xff]   ;;  %v7366_v30 = vld [vmem:[#allocation13 + $0x94] ss:$8 sps:$4 sm:$0xff]  }
 0x570   : > { %4151 = vmatprep.subr.bf16.mxu0 %v7366_v30  ;;  %v4254_v30 = vld [vmem:[#allocation16 + $0x148] sm:$0xff] }
 0x571   : > { %v3757_v53 = vrot.slane %v6588_v32, %v8476_v62  ;;  %v3773_v37 = vrot.slane %v6590_v33, %v8476_v62  ;;  %v3789_v41 = vrot.slane %v6592_v34, %v8476_v62  ;;  %v3805_v42 = vrot.slane %v6594_v36, %v8476_v62  ;;  %4152 = vmatpush2.bf16.msra.mxu0 %v7364_v28  ;;  %v4257_v28 = vld [vmem:[#allocation16 + $0x160] sm:$0xff] }
 0x573   : > { %v3813_v0 = vcombine.low %v3757_v53, %v3773_v37  ;;  %v3845_v44 = vcombine.low %v3789_v41, %v3805_v42  ;;  %v3814_v46 = vcombine.high %v3757_v53, %v3773_v37  ;;  %v3846_v12 = vcombine.high %v3789_v41, %v3805_v42  ;;  %v7367_v41 = vld [vmem:[#allocation13 + $0x80] ss:$8 sps:$4 sm:$0xff]   ;;  %v7369_v42 = vld [vmem:[#allocation13 + $0x84] ss:$8 sps:$4 sm:$0xff]  }
 0x574   : > { %4153 = vmatprep.subr.bf16.mxu0 %v7369_v42 }
 0x575   : > { %v8771_v43 = vrot.slane %v3813_v0, %v8485_v14  ;;  %v8774_v47 = vrot.slane %v3845_v44, %v8485_v14  ;;  %v8777_v15 = vrot.slane %v3814_v46, %v8485_v14  ;;  %v8780_v48 = vrot.slane %v3846_v12, %v8485_v14  ;;  %4154 = vmatpush2.bf16.msra.mxu0 %v7367_v41  ;;  %v4250_v41 = vld [vmem:[#allocation16 + $0x128] sm:$0xff] }
 0x577   : > { %v3877_v49 = vcombine.low %v8771_v43, %v8774_v47  ;;  %v3878_v50 = vcombine.high %v8771_v43, %v8774_v47  ;;  %v3879_v20 = vcombine.low %v8777_v15, %v8780_v48  ;;  %v3880_v51 = vcombine.high %v8777_v15, %v8780_v48  ;;  %v3951_v43 = vld [vmem:[%s8947_s7] sm:$0x3] }
 0x578   : > { %v8821_v47 = vsub.s32 1, %v8473_v57 }
 0x57a   : > { %v3390_v35 = vpop.f32.mrf.mxu1 }
 0x57c   : > { %v6989_v29 = vpop.f32.mrf.mxu1 }
 0x57e   : > { %v3463_v52 = vpop.f32.mrf.mxu1 }
 0x580   : > { %v6994_v54 = vpop.f32.mrf.mxu1 }
 0x582   : > { %v3536_v55 = vpop.f32.mrf.mxu1 }
 0x583   : > { %v3645_v56 = vcombine.low %v3390_v35, %v3536_v55  ;;  %v3646_v58 = vcombine.high %v3390_v35, %v3536_v55 }
 0x584   : > { %v6999_v9 = vpop.f32.mrf.mxu1 }
 0x585   : > { %v3653_v61 = vrot.slane %v3645_v56, %v8476_v62  ;;  %v3660_v45 = vrot.slane %v3646_v58, %v8476_v62 }
 0x59f   : > { %v3609_v38 = vpop.f32.mrf.mxu1 }
 0x5a0   : > { %v3661_v40 = vcombine.low %v3463_v52, %v3609_v38  ;;  %v3662_v59 = vcombine.high %v3463_v52, %v3609_v38 }
 0x5a1   : > { %v7004_v60 = vpop.f32.mrf.mxu1 }
 0x5a2   : > { %v3669_v63 = vrot.slane %v3661_v40, %v8476_v62  ;;  %v3676_v1 = vrot.slane %v3662_v59, %v8476_v62  ;;  %v8815_v59 = vsub.s32 0, %v8473_v57  ;;  %v3960_v60 = vrot.slane %v3951_v43, %v8821_v47 }
 0x5a4   : > { %v3709_v10 = vcombine.low %v3653_v61, %v3669_v63  ;;  %v3710_v2 = vcombine.high %v3653_v61, %v3669_v63  ;;  %v3725_v3 = vcombine.low %v3660_v45, %v3676_v1  ;;  %v3726_v4 = vcombine.high %v3660_v45, %v3676_v1 }
 0x5a6   : > { %v3717_v39 = vrot.slane %v3709_v10, %v8485_v14  ;;  %v3724_v5 = vrot.slane %v3710_v2, %v8485_v14  ;;  %v3733_v6 = vrot.slane %v3725_v3, %v8485_v14  ;;  %v3740_v7 = vrot.slane %v3726_v4, %v8485_v14  ;;  %v7598_v2 = vld [vmem:[%s8406_s14] sm:$0xff]  ;;  %v7599_v4 = vld [vmem:[%s8406_s14 + $0x8] sm:$0xff] }
 0x5a8   : > { %v6589_v13 = vcombine.low %v3717_v39, %v3724_v5  ;;  %v6591_v16 = vcombine.high %v3717_v39, %v3724_v5  ;;  %v6593_v17 = vcombine.low %v3733_v6, %v3740_v7  ;;  %v6595_v18 = vcombine.high %v3733_v6, %v3740_v7  ;;  %v4269_v7 = vld [vmem:[#allocation16 + $0x1c0] sm:$0xff] }
 0x5aa   : > { %v3764_v22 = vrot.slane %v6589_v13, %v8476_v62  ;;  %v3780_v8 = vrot.slane %v6591_v16, %v8476_v62  ;;  %v3796_v23 = vrot.slane %v6593_v17, %v8476_v62  ;;  %v3812_v24 = vrot.slane %v6595_v18, %v8476_v62  ;;  %v4273_v13 = vld [vmem:[#allocation16 + $0x1e0] sm:$0xff]  ;;  %v4270_v16 = vld [vmem:[#allocation16 + $0x1c8] sm:$0xff] }
 0x5ab   : > { %v6684_v17 = vcombine.low %v4269_v7, %v4273_v13  ;;  %v6685_v18 = vcombine.high %v4269_v7, %v4273_v13 }
 0x5ac   : > { %v3829_v25 = vcombine.low %v3764_v22, %v3780_v8  ;;  %v3861_v26 = vcombine.low %v3796_v23, %v3812_v24  ;;  %v3830_v27 = vcombine.high %v3764_v22, %v3780_v8  ;;  %v3862_v11 = vcombine.high %v3796_v23, %v3812_v24  ;;  %v4265_v22 = vld [vmem:[#allocation16 + $0x1a0] sm:$0xff] }
 0x5ad   : > { %v6686_v8 = vcombine.low %v4270_v16, %v4274_v19  ;;  %v6687_v23 = vcombine.high %v4270_v16, %v4274_v19  ;;  %v6677_v24 = vcombine.high %v4261_v21, %v4265_v22  ;;  %5023 = vmatprep.subr.bf16.mxu1 %v6685_v18  ;;  %v4337_v18 = vld [vmem:[#allocation16 + $0x3e0] sm:$0xff]  ;;  %v4334_v19 = vld [vmem:[#allocation16 + $0x3c8] sm:$0xff] }
 0x5ae   : > { %v3837_v31 = vrot.slane %v3829_v25, %v8485_v14  ;;  %v3869_v32 = vrot.slane %v3861_v26, %v8485_v14  ;;  %v3844_v33 = vrot.slane %v3830_v27, %v8485_v14  ;;  %v3876_v34 = vrot.slane %v3862_v11, %v8485_v14  ;;  %v4262_v25 = vld [vmem:[#allocation16 + $0x188] sm:$0xff]  ;;  %v4253_v27 = vld [vmem:[#allocation16 + $0x140] sm:$0xff]  ;;  %5024 = vmatpush1.bf16.msra.mxu1 %v6684_v17 }
 0x5af   : > { %v4266_v26 = vld [vmem:[#allocation16 + $0x1a8] sm:$0xff]  ;;  %5064 = vmatprep.subr.bf16.mxu0 %v6687_v23  ;;  %5025 = vmatprep.subr.bf16.mxu1 %v6677_v24  ;;  %v6668_v42 = vcombine.low %v4253_v27, %v4257_v28  ;;  %v4333_v17 = vld [vmem:[#allocation16 + $0x3c0] sm:$0xff] }
 0x5b0   : > { %v3882_v36 = vcombine.high %v3837_v31, %v3869_v32  ;;  %v3881_v53 = vcombine.low %v3837_v31, %v3869_v32  ;;  %v3883_v37 = vcombine.low %v3844_v33, %v3876_v34  ;;  %v3884_v44 = vcombine.high %v3844_v33, %v3876_v34  ;;  %v4258_v31 = vld [vmem:[#allocation16 + $0x168] sm:$0xff] }
 0x5b1   : > { %v6679_v11 = vcombine.high %v4262_v25, %v4266_v26  ;;  %v6676_v32 = vcombine.low %v4261_v21, %v4265_v22  ;;  %v6678_v33 = vcombine.low %v4262_v25, %v4266_v26  ;;  %v6669_v34 = vcombine.high %v4253_v27, %v4257_v28  ;;  %v4338_v21 = vld [vmem:[#allocation16 + $0x3e8] sm:$0xff]  ;;  %v4325_v25 = vld [vmem:[#allocation16 + $0x380] sm:$0xff] }
 0x5b2   : > { %v7163_v62 = vpack.i.bf16 %v3878_v50, %v3882_v36  ;;  %v7168_v0 = vpack.i.bf16 %v3879_v20, %v3883_v37  ;;  %v7173_v46 = vpack.i.bf16 %v3880_v51, %v3884_v44  ;;  %v6671_v36 = vcombine.high %v4254_v30, %v4258_v31  ;;  %v4246_v37 = vld [vmem:[#allocation16 + $0x108] sm:$0xff]  ;;  %v4329_v26 = vld [vmem:[#allocation16 + $0x3a0] sm:$0xff] }
 0x5b3   : > { %5026 = vmatpush1.bf16.msra.mxu1 %v6676_v32  ;;  %v6749_v23 = vcombine.high %v4333_v17, %v4337_v18  ;;  %v6751_v24 = vcombine.high %v4334_v19, %v4338_v21  ;;  %v4326_v27 = vld [vmem:[#allocation16 + $0x388] sm:$0xff]  ;;  %v6748_v28 = vcombine.low %v4333_v17, %v4337_v18 }
 0x5b4   : > { %7164 = vrot.lane.b32.xlu0 %v7163_v62, %s8024_s18  ;;  %v4249_v62 = vld [vmem:[#allocation16 + $0x120] sm:$0xff]  ;;  %5027 = vmatprep.subr.bf16.mxu1 %v6669_v34 }
 0x5b7   : > { %5028 = vmatpush1.bf16.msra.mxu1 %v6668_v42 }
 0x5b8   : > { %7169 = vrot.lane.b32.xlu0 %v7168_v0, %s8026_s4  ;;  %v6670_v0 = vcombine.low %v4254_v30, %v4258_v31  ;;  %v6750_v30 = vcombine.low %v4334_v19, %v4338_v21  ;;  %v6741_v31 = vcombine.high %v4325_v25, %v4329_v26  ;;  %v4277_v19 = vld [vmem:[#allocation16 + $0x200] sm:$0xff] }
 0x5b9   : > { %v4281_v21 = vld [vmem:[#allocation16 + $0x220] sm:$0xff] }
 0x5bc   : > { %7174 = vrot.lane.b32.xlu0 %v7173_v46, %s8025_s1  ;;  %v6663_v46 = vcombine.high %v4246_v37, %v4250_v41  ;;  %s9038_s1 = sld [smem:[#allocation47_spill]] }
 0x5c2   : > { %s8903_s4 = scalar_lea.hbm %s9038_s1, %s6892_s3 }
 0x626   : > { %v7165_v14 = vpop.permute.xlu0 %7164 }
 0x627   : > { %v7167_v15 = vunpack.i.h.bf16 %v7165_v14  ;;  %v7166_v48 = vunpack.i.l.bf16 %v7165_v14  ;;  %v4237_v14 = vld [vmem:[#allocation16 + $0xc0] sm:$0xff] }
 0x629   : > { %v3909_v20 = vsel %vm2323_vm1, %v3877_v49, %v7167_v15  ;;  %v3914_v52 = vsel %vm2323_vm1, %v3881_v53, %v7166_v48  ;;  %v3956_v49 = vrot.slane %v3951_v43, %v8815_v59  ;;  %v4245_v53 = vld [vmem:[#allocation16 + $0x100] sm:$0xff]  ;;  %v4238_v15 = vld [vmem:[#allocation16 + $0xc8] sm:$0xff] }
 0x62a   : > { %v7170_v12 = vpop.permute.xlu0 %7169  ;;  %v6661_v44 = vcombine.high %v4245_v53, %v4249_v62  ;;  %v4242_v48 = vld [vmem:[#allocation16 + $0xe8] sm:$0xff]  ;;  %v4225_v43 = vld [vmem:[#allocation16 + $0x60] sm:$0xff] }
 0x62b   : > { %v7172_v35 = vunpack.i.h.bf16 %v7170_v12  ;;  %v7171_v50 = vunpack.i.l.bf16 %v7170_v12  ;;  %v4241_v12 = vld [vmem:[#allocation16 + $0xe0] sm:$0xff] }
 0x62c   : > { %5029 = vmatprep.subr.bf16.mxu1 %v6661_v44  ;;  %v4317_v44 = vld [vmem:[#allocation16 + $0x340] sm:$0xff] }
 0x62d   : > { %v3911_v55 = vsel %vm3910_vm3, %v3909_v20, %v7172_v35  ;;  %v3915_v9 = vsel %vm3910_vm3, %v3914_v52, %v7171_v50  ;;  %v6660_v35 = vcombine.low %v4245_v53, %v4249_v62  ;;  %v6662_v50 = vcombine.low %v4246_v37, %v4250_v41  ;;  %v4229_v52 = vld [vmem:[#allocation16 + $0x80] sm:$0xff] }
 0x62e   : > { %v7175_v29 = vpop.permute.xlu0 %7174  ;;  %v6655_v20 = vcombine.high %v4238_v15, %v4242_v48 }
 0x62f   : > { %v7177_v54 = vunpack.i.h.bf16 %v7175_v29  ;;  %v7176_v51 = vunpack.i.l.bf16 %v7175_v29  ;;  %v6653_v29 = vcombine.high %v4237_v14, %v4241_v12  ;;  %5030 = vmatpush1.bf16.msra.mxu1 %v6660_v35  ;;  %v4309_v35 = vld [vmem:[#allocation16 + $0x300] sm:$0xff] }
 0x631   : > { %v3913_v56 = vsel %vm3912_vm4, %v3911_v55, %v7177_v54  ;;  %v3916_v58 = vsel %vm3912_vm4, %v3915_v9, %v7176_v51  ;;  %v4233_v54 = vld [vmem:[#allocation16 + $0xa0] sm:$0xff]  ;;  %v4230_v51 = vld [vmem:[#allocation16 + $0x88] sm:$0xff]  ;;  %v6652_v9 = vcombine.low %v4237_v14, %v4241_v12  ;;  %5031 = vmatprep.subr.bf16.mxu1 %v6653_v29 }
 0x632   : > { %v3917_v38 = vpack.c.bf16 %v3913_v56, %v3913_v56  ;;  %v3918_v40 = vpack.c.bf16 %v3916_v58, %v3916_v58  ;;  %v4234_v55 = vld [vmem:[#allocation16 + $0xa8] sm:$0xff]  ;;  %v6654_v56 = vcombine.low %v4238_v15, %v4242_v48  ;;  %v6645_v58 = vcombine.high %v4229_v52, %v4233_v54 }
 0x633   : > { %5032 = vmatpush1.bf16.msra.mxu1 %v6652_v9  ;;  %v4318_v14 = vld [vmem:[#allocation16 + $0x348] sm:$0xff] }
 0x634   : > { %4155 = vmatprep.mubr.bf16.mxu0 %v3918_v40  ;;  %v4221_v40 = vld [vmem:[#allocation16 + $0x40] sm:$0xff]  ;;  %5033 = vmatprep.subr.bf16.mxu1 %v6645_v58  ;;  %v4322_v48 = vld [vmem:[#allocation16 + $0x368] sm:$0xff] }
 0x635   : > { %4156 = vmatmul.mubr.bf16.vlgmr.msra.gmra.mxu0 %v3917_v38  ;;  %v6647_v38 = vcombine.high %v4230_v51, %v4234_v55  ;;  %v6735_v29 = vcombine.high %v4318_v14, %v4322_v48  ;;  %v4302_v9 = vld [vmem:[#allocation16 + $0x2c8] sm:$0xff] }
 0x636   : > { %5065 = vmatpush1.bf16.msra.mxu0 %v6686_v8 }
 0x637   : > { %5066 = vmatprep.subr.bf16.mxu0 %v6679_v11  ;;  %v4330_v11 = vld [vmem:[#allocation16 + $0x3a8] sm:$0xff] }
 0x638   : > { %v6743_v32 = vcombine.high %v4326_v27, %v4330_v11  ;;  %v6742_v34 = vcombine.low %v4326_v27, %v4330_v11  ;;  %v6692_v27 = vcombine.low %v4277_v19, %v4281_v21 }
 0x63a   : > { %5067 = vmatpush1.bf16.msra.mxu0 %v6678_v33  ;;  %v6740_v33 = vcombine.low %v4325_v25, %v4329_v26  ;;  %v6693_v25 = vcombine.high %v4277_v19, %v4281_v21  ;;  %v4244_v19 = vld [vmem:[#allocation16 + $0xf8] sm:$0xff] }
 0x63b   : > { %5068 = vmatprep.subr.bf16.mxu0 %v6671_v36 }
 0x63e   : > { %5069 = vmatpush1.bf16.msra.mxu0 %v6670_v0 }
 0x63f   : > { %5070 = vmatprep.subr.bf16.mxu0 %v6663_v46  ;;  %v4321_v46 = vld [vmem:[#allocation16 + $0x360] sm:$0xff] }
 0x640   : > { %v6732_v12 = vcombine.low %v4317_v44, %v4321_v46  ;;  %v6733_v15 = vcombine.high %v4317_v44, %v4321_v46  ;;  %v4183_v44 = vld [vmem:[%s9034_s19] sm:$0x3] }
 0x641   : > { %v4197_v46 = vld [vmem:[#allocation14] sm:$0x3] }
 0x642   : > { %5071 = vmatpush1.bf16.msra.mxu0 %v6662_v50  ;;  %v6734_v50 = vcombine.low %v4318_v14, %v4322_v48  ;;  %v4192_v14 = vrot.slane %v4183_v44, %v8821_v47 }
 0x643   : > { %5072 = vmatprep.subr.bf16.mxu0 %v6655_v20  ;;  %v4310_v20 = vld [vmem:[#allocation16 + $0x308] sm:$0xff] }
 0x646   : > { %5073 = vmatpush1.bf16.msra.mxu0 %v6654_v56  ;;  %v4306_v56 = vld [vmem:[#allocation16 + $0x2e8] sm:$0xff] }
 0x647   : > { %5074 = vmatprep.subr.bf16.mxu0 %v6647_v38 }
 0x6f5   : > { %v4157_v61 = vpop.f32.mrf.mxu0 }
 0x6f6   : > { %v4158_v45 = vadd.f32 %v4157_v61, %v3956_v49  ;;  %v4222_v49 = vld [vmem:[#allocation16 + $0x48] sm:$0xff]  ;;  %v6644_v61 = vcombine.low %v4229_v52, %v4233_v54  ;;  %v4301_v54 = vld [vmem:[#allocation16 + $0x2c0] sm:$0xff] }
 0x6f7   : > { %v4159_v63 = vpop.f32.mrf.mxu0  ;;  %v4314_v52 = vld [vmem:[#allocation16 + $0x328] sm:$0xff] }
 0x6f8   : > { %v4160_v1 = vadd.f32 %v4159_v63, %v3960_v60  ;;  %v8826_v3 = vadd.f32 %v7598_v2, %v4158_v45  ;;  %v4226_v60 = vld [vmem:[#allocation16 + $0x68] sm:$0xff]  ;;  %v6646_v45 = vcombine.low %v4230_v51, %v4234_v55  ;;  %v6637_v63 = vcombine.high %v4221_v40, %v4225_v43  ;;  %v4217_v2 = vld [vmem:[#allocation16 + $0x20] sm:$0xff]  ;;  %5034 = vmatpush1.bf16.msra.mxu1 %v6644_v61 }
 0x6f9   : > { %v4161_v10 = vpop.f32.mrf.mxu0  ;;  %v6638_v7 = vcombine.low %v4222_v49, %v4226_v60  ;;  %v6727_v51 = vcombine.high %v4310_v20, %v4314_v52  ;;  %v4305_v55 = vld [vmem:[#allocation16 + $0x2e0] sm:$0xff]  ;;  %v6726_v38 = vcombine.low %v4310_v20, %v4314_v52  ;;  %v4294_v61 = vld [vmem:[#allocation16 + $0x288] sm:$0xff] }
 0x6fa   : > { %v8829_v39 = vadd.f32 %v7599_v4, %v4160_v1  ;;  %v6639_v1 = vcombine.high %v4222_v49, %v4226_v60  ;;  %v4213_v10 = vld [vmem:[#allocation16] sm:$0xff]  ;;  %v4214_v4 = vld [vmem:[#allocation16 + $0x8] sm:$0xff]  ;;  %5075 = vmatpush1.bf16.msra.mxu0 %v6646_v45  ;;  %5035 = vmatprep.subr.bf16.mxu1 %v6637_v63  ;;  %v6716_v63 = vcombine.low %v4301_v54, %v4305_v55 }
 0x6fb   : > { %v4162_v5 = vpop.f32.mrf.mxu0  ;;  %v6629_v13 = vcombine.high %v4213_v10, %v4217_v2  ;;  %v6628_v22 = vcombine.low %v4213_v10, %v4217_v2  ;;  %v4293_v49 = vld [vmem:[#allocation16 + $0x280] sm:$0xff]  ;;  %v4298_v45 = vld [vmem:[#allocation16 + $0x2a8] sm:$0xff] }
 0x6fc   : > { %v4166_v6 = vadd.f32 %v8829_v39, %v8826_v3  ;;  %v4218_v5 = vld [vmem:[#allocation16 + $0x28] sm:$0xff]  ;;  %5076 = vmatprep.subr.bf16.mxu0 %v6639_v1  ;;  %v4297_v60 = vld [vmem:[#allocation16 + $0x2a0] sm:$0xff]  ;;  %v6718_v1 = vcombine.low %v4302_v9, %v4306_v56  ;;  %v6711_v2 = vcombine.high %v4294_v61, %v4298_v45 }
 0x6fd   : > { %v6631_v16 = vcombine.high %v4214_v4, %v4218_v5  ;;  %v6630_v8 = vcombine.low %v4214_v4, %v4218_v5  ;;  %v6709_v10 = vcombine.high %v4293_v49, %v4297_v60  ;;  %v4285_v4 = vld [vmem:[#allocation16 + $0x240] sm:$0xff] }
 0x6fe   : > { %4167 = vadd.xlane.f32.xlu0 %v4166_v6  ;;  %v6636_v6 = vcombine.low %v4221_v40, %v4225_v43  ;;  %5077 = vmatpush1.bf16.msra.mxu0 %v6638_v7  ;;  %v6717_v40 = vcombine.high %v4301_v54, %v4305_v55  ;;  %v6719_v43 = vcombine.high %v4302_v9, %v4306_v56  ;;  %v4289_v5 = vld [vmem:[#allocation16 + $0x260] sm:$0xff]  ;;  %v4290_v7 = vld [vmem:[#allocation16 + $0x268] sm:$0xff]  ;;  %v4263_v54 = vld [vmem:[#allocation16 + $0x190] sm:$0xff] }
 0x6ff   : > { %5078 = vmatprep.subr.bf16.mxu0 %v6631_v16  ;;  %v6710_v16 = vcombine.low %v4294_v61, %v4298_v45  ;;  %v6701_v17 = vcombine.high %v4285_v4, %v4289_v5  ;;  %v4264_v55 = vld [vmem:[#allocation16 + $0x198] sm:$0xff] }
 0x700   : > { %5036 = vmatpush1.bf16.msra.mxu1 %v6636_v6  ;;  %v4286_v6 = vld [vmem:[#allocation16 + $0x248] sm:$0xff]  ;;  %v4268_v9 = vld [vmem:[#allocation16 + $0x1b8] sm:$0xff] }
 0x701   : > { %5037 = vmatprep.subr.bf16.mxu1 %v6629_v13  ;;  %v6708_v13 = vcombine.low %v4293_v49, %v4297_v60  ;;  %v6703_v18 = vcombine.high %v4286_v6, %v4290_v7  ;;  %v4260_v49 = vld [vmem:[#allocation16 + $0x178] sm:$0xff]  ;;  %v6682_v61 = vcombine.low %v4264_v55, %v4268_v9 }
 0x702   : > { %5079 = vmatpush1.bf16.msra.mxu0 %v6630_v8  ;;  %v4282_v8 = vld [vmem:[#allocation16 + $0x228] sm:$0xff] }
 0x703   : > { %5080 = vmatprep.subr.bf16.mxu0 %v6751_v24  ;;  %v6702_v24 = vcombine.low %v4286_v6, %v4290_v7 }
 0x704   : > { %5038 = vmatpush1.bf16.msra.mxu1 %v6628_v22  ;;  %v4278_v22 = vld [vmem:[#allocation16 + $0x208] sm:$0xff] }
 0x705   : > { %5039 = vmatprep.subr.bf16.mxu1 %v6749_v23  ;;  %v6700_v23 = vcombine.low %v4285_v4, %v4289_v5  ;;  %v6695_v26 = vcombine.high %v4278_v22, %v4282_v8  ;;  %v6694_v11 = vcombine.low %v4278_v22, %v4282_v8  ;;  %v4252_v4 = vld [vmem:[#allocation16 + $0x138] sm:$0xff] }
 0x706   : > { %5081 = vmatpush2.bf16.msra.mxu0 %v6750_v30  ;;  %v4275_v30 = vld [vmem:[#allocation16 + $0x1f0] sm:$0xff] }
 0x707   : > { %5082 = vmatprep.subr.bf16.mxu0 %v6743_v32 }
 0x708   : > { %5040 = vmatpush2.bf16.msra.mxu1 %v6748_v28  ;;  %v4271_v28 = vld [vmem:[#allocation16 + $0x1d0] sm:$0xff] }
 0x709   : > { %5041 = vmatprep.subr.bf16.mxu1 %v6741_v31  ;;  %v4272_v31 = vld [vmem:[#allocation16 + $0x1d8] sm:$0xff]  ;;  %v6688_v32 = vcombine.low %v4271_v28, %v4275_v30 }
 0x70a   : > { %5083 = vmatpush2.bf16.msra.mxu0 %v6742_v34  ;;  %v4276_v34 = vld [vmem:[#allocation16 + $0x1f8] sm:$0xff] }
 0x70b   : > { %5084 = vmatprep.subr.bf16.mxu0 %v6735_v29 }
 0x70c   : > { %5042 = vmatpush2.bf16.msra.mxu1 %v6740_v33  ;;  %v6689_v33 = vcombine.high %v4271_v28, %v4275_v30 }
 0x70d   : > { %5043 = vmatprep.subr.bf16.mxu1 %v6733_v15 }
 0x70e   : > { %5085 = vmatpush2.bf16.msra.mxu0 %v6734_v50  ;;  %v4202_v50 = vrot.slane %v4197_v46, %v8815_v59 }
 0x70f   : > { %5086 = vmatprep.subr.bf16.mxu0 %v6727_v51  ;;  %v4267_v51 = vld [vmem:[#allocation16 + $0x1b0] sm:$0xff] }
 0x710   : > { %5044 = vmatpush2.bf16.msra.mxu1 %v6732_v12  ;;  %v4188_v12 = vrot.slane %v4183_v44, %v8815_v59  ;;  %v6680_v60 = vcombine.low %v4263_v54, %v4267_v51  ;;  %v4215_v44 = vld [vmem:[#allocation16 + $0x10] sm:$0xff] }
 0x712   : > { %5087 = vmatpush2.bf16.msra.mxu0 %v6726_v38  ;;  %v6683_v38 = vcombine.high %v4264_v55, %v4268_v9 }
 0x713   : > { %5088 = vmatprep.subr.bf16.mxu0 %v6719_v43  ;;  %v4256_v43 = vld [vmem:[#allocation16 + $0x158] sm:$0xff] }
 0x714   : > { %v6674_v6 = vcombine.low %v4256_v43, %v4260_v49 }
 0x716   : > { %5089 = vmatpush2.bf16.msra.mxu0 %v6718_v1  ;;  %v4247_v1 = vld [vmem:[#allocation16 + $0x110] sm:$0xff] }
 0x717   : > { %5090 = vmatprep.subr.bf16.mxu0 %v6711_v2  ;;  %v4248_v2 = vld [vmem:[#allocation16 + $0x118] sm:$0xff] }
 0x718   : > { %v6666_v22 = vcombine.low %v4248_v2, %v4252_v4 }
 0x71a   : > { %5091 = vmatpush2.bf16.msra.mxu0 %v6710_v16  ;;  %v4239_v16 = vld [vmem:[#allocation16 + $0xd0] sm:$0xff] }
 0x71b   : > { %5092 = vmatprep.subr.bf16.mxu0 %v6703_v18  ;;  %v4240_v18 = vld [vmem:[#allocation16 + $0xd8] sm:$0xff] }
 0x71c   : > { %v6658_v28 = vcombine.low %v4240_v18, %v4244_v19 }
 0x71e   : > { %5093 = vmatpush2.bf16.msra.mxu0 %v6702_v24  ;;  %v4231_v24 = vld [vmem:[#allocation16 + $0x90] sm:$0xff] }
 0x71f   : > { %5094 = vmatprep.subr.bf16.mxu0 %v6695_v26  ;;  %v4232_v26 = vld [vmem:[#allocation16 + $0x98] sm:$0xff] }
 0x722   : > { %5095 = vmatpush2.bf16.msra.mxu0 %v6694_v11 }
 0x787   : > { %v4168_v36 = vpop.xlane.xlu0 %4167 }
 0x788   : > { %v4170_v53 = vmul.f32 0.00390625, %v4168_v36  ;;  %v6690_v36 = vcombine.low %v4272_v31, %v4276_v34 }
 0x78a   : > { %v8834_v62 = vsub.f32 %v8826_v3, %v4170_v53  ;;  %v8837_v37 = vsub.f32 %v8829_v39, %v4170_v53  ;;  %v4313_v3 = vld [vmem:[#allocation16 + $0x320] sm:$0xff]  ;;  %v6691_v53 = vcombine.high %v4272_v31, %v4276_v34  ;;  %v4224_v34 = vld [vmem:[#allocation16 + $0x58] sm:$0xff] }
 0x78b   : > { %v6725_v39 = vcombine.high %v4309_v35, %v4313_v3  ;;  %v6724_v58 = vcombine.low %v4309_v35, %v4313_v3  ;;  %v4206_v35 = vrot.slane %v4197_v46, %v8821_v47  ;;  %v4219_v46 = vld [vmem:[#allocation16 + $0x30] sm:$0xff] }
 0x78c   : > { %v4173_v41 = vmul.f32 %v8834_v62, %v8834_v62  ;;  %v4174_v42 = vmul.f32 %v8837_v37, %v8837_v37  ;;  %5146 = vmatprep.subr.bf16.mxu0 %v6691_v53 }
 0x78d   : > { %5045 = vmatprep.subr.bf16.mxu1 %v6725_v39 }
 0x78e   : > { %v4175_v0 = vadd.f32 %v4174_v42, %v4173_v41  ;;  %5046 = vmatpush2.bf16.msra.mxu1 %v6724_v58  ;;  %v6681_v58 = vcombine.high %v4263_v54, %v4267_v51  ;;  %v4340_v54 = vld [vmem:[#allocation16 + $0x3f8] sm:$0xff]  ;;  %v6632_v51 = vcombine.low %v4215_v44, %v4219_v46 }
 0x78f   : > { %5047 = vmatprep.subr.bf16.mxu1 %v6717_v40  ;;  %v4259_v40 = vld [vmem:[#allocation16 + $0x170] sm:$0xff] }
 0x790   : > { %4176 = vadd.xlane.f32.xlu1 %v4175_v0 }
 0x792   : > { %5048 = vmatpush2.bf16.msra.mxu1 %v6716_v63  ;;  %v6675_v63 = vcombine.high %v4256_v43, %v4260_v49 }
 0x793   : > { %5049 = vmatprep.subr.bf16.mxu1 %v6709_v10  ;;  %v4251_v10 = vld [vmem:[#allocation16 + $0x130] sm:$0xff] }
 0x794   : > { %v6665_v7 = vcombine.high %v4247_v1, %v4251_v10  ;;  %v6664_v21 = vcombine.low %v4247_v1, %v4251_v10  ;;  %v4320_v1 = vld [vmem:[#allocation16 + $0x358] sm:$0xff] }
 0x795   : > { %v4324_v10 = vld [vmem:[#allocation16 + $0x378] sm:$0xff] }
 0x796   : > { %5050 = vmatpush2.bf16.msra.mxu1 %v6708_v13  ;;  %v6667_v13 = vcombine.high %v4248_v2, %v4252_v4 }
 0x797   : > { %5051 = vmatprep.subr.bf16.mxu1 %v6701_v17  ;;  %v4243_v17 = vld [vmem:[#allocation16 + $0xf0] sm:$0xff] }
 0x798   : > { %v6657_v8 = vcombine.high %v4239_v16, %v4243_v17  ;;  %v6656_v11 = vcombine.low %v4239_v16, %v4243_v17  ;;  %v4312_v16 = vld [vmem:[#allocation16 + $0x318] sm:$0xff] }
 0x799   : > { %v4316_v17 = vld [vmem:[#allocation16 + $0x338] sm:$0xff] }
 0x79a   : > { %5052 = vmatpush2.bf16.msra.mxu1 %v6700_v23  ;;  %v6659_v23 = vcombine.high %v4240_v18, %v4244_v19  ;;  %v6738_v19 = vcombine.low %v4320_v1, %v4324_v10 }
 0x79b   : > { %5053 = vmatprep.subr.bf16.mxu1 %v6693_v25  ;;  %v4235_v25 = vld [vmem:[#allocation16 + $0xb0] sm:$0xff] }
 0x79c   : > { %v6649_v30 = vcombine.high %v4231_v24, %v4235_v25  ;;  %v6648_v53 = vcombine.low %v4231_v24, %v4235_v25  ;;  %v4304_v24 = vld [vmem:[#allocation16 + $0x2d8] sm:$0xff] }
 0x79d   : > { %v4308_v25 = vld [vmem:[#allocation16 + $0x2f8] sm:$0xff] }
 0x79e   : > { %5054 = vmatpush2.bf16.msra.mxu1 %v6692_v27  ;;  %v4236_v27 = vld [vmem:[#allocation16 + $0xb8] sm:$0xff] }
 0x79f   : > { %5105 = vmatprep.subr.bf16.mxu1 %v6689_v33  ;;  %v6651_v31 = vcombine.high %v4232_v26, %v4236_v27  ;;  %v4227_v33 = vld [vmem:[#allocation16 + $0x70] sm:$0xff] }
 0x819   : > { %v4177_v41 = vpop.xlane.xlu1 %4176 }
 0x81a   : > { %v4178_v42 = vmul.f32 0.00390625, %v4177_v41  ;;  %v6650_v41 = vcombine.low %v4232_v26, %v4236_v27  ;;  %v6730_v27 = vcombine.low %v4312_v16, %v4316_v17 }
 0x81c   : > { %v4179_v0 = vadd.f32 1e-05, %v4178_v42 }
 0x81e   : > { %7594 = vrsqrt.f32 %v4179_v0 }
 0x82b   : > { %v7595_v15 = vpop.eup %7594 }
 0x82c   : > { %v4182_v48 = vmul.f32 %v7595_v15, %v8837_v37  ;;  %v4181_v3 = vmul.f32 %v7595_v15, %v8834_v62  ;;  %v4255_v62 = vld [vmem:[#allocation16 + $0x150] sm:$0xff] }
 0x82d   : > { %v6673_v45 = vcombine.high %v4255_v62, %v4259_v40  ;;  %v6672_v5 = vcombine.low %v4255_v62, %v4259_v40  ;;  %v4327_v62 = vld [vmem:[#allocation16 + $0x390] sm:$0xff]  ;;  %v4332_v40 = vld [vmem:[#allocation16 + $0x3b8] sm:$0xff] }
 0x82e   : > { %v4196_v29 = vmul.f32 %v4192_v14, %v4182_v48  ;;  %v4195_v39 = vmul.f32 %v4188_v12, %v4181_v3  ;;  %v4216_v14 = vld [vmem:[#allocation16 + $0x18] sm:$0xff] }
 0x82f   : > { %v4220_v12 = vld [vmem:[#allocation16 + $0x38] sm:$0xff] }
 0x830   : > { %v8852_v20 = vadd.f32 %v4206_v35, %v4196_v29  ;;  %v8854_v52 = vadd.f32 %v4202_v50, %v4195_v39  ;;  %v6633_v35 = vcombine.high %v4215_v44, %v4219_v46  ;;  %v6635_v3 = vcombine.high %v4216_v14, %v4220_v12  ;;  %v4335_v50 = vld [vmem:[#allocation16 + $0x3d0] sm:$0xff]  ;;  %v4336_v39 = vld [vmem:[#allocation16 + $0x3d8] sm:$0xff] }
 0x831   : > { %v4339_v29 = vld [vmem:[#allocation16 + $0x3f0] sm:$0xff]  ;;  %v6634_v55 = vcombine.low %v4216_v14, %v4220_v12  ;;  %v6754_v49 = vcombine.low %v4336_v39, %v4340_v54  ;;  %v4288_v44 = vld [vmem:[#allocation16 + $0x258] sm:$0xff] }
 0x832   : > { %v4212_v56 = vpack.c.bf16 %v8852_v20, %v8852_v20  ;;  %v8860_v37 = vpack.c.bf16 %v8854_v52, %v8854_v52  ;;  %v6753_v9 = vcombine.high %v4335_v50, %v4339_v29  ;;  %v6752_v43 = vcombine.low %v4335_v50, %v4339_v29  ;;  %v4292_v46 = vld [vmem:[#allocation16 + $0x278] sm:$0xff] }
 0x833   : > { %v4280_v50 = vld [vmem:[#allocation16 + $0x218] sm:$0xff] }
 0x834   : > { %5055 = vmatprep.mubr.bf16.mxu1 %v4212_v56  ;;  %5096 = vmatprep.mubr.bf16.mxu0 %v4212_v56  ;;  %v4284_v29 = vld [vmem:[#allocation16 + $0x238] sm:$0xff] }
 0x835   : > { %5056 = vmatmul.mubr.bf16.vlgmr.msra.gmra.mxu1 %v8860_v37  ;;  %5097 = vmatmul.mubr.bf16.vlgmr.msra.gmra.mxu0 %v8860_v37 }
 0x836   : > { %5106 = vmatpush1.bf16.msra.mxu1 %v6688_v32  ;;  %5147 = vmatpush1.bf16.msra.mxu0 %v6690_v36  ;;  %v4223_v32 = vld [vmem:[#allocation16 + $0x50] sm:$0xff]  ;;  %v4228_v36 = vld [vmem:[#allocation16 + $0x78] sm:$0xff] }
 0x837   : > { %5137 = vmatprep.mubr.bf16.mxu1 %v4212_v56  ;;  %5178 = vmatprep.mubr.bf16.mxu0 %v4212_v56  ;;  %v6641_v42 = vcombine.high %v4223_v32, %v4227_v33  ;;  %v6643_v0 = vcombine.high %v4224_v34, %v4228_v36  ;;  %v6640_v15 = vcombine.low %v4223_v32, %v4227_v33  ;;  %v4296_v32 = vld [vmem:[#allocation16 + $0x298] sm:$0xff] }
 0x838   : > { %5107 = vmatprep.subr.bf16.mxu1 %v6681_v58  ;;  %5148 = vmatprep.subr.bf16.mxu0 %v6683_v38  ;;  %v6642_v48 = vcombine.low %v4224_v34, %v4228_v36  ;;  %v6755_v56 = vcombine.high %v4336_v39, %v4340_v54  ;;  %v4331_v58 = vld [vmem:[#allocation16 + $0x3b0] sm:$0xff]  ;;  %v4328_v38 = vld [vmem:[#allocation16 + $0x398] sm:$0xff]  ;;  %v6722_v36 = vcombine.low %v4304_v24, %v4308_v25 }
 0x839   : > { %v6744_v2 = vcombine.low %v4327_v62, %v4331_v58  ;;  %v6746_v4 = vcombine.low %v4328_v38, %v4332_v40  ;;  %v4300_v33 = vld [vmem:[#allocation16 + $0x2b8] sm:$0xff]  ;;  %v6706_v54 = vcombine.low %v4288_v44, %v4292_v46 }
 0x83a   : > { %5108 = vmatpush1.bf16.msra.mxu1 %v6680_v60  ;;  %5149 = vmatpush1.bf16.msra.mxu0 %v6682_v61  ;;  %v6745_v60 = vcombine.high %v4327_v62, %v4331_v58  ;;  %v6747_v61 = vcombine.high %v4328_v38, %v4332_v40  ;;  %v6714_v12 = vcombine.low %v4296_v32, %v4300_v33  ;;  %v7372_v62 = vld [vmem:[#allocation17 + $0x74] ss:$8 sps:$4 sm:$0xff]   ;;  %v7370_v38 = vld [vmem:[#allocation17 + $0x70] ss:$8 sps:$4 sm:$0xff]  }
 0x83b   : > { %5109 = vmatprep.subr.bf16.mxu1 %v6673_v45  ;;  %5150 = vmatprep.subr.bf16.mxu0 %v6675_v63  ;;  %v4319_v45 = vld [vmem:[#allocation16 + $0x350] sm:$0xff] }
 0x83c   : > { %v4323_v63 = vld [vmem:[#allocation16 + $0x370] sm:$0xff] }
 0x83d   : > { %v6736_v18 = vcombine.low %v4319_v45, %v4323_v63  ;;  %v7375_v58 = vld [vmem:[#allocation17 + $0x174] ss:$8 sps:$4 sm:$0xff]   ;;  %v7373_v40 = vld [vmem:[#allocation17 + $0x170] ss:$8 sps:$4 sm:$0xff]  }
 0x83e   : > { %5110 = vmatpush1.bf16.msra.mxu1 %v6672_v5  ;;  %5151 = vmatpush1.bf16.msra.mxu0 %v6674_v6  ;;  %v6737_v5 = vcombine.high %v4319_v45, %v4323_v63  ;;  %v6739_v6 = vcombine.high %v4320_v1, %v4324_v10  ;;  %v7384_v45 = vld [vmem:[#allocation17 + $0x54] ss:$8 sps:$4 sm:$0xff]   ;;  %v7382_v1 = vld [vmem:[#allocation17 + $0x50] ss:$8 sps:$4 sm:$0xff]  }
 0x83f   : > { %5111 = vmatprep.subr.bf16.mxu1 %v6665_v7  ;;  %5152 = vmatprep.subr.bf16.mxu0 %v6667_v13  ;;  %v4311_v7 = vld [vmem:[#allocation16 + $0x310] sm:$0xff] }
 0x840   : > { %v4315_v13 = vld [vmem:[#allocation16 + $0x330] sm:$0xff] }
 0x841   : > { %v6728_v26 = vcombine.low %v4311_v7, %v4315_v13  ;;  %v7387_v63 = vld [vmem:[#allocation17 + $0x154] ss:$8 sps:$4 sm:$0xff]   ;;  %v7385_v10 = vld [vmem:[#allocation17 + $0x150] ss:$8 sps:$4 sm:$0xff]  }
 0x842   : > { %5112 = vmatpush1.bf16.msra.mxu1 %v6664_v21  ;;  %5153 = vmatpush1.bf16.msra.mxu0 %v6666_v22  ;;  %v6729_v21 = vcombine.high %v4311_v7, %v4315_v13  ;;  %v6731_v22 = vcombine.high %v4312_v16, %v4316_v17  ;;  %v7399_v7 = vld [vmem:[#allocation17 + $0x134] ss:$8 sps:$4 sm:$0xff]   ;;  %v7394_v13 = vld [vmem:[#allocation17 + $0x30] ss:$8 sps:$4 sm:$0xff]   ;;  %v7402_v17 = vld [vmem:[#allocation17 + $0x24] ss:$8 sps:$4 sm:$0xff]  }
 0x843   : > { %5113 = vmatprep.subr.bf16.mxu1 %v6657_v8  ;;  %5154 = vmatprep.subr.bf16.mxu0 %v6659_v23  ;;  %v4303_v8 = vld [vmem:[#allocation16 + $0x2d0] sm:$0xff] }
 0x844   : > { %v4307_v23 = vld [vmem:[#allocation16 + $0x2f0] sm:$0xff] }
 0x845   : > { %v6720_v34 = vcombine.low %v4303_v8, %v4307_v23  ;;  %v7397_v16 = vld [vmem:[#allocation17 + $0x130] ss:$8 sps:$4 sm:$0xff]  }
 0x846   : > { %5114 = vmatpush1.bf16.msra.mxu1 %v6656_v11  ;;  %5155 = vmatpush1.bf16.msra.mxu0 %v6658_v28  ;;  %v6721_v11 = vcombine.high %v4303_v8, %v4307_v23  ;;  %v6723_v28 = vcombine.high %v4304_v24, %v4308_v25  ;;  %v7411_v8 = vld [vmem:[#allocation17 + $0x114] ss:$8 sps:$4 sm:$0xff]   ;;  %v7406_v23 = vld [vmem:[#allocation17 + $0x10] ss:$8 sps:$4 sm:$0xff]   ;;  %v7414_v25 = vld [vmem:[#allocation17 + $0x4] ss:$8 sps:$4 sm:$0xff]  }
 0x847   : > { %5115 = vmatprep.subr.bf16.mxu1 %v6649_v30  ;;  %5156 = vmatprep.subr.bf16.mxu0 %v6651_v31  ;;  %v4295_v30 = vld [vmem:[#allocation16 + $0x290] sm:$0xff] }
 0x848   : > { %v4299_v31 = vld [vmem:[#allocation16 + $0x2b0] sm:$0xff] }
 0x849   : > { %v6712_v14 = vcombine.low %v4295_v30, %v4299_v31  ;;  %v7409_v24 = vld [vmem:[#allocation17 + $0x110] ss:$8 sps:$4 sm:$0xff]  }
 0x84a   : > { %5116 = vmatpush1.bf16.msra.mxu1 %v6648_v53  ;;  %5157 = vmatpush1.bf16.msra.mxu0 %v6650_v41  ;;  %v6713_v53 = vcombine.high %v4295_v30, %v4299_v31  ;;  %v6715_v41 = vcombine.high %v4296_v32, %v4300_v33  ;;  %v7423_v30 = vld [vmem:[#allocation17 + $0x1f4] ss:$8 sps:$4 sm:$0xff]   ;;  %v7418_v31 = vld [vmem:[#allocation17 + $0xf0] ss:$8 sps:$4 sm:$0xff]   ;;  %v7426_v33 = vld [vmem:[#allocation17 + $0xe4] ss:$8 sps:$4 sm:$0xff]  }
 0x84b   : > { %5117 = vmatprep.subr.bf16.mxu1 %v6641_v42  ;;  %5158 = vmatprep.subr.bf16.mxu0 %v6643_v0  ;;  %v4287_v42 = vld [vmem:[#allocation16 + $0x250] sm:$0xff] }
 0x84c   : > { %v4291_v0 = vld [vmem:[#allocation16 + $0x270] sm:$0xff] }
 0x84d   : > { %v6704_v39 = vcombine.low %v4287_v42, %v4291_v0  ;;  %v7421_v32 = vld [vmem:[#allocation17 + $0x1f0] ss:$8 sps:$4 sm:$0xff]  }
 0x84e   : > { %5118 = vmatpush1.bf16.msra.mxu1 %v6640_v15  ;;  %5159 = vmatpush1.bf16.msra.mxu0 %v6642_v48  ;;  %v6705_v15 = vcombine.high %v4287_v42, %v4291_v0  ;;  %v6707_v48 = vcombine.high %v4288_v44, %v4292_v46  ;;  %v7435_v42 = vld [vmem:[#allocation17 + $0x1d4] ss:$8 sps:$4 sm:$0xff]   ;;  %v7430_v0 = vld [vmem:[#allocation17 + $0xd0] ss:$8 sps:$4 sm:$0xff]   ;;  %v7438_v46 = vld [vmem:[#allocation17 + $0xc4] ss:$8 sps:$4 sm:$0xff]  }
 0x84f   : > { %5119 = vmatprep.subr.bf16.mxu1 %v6633_v35  ;;  %5160 = vmatprep.subr.bf16.mxu0 %v6635_v3  ;;  %v4279_v35 = vld [vmem:[#allocation16 + $0x210] sm:$0xff] }
 0x850   : > { %v4283_v3 = vld [vmem:[#allocation16 + $0x230] sm:$0xff] }
 0x851   : > { %v7433_v44 = vld [vmem:[#allocation17 + $0x1d0] ss:$8 sps:$4 sm:$0xff]  }
 0x852   : > { %5120 = vmatpush1.bf16.msra.mxu1 %v6632_v51  ;;  %5161 = vmatpush1.bf16.msra.mxu0 %v6634_v55  ;;  %v6697_v51 = vcombine.high %v4279_v35, %v4283_v3  ;;  %v6699_v55 = vcombine.high %v4280_v50, %v4284_v29 }
 0x853   : > { %5121 = vmatprep.subr.bf16.mxu1 %v6753_v9  ;;  %5162 = vmatprep.subr.bf16.mxu0 %v6755_v56  ;;  %v6696_v9 = vcombine.low %v4279_v35, %v4283_v3  ;;  %v6698_v56 = vcombine.low %v4280_v50, %v4284_v29  ;;  %v7447_v35 = vld [vmem:[#allocation17 + $0x1b4] ss:$8 sps:$4 sm:$0xff]   ;;  %v7442_v3 = vld [vmem:[#allocation17 + $0xb0] ss:$8 sps:$4 sm:$0xff]   ;;  %v7450_v29 = vld [vmem:[#allocation17 + $0xa4] ss:$8 sps:$4 sm:$0xff]  }
 0x854   : > { %v7445_v50 = vld [vmem:[#allocation17 + $0x1b0] ss:$8 sps:$4 sm:$0xff]  }
 0x856   : > { %5122 = vmatpush2.bf16.msra.mxu1 %v6752_v43  ;;  %5163 = vmatpush2.bf16.msra.mxu0 %v6754_v49  ;;  %v7378_v43 = vld [vmem:[#allocation17 + $0x64] ss:$8 sps:$4 sm:$0xff]  }
 0x857   : > { %5123 = vmatprep.subr.bf16.mxu1 %v6745_v60  ;;  %5164 = vmatprep.subr.bf16.mxu0 %v6747_v61  ;;  %v7381_v49 = vld [vmem:[#allocation17 + $0x164] ss:$8 sps:$4 sm:$0xff]   ;;  %v7376_v60 = vld [vmem:[#allocation17 + $0x60] ss:$8 sps:$4 sm:$0xff]  }
 0x858   : > { %v7379_v61 = vld [vmem:[#allocation17 + $0x160] ss:$8 sps:$4 sm:$0xff]  }
 0x85a   : > { %5124 = vmatpush2.bf16.msra.mxu1 %v6744_v2  ;;  %5165 = vmatpush2.bf16.msra.mxu0 %v6746_v4  ;;  %v7390_v2 = vld [vmem:[#allocation17 + $0x44] ss:$8 sps:$4 sm:$0xff]  }
 0x85b   : > { %5125 = vmatprep.subr.bf16.mxu1 %v6737_v5  ;;  %5166 = vmatprep.subr.bf16.mxu0 %v6739_v6  ;;  %v7393_v4 = vld [vmem:[#allocation17 + $0x144] ss:$8 sps:$4 sm:$0xff]   ;;  %v7388_v5 = vld [vmem:[#allocation17 + $0x40] ss:$8 sps:$4 sm:$0xff]   ;;  %v7396_v6 = vld [vmem:[#allocation17 + $0x34] ss:$8 sps:$4 sm:$0xff]  }
 0x85e   : > { %5126 = vmatpush2.bf16.msra.mxu1 %v6736_v18  ;;  %5167 = vmatpush2.bf16.msra.mxu0 %v6738_v19  ;;  %v7405_v18 = vld [vmem:[#allocation17 + $0x124] ss:$8 sps:$4 sm:$0xff]   ;;  %v7400_v19 = vld [vmem:[#allocation17 + $0x20] ss:$8 sps:$4 sm:$0xff]  }
 0x85f   : > { %5127 = vmatprep.subr.bf16.mxu1 %v6729_v21  ;;  %5168 = vmatprep.subr.bf16.mxu0 %v6731_v22  ;;  %v7403_v21 = vld [vmem:[#allocation17 + $0x120] ss:$8 sps:$4 sm:$0xff]   ;;  %v7408_v22 = vld [vmem:[#allocation17 + $0x14] ss:$8 sps:$4 sm:$0xff]  }
 0x862   : > { %5128 = vmatpush2.bf16.msra.mxu1 %v6728_v26  ;;  %5169 = vmatpush2.bf16.msra.mxu0 %v6730_v27  ;;  %v7417_v26 = vld [vmem:[#allocation17 + $0x104] ss:$8 sps:$4 sm:$0xff]   ;;  %v7412_v27 = vld [vmem:[#allocation17] ss:$8 sps:$4 sm:$0xff]  }
 0x863   : > { %5129 = vmatprep.subr.bf16.mxu1 %v6721_v11  ;;  %5170 = vmatprep.subr.bf16.mxu0 %v6723_v28  ;;  %v7415_v11 = vld [vmem:[#allocation17 + $0x100] ss:$8 sps:$4 sm:$0xff]   ;;  %v7420_v28 = vld [vmem:[#allocation17 + $0xf4] ss:$8 sps:$4 sm:$0xff]  }
 0x866   : > { %5130 = vmatpush2.bf16.msra.mxu1 %v6720_v34  ;;  %5171 = vmatpush2.bf16.msra.mxu0 %v6722_v36  ;;  %v7429_v34 = vld [vmem:[#allocation17 + $0x1e4] ss:$8 sps:$4 sm:$0xff]   ;;  %v7424_v36 = vld [vmem:[#allocation17 + $0xe0] ss:$8 sps:$4 sm:$0xff]  }
 0x867   : > { %5131 = vmatprep.subr.bf16.mxu1 %v6713_v53  ;;  %5172 = vmatprep.subr.bf16.mxu0 %v6715_v41  ;;  %v7427_v53 = vld [vmem:[#allocation17 + $0x1e0] ss:$8 sps:$4 sm:$0xff]   ;;  %v7432_v41 = vld [vmem:[#allocation17 + $0xd4] ss:$8 sps:$4 sm:$0xff]  }
 0x86a   : > { %5132 = vmatpush2.bf16.msra.mxu1 %v6712_v14  ;;  %5173 = vmatpush2.bf16.msra.mxu0 %v6714_v12  ;;  %v7441_v14 = vld [vmem:[#allocation17 + $0x1c4] ss:$8 sps:$4 sm:$0xff]   ;;  %v7436_v12 = vld [vmem:[#allocation17 + $0xc0] ss:$8 sps:$4 sm:$0xff]  }
 0x86b   : > { %5133 = vmatprep.subr.bf16.mxu1 %v6705_v15  ;;  %5174 = vmatprep.subr.bf16.mxu0 %v6707_v48  ;;  %v7439_v15 = vld [vmem:[#allocation17 + $0x1c0] ss:$8 sps:$4 sm:$0xff]   ;;  %v7444_v48 = vld [vmem:[#allocation17 + $0xb4] ss:$8 sps:$4 sm:$0xff]  }
 0x86e   : > { %5134 = vmatpush2.bf16.msra.mxu1 %v6704_v39  ;;  %5175 = vmatpush2.bf16.msra.mxu0 %v6706_v54  ;;  %v7453_v39 = vld [vmem:[#allocation17 + $0x1a4] ss:$8 sps:$4 sm:$0xff]   ;;  %v7448_v54 = vld [vmem:[#allocation17 + $0xa0] ss:$8 sps:$4 sm:$0xff]  }
 0x86f   : > { %5135 = vmatprep.subr.bf16.mxu1 %v6697_v51  ;;  %5176 = vmatprep.subr.bf16.mxu0 %v6699_v55  ;;  %v7451_v51 = vld [vmem:[#allocation17 + $0x1a0] ss:$8 sps:$4 sm:$0xff]   ;;  %v7456_v55 = vld [vmem:[#allocation17 + $0x94] ss:$8 sps:$4 sm:$0xff]  }
 0x872   : > { %5136 = vmatpush2.bf16.msra.mxu1 %v6696_v9  ;;  %5177 = vmatpush2.bf16.msra.mxu0 %v6698_v56  ;;  %v7459_v9 = vld [vmem:[#allocation17 + $0x194] ss:$8 sps:$4 sm:$0xff]   ;;  %v7454_v56 = vld [vmem:[#allocation17 + $0x90] ss:$8 sps:$4 sm:$0xff]  }
 0x873   : > { %5983 = vmatprep.subr.bf16.mxu1 %v7372_v62  ;;  %6024 = vmatprep.subr.bf16.mxu0 %v7375_v58  ;;  %v7457_v62 = vld [vmem:[#allocation17 + $0x190] ss:$8 sps:$4 sm:$0xff]   ;;  %v7462_v58 = vld [vmem:[#allocation17 + $0x84] ss:$8 sps:$4 sm:$0xff]  }
 0x875   : > { %5138 = vmatmul.mubr.bf16.vlgmr.msra.gmra.mxu1 %v8860_v37  ;;  %5179 = vmatmul.mubr.bf16.vlgmr.msra.gmra.mxu0 %v8860_v37  ;;  %v7391_v37 = vld [vmem:[#allocation17 + $0x140] ss:$8 sps:$4 sm:$0xff]  }
 0x876   : > { %5984 = vmatpush1.bf16.msra.mxu1 %v7370_v38  ;;  %6025 = vmatpush1.bf16.msra.mxu0 %v7373_v40  ;;  %v7465_v38 = vld [vmem:[#allocation17 + $0x184] ss:$8 sps:$4 sm:$0xff]   ;;  %v7460_v40 = vld [vmem:[#allocation17 + $0x80] ss:$8 sps:$4 sm:$0xff]  }
 0x877   : > { %5985 = vmatprep.subr.bf16.mxu1 %v7378_v43  ;;  %6026 = vmatprep.subr.bf16.mxu0 %v7381_v49  ;;  %v7463_v43 = vld [vmem:[#allocation17 + $0x180] ss:$8 sps:$4 sm:$0xff]   ;;  %v7468_v49 = vld [vmem:[#allocation17 + $0x274] ss:$8 sps:$4 sm:$0xff]  }
 0x87a   : > { %5986 = vmatpush1.bf16.msra.mxu1 %v7376_v60  ;;  %6027 = vmatpush1.bf16.msra.mxu0 %v7379_v61  ;;  %v7471_v60 = vld [vmem:[#allocation17 + $0x374] ss:$8 sps:$4 sm:$0xff]   ;;  %v4353_v61 = vsub.s32 2, %v8473_v57 }
 0x87b   : > { %5987 = vmatprep.subr.bf16.mxu1 %v7384_v45  ;;  %6028 = vmatprep.subr.bf16.mxu0 %v7387_v63  ;;  %v8870_v45 = vld [vmem:[%s9035_s25] sm:$0xff]  ;;  %v4357_v63 = vsub.s32 3, %v8473_v57 }
 0x87e   : > { %5988 = vmatpush1.bf16.msra.mxu1 %v7382_v1  ;;  %6029 = vmatpush1.bf16.msra.mxu0 %v7385_v10  ;;  %v4346_v1 = vrot.slane %v8870_v45, %v8815_v59  ;;  %v4354_v10 = vrot.slane %v8870_v45, %v4353_v61  ;;  %v7514_v61 = vld [vmem:[#allocation17 + $0x2f0] ss:$8 sps:$4 sm:$0xff]  }
 0x87f   : > { %5989 = vmatprep.subr.bf16.mxu1 %v7390_v2  ;;  %6030 = vmatprep.subr.bf16.mxu0 %v7393_v4  ;;  %v4350_v2 = vrot.slane %v8870_v45, %v8821_v47  ;;  %v4358_v4 = vrot.slane %v8870_v45, %v4357_v63  ;;  %v7517_v63 = vld [vmem:[#allocation17 + $0x3f0] ss:$8 sps:$4 sm:$0xff]  }
 0x882   : > { %5990 = vmatpush1.bf16.msra.mxu1 %v7388_v5  ;;  %6031 = vmatpush1.bf16.msra.mxu0 %v7391_v37 }
 0x883   : > { %5991 = vmatprep.subr.bf16.mxu1 %v7396_v6  ;;  %6032 = vmatprep.subr.bf16.mxu0 %v7399_v7 }
 0x886   : > { %5992 = vmatpush1.bf16.msra.mxu1 %v7394_v13  ;;  %6033 = vmatpush1.bf16.msra.mxu0 %v7397_v16 }
 0x887   : > { %5993 = vmatprep.subr.bf16.mxu1 %v7402_v17  ;;  %6034 = vmatprep.subr.bf16.mxu0 %v7405_v18 }
 0x88a   : > { %5994 = vmatpush1.bf16.msra.mxu1 %v7400_v19  ;;  %6035 = vmatpush1.bf16.msra.mxu0 %v7403_v21 }
 0x88b   : > { %5995 = vmatprep.subr.bf16.mxu1 %v7408_v22  ;;  %6036 = vmatprep.subr.bf16.mxu0 %v7411_v8 }
 0x88e   : > { %5996 = vmatpush1.bf16.msra.mxu1 %v7406_v23  ;;  %6037 = vmatpush1.bf16.msra.mxu0 %v7409_v24 }
 0x88f   : > { %5997 = vmatprep.subr.bf16.mxu1 %v7414_v25  ;;  %6038 = vmatprep.subr.bf16.mxu0 %v7417_v26 }
 0x892   : > { %5998 = vmatpush1.bf16.msra.mxu1 %v7412_v27  ;;  %6039 = vmatpush1.bf16.msra.mxu0 %v7415_v11 }
 0x893   : > { %5999 = vmatprep.subr.bf16.mxu1 %v7420_v28  ;;  %6040 = vmatprep.subr.bf16.mxu0 %v7423_v30  ;;  %v7466_v28 = vld [vmem:[#allocation17 + $0x270] ss:$8 sps:$4 sm:$0xff]  }
 0x894   : > { %v7469_v30 = vld [vmem:[#allocation17 + $0x370] ss:$8 sps:$4 sm:$0xff]  }
 0x896   : > { %6000 = vmatpush2.bf16.msra.mxu1 %v7418_v31  ;;  %6041 = vmatpush2.bf16.msra.mxu0 %v7421_v32 }
 0x897   : > { %6001 = vmatprep.subr.bf16.mxu1 %v7426_v33  ;;  %6042 = vmatprep.subr.bf16.mxu0 %v7429_v34  ;;  %v7474_v33 = vld [vmem:[#allocation17 + $0x264] ss:$8 sps:$4 sm:$0xff]  }
 0x898   : > { %v7477_v34 = vld [vmem:[#allocation17 + $0x364] ss:$8 sps:$4 sm:$0xff]  }
 0x89a   : > { %6002 = vmatpush2.bf16.msra.mxu1 %v7424_v36  ;;  %6043 = vmatpush2.bf16.msra.mxu0 %v7427_v53  ;;  %v7472_v36 = vld [vmem:[#allocation17 + $0x260] ss:$8 sps:$4 sm:$0xff]  }
 0x89b   : > { %6003 = vmatprep.subr.bf16.mxu1 %v7432_v41  ;;  %6044 = vmatprep.subr.bf16.mxu0 %v7435_v42  ;;  %v7475_v53 = vld [vmem:[#allocation17 + $0x360] ss:$8 sps:$4 sm:$0xff]   ;;  %v7480_v41 = vld [vmem:[#allocation17 + $0x254] ss:$8 sps:$4 sm:$0xff]  }
 0x89c   : > { %v7483_v42 = vld [vmem:[#allocation17 + $0x354] ss:$8 sps:$4 sm:$0xff]  }
 0x89e   : > { %6004 = vmatpush2.bf16.msra.mxu1 %v7430_v0  ;;  %6045 = vmatpush2.bf16.msra.mxu0 %v7433_v44  ;;  %v7478_v0 = vld [vmem:[#allocation17 + $0x250] ss:$8 sps:$4 sm:$0xff]  }
 0x89f   : > { %6005 = vmatprep.subr.bf16.mxu1 %v7438_v46  ;;  %6046 = vmatprep.subr.bf16.mxu0 %v7441_v14  ;;  %v7481_v44 = vld [vmem:[#allocation17 + $0x350] ss:$8 sps:$4 sm:$0xff]   ;;  %v7486_v46 = vld [vmem:[#allocation17 + $0x244] ss:$8 sps:$4 sm:$0xff]  }
 0x8a0   : > { %v7489_v14 = vld [vmem:[#allocation17 + $0x344] ss:$8 sps:$4 sm:$0xff]  }
 0x8a2   : > { %6006 = vmatpush2.bf16.msra.mxu1 %v7436_v12  ;;  %6047 = vmatpush2.bf16.msra.mxu0 %v7439_v15  ;;  %v7484_v12 = vld [vmem:[#allocation17 + $0x240] ss:$8 sps:$4 sm:$0xff]  }
 0x8a3   : > { %6007 = vmatprep.subr.bf16.mxu1 %v7444_v48  ;;  %6048 = vmatprep.subr.bf16.mxu0 %v7447_v35  ;;  %v7487_v15 = vld [vmem:[#allocation17 + $0x340] ss:$8 sps:$4 sm:$0xff]   ;;  %v7492_v48 = vld [vmem:[#allocation17 + $0x234] ss:$8 sps:$4 sm:$0xff]  }
 0x8a4   : > { %v7495_v35 = vld [vmem:[#allocation17 + $0x334] ss:$8 sps:$4 sm:$0xff]  }
 0x8a6   : > { %6008 = vmatpush2.bf16.msra.mxu1 %v7442_v3  ;;  %6049 = vmatpush2.bf16.msra.mxu0 %v7445_v50  ;;  %v7490_v3 = vld [vmem:[#allocation17 + $0x230] ss:$8 sps:$4 sm:$0xff]  }
 0x8a7   : > { %6009 = vmatprep.subr.bf16.mxu1 %v7450_v29  ;;  %6050 = vmatprep.subr.bf16.mxu0 %v7453_v39  ;;  %v7493_v50 = vld [vmem:[#allocation17 + $0x330] ss:$8 sps:$4 sm:$0xff]   ;;  %v7498_v29 = vld [vmem:[#allocation17 + $0x224] ss:$8 sps:$4 sm:$0xff]  }
 0x8a8   : > { %v7501_v39 = vld [vmem:[#allocation17 + $0x324] ss:$8 sps:$4 sm:$0xff]  }
 0x8aa   : > { %6010 = vmatpush2.bf16.msra.mxu1 %v7448_v54  ;;  %6051 = vmatpush2.bf16.msra.mxu0 %v7451_v51  ;;  %v7496_v54 = vld [vmem:[#allocation17 + $0x220] ss:$8 sps:$4 sm:$0xff]  }
 0x8ab   : > { %6011 = vmatprep.subr.bf16.mxu1 %v7456_v55  ;;  %6052 = vmatprep.subr.bf16.mxu0 %v7459_v9  ;;  %v7499_v51 = vld [vmem:[#allocation17 + $0x320] ss:$8 sps:$4 sm:$0xff]   ;;  %v7504_v55 = vld [vmem:[#allocation17 + $0x214] ss:$8 sps:$4 sm:$0xff]  }
 0x8ac   : > { %v7507_v9 = vld [vmem:[#allocation17 + $0x314] ss:$8 sps:$4 sm:$0xff]  }
 0x8ae   : > { %6012 = vmatpush2.bf16.msra.mxu1 %v7454_v56  ;;  %6053 = vmatpush2.bf16.msra.mxu0 %v7457_v62  ;;  %v7502_v56 = vld [vmem:[#allocation17 + $0x210] ss:$8 sps:$4 sm:$0xff]  }
 0x8af   : > { %6013 = vmatprep.subr.bf16.mxu1 %v7462_v58  ;;  %6054 = vmatprep.subr.bf16.mxu0 %v7465_v38  ;;  %v7505_v62 = vld [vmem:[#allocation17 + $0x310] ss:$8 sps:$4 sm:$0xff]   ;;  %v7510_v58 = vld [vmem:[#allocation17 + $0x204] ss:$8 sps:$4 sm:$0xff]  }
 0x8b0   : > { %v7513_v38 = vld [vmem:[#allocation17 + $0x304] ss:$8 sps:$4 sm:$0xff]  }
 0x8b2   : > { %6014 = vmatpush2.bf16.msra.mxu1 %v7460_v40  ;;  %6055 = vmatpush2.bf16.msra.mxu0 %v7463_v43  ;;  %v7508_v40 = vld [vmem:[#allocation17 + $0x200] ss:$8 sps:$4 sm:$0xff]  }
 0x8b3   : > { %6065 = vmatprep.subr.bf16.mxu1 %v7468_v49  ;;  %6106 = vmatprep.subr.bf16.mxu0 %v7471_v60  ;;  %v7511_v43 = vld [vmem:[#allocation17 + $0x300] ss:$8 sps:$4 sm:$0xff]   ;;  %v7516_v49 = vld [vmem:[#allocation17 + $0x2f4] ss:$8 sps:$4 sm:$0xff]  }
 0x8b4   : > { %v7519_v60 = vld [vmem:[#allocation17 + $0x3f4] ss:$8 sps:$4 sm:$0xff]  }
 0x8f5   : > { %v5057_v5 = vpop.f32.mrf.mxu1  ;;  %v5098_v37 = vpop.f32.mrf.mxu0 }
 0x8f6   : > { %v5058_v6 = vadd.f32 %v5057_v5, %v4346_v1  ;;  %v5099_v7 = vadd.f32 %v5098_v37, %v4354_v10  ;;  %v7522_v1 = vld [vmem:[#allocation17 + $0x2e4] ss:$8 sps:$4 sm:$0xff]   ;;  %v7528_v5 = vld [vmem:[#allocation17 + $0x2d4] ss:$8 sps:$4 sm:$0xff]  }
 0x8f7   : > { %v5059_v13 = vpop.f32.mrf.mxu1  ;;  %v5100_v16 = vpop.f32.mrf.mxu0  ;;  %v7525_v10 = vld [vmem:[#allocation17 + $0x3e4] ss:$8 sps:$4 sm:$0xff]   ;;  %v7531_v37 = vld [vmem:[#allocation17 + $0x3d4] ss:$8 sps:$4 sm:$0xff]  }
 0x8f8   : > { %v5060_v17 = vadd.f32 %v5059_v13, %v4350_v2  ;;  %v5101_v18 = vadd.f32 %v5100_v16, %v4358_v4  ;;  %v5187_v19 = vmax.f32 %v5058_v6, 0.0  ;;  %v5189_v21 = vmax.f32 %v5099_v7, 0.0  ;;  %v7520_v2 = vld [vmem:[#allocation17 + $0x2e0] ss:$8 sps:$4 sm:$0xff]   ;;  %v7526_v6 = vld [vmem:[#allocation17 + $0x2d0] ss:$8 sps:$4 sm:$0xff]  }
 0x8f9   : > { %v5061_v22 = vpop.f32.mrf.mxu1  ;;  %v5102_v8 = vpop.f32.mrf.mxu0  ;;  %v7523_v4 = vld [vmem:[#allocation17 + $0x3e0] ss:$8 sps:$4 sm:$0xff]   ;;  %v7529_v7 = vld [vmem:[#allocation17 + $0x3d0] ss:$8 sps:$4 sm:$0xff]   ;;  %v7534_v13 = vld [vmem:[#allocation17 + $0x2c4] ss:$8 sps:$4 sm:$0xff]  }
 0x8fa   : > { %v5188_v23 = vmax.f32 %v5060_v17, 0.0  ;;  %v5190_v24 = vmax.f32 %v5101_v18, 0.0  ;;  %v5195_v31 = vpack.c.bf16 %v5187_v19, %v5187_v19  ;;  %v5197_v32 = vpack.c.bf16 %v5189_v21, %v5189_v21  ;;  %v7537_v16 = vld [vmem:[#allocation17 + $0x3c4] ss:$8 sps:$4 sm:$0xff]   ;;  %v7532_v17 = vld [vmem:[#allocation17 + $0x2c0] ss:$8 sps:$4 sm:$0xff]  }
 0x8fb   : > { %v5062_v25 = vpop.f32.mrf.mxu1  ;;  %v5103_v26 = vpop.f32.mrf.mxu0  ;;  %v7535_v18 = vld [vmem:[#allocation17 + $0x3c0] ss:$8 sps:$4 sm:$0xff]   ;;  %v7540_v19 = vld [vmem:[#allocation17 + $0x2b4] ss:$8 sps:$4 sm:$0xff]   ;;  %v7538_v22 = vld [vmem:[#allocation17 + $0x2b0] ss:$8 sps:$4 sm:$0xff]  }
 0x8fc   : > { %v5196_v27 = vpack.c.bf16 %v5188_v23, %v5188_v23  ;;  %v5198_v11 = vpack.c.bf16 %v5190_v24, %v5190_v24  ;;  %v7543_v21 = vld [vmem:[#allocation17 + $0x3b4] ss:$8 sps:$4 sm:$0xff]   ;;  %v7541_v8 = vld [vmem:[#allocation17 + $0x3b0] ss:$8 sps:$4 sm:$0xff]   ;;  %v7546_v23 = vld [vmem:[#allocation17 + $0x2a4] ss:$8 sps:$4 sm:$0xff]  }
 0x8fd   : > { %v7549_v24 = vld [vmem:[#allocation17 + $0x3a4] ss:$8 sps:$4 sm:$0xff]   ;;  %v4361_v25 = vsub.s32 4, %v8473_v57  ;;  %v4369_v26 = vsub.s32 6, %v8473_v57 }
 0x8fe   : > { %6015 = vmatprep.mubr.bf16.mxu1 %v5196_v27  ;;  %6056 = vmatprep.mubr.bf16.mxu0 %v5198_v11  ;;  %v7544_v27 = vld [vmem:[#allocation17 + $0x2a0] ss:$8 sps:$4 sm:$0xff]  }
 0x8ff   : > { %6016 = vmatmul.mubr.bf16.vlgmr.msra.gmra.mxu1 %v5195_v31  ;;  %6057 = vmatmul.mubr.bf16.vlgmr.msra.gmra.mxu0 %v5197_v32  ;;  %v7547_v11 = vld [vmem:[#allocation17 + $0x3a0] ss:$8 sps:$4 sm:$0xff]   ;;  %v7552_v31 = vld [vmem:[#allocation17 + $0x294] ss:$8 sps:$4 sm:$0xff]  }
 0x900   : > { %6066 = vmatpush1.bf16.msra.mxu1 %v7466_v28  ;;  %6107 = vmatpush1.bf16.msra.mxu0 %v7469_v30  ;;  %v4365_v28 = vsub.s32 5, %v8473_v57  ;;  %v4373_v30 = vsub.s32 7, %v8473_v57  ;;  %v7555_v32 = vld [vmem:[#allocation17 + $0x394] ss:$8 sps:$4 sm:$0xff]   ;;  %v7558_v57 = vld [vmem:[#allocation17 + $0x284] ss:$8 sps:$4 sm:$0xff]  }
 0x901   : > { %6067 = vmatprep.subr.bf16.mxu1 %v7474_v33  ;;  %6108 = vmatprep.subr.bf16.mxu0 %v7477_v34  ;;  %v4362_v33 = vrot.slane %v8870_v45, %v4361_v25  ;;  %v4370_v34 = vrot.slane %v8870_v45, %v4369_v26 }
 0x904   : > { %6068 = vmatpush1.bf16.msra.mxu1 %v7472_v36  ;;  %6109 = vmatpush1.bf16.msra.mxu0 %v7475_v53  ;;  %v4366_v36 = vrot.slane %v8870_v45, %v4365_v28  ;;  %v4374_v53 = vrot.slane %v8870_v45, %v4373_v30 }
 0x905   : > { %6069 = vmatprep.subr.bf16.mxu1 %v7480_v41  ;;  %6110 = vmatprep.subr.bf16.mxu0 %v7483_v42  ;;  %v7550_v41 = vld [vmem:[#allocation17 + $0x290] ss:$8 sps:$4 sm:$0xff]  }
 0x906   : > { %v7553_v42 = vld [vmem:[#allocation17 + $0x390] ss:$8 sps:$4 sm:$0xff]  }
 0x908   : > { %6070 = vmatpush1.bf16.msra.mxu1 %v7478_v0  ;;  %6111 = vmatpush1.bf16.msra.mxu0 %v7481_v44 }
 0x909   : > { %6071 = vmatprep.subr.bf16.mxu1 %v7486_v46  ;;  %6112 = vmatprep.subr.bf16.mxu0 %v7489_v14  ;;  %v7561_v46 = vld [vmem:[#allocation17 + $0x384] ss:$8 sps:$4 sm:$0xff]  }
 0x90c   : > { %6072 = vmatpush1.bf16.msra.mxu1 %v7484_v12  ;;  %6113 = vmatpush1.bf16.msra.mxu0 %v7487_v15 }
 0x90d   : > { %6073 = vmatprep.subr.bf16.mxu1 %v7492_v48  ;;  %6114 = vmatprep.subr.bf16.mxu0 %v7495_v35 }
 0x910   : > { %6074 = vmatpush1.bf16.msra.mxu1 %v7490_v3  ;;  %6115 = vmatpush1.bf16.msra.mxu0 %v7493_v50  ;;  %v7556_v50 = vld [vmem:[#allocation17 + $0x280] ss:$8 sps:$4 sm:$0xff]  }
 0x911   : > { %6075 = vmatprep.subr.bf16.mxu1 %v7498_v29  ;;  %6116 = vmatprep.subr.bf16.mxu0 %v7501_v39  ;;  %v7559_v29 = vld [vmem:[#allocation17 + $0x380] ss:$8 sps:$4 sm:$0xff]  }
 0x914   : > { %6076 = vmatpush1.bf16.msra.mxu1 %v7496_v54  ;;  %6117 = vmatpush1.bf16.msra.mxu0 %v7499_v51 }
 0x915   : > { %6077 = vmatprep.subr.bf16.mxu1 %v7504_v55  ;;  %6118 = vmatprep.subr.bf16.mxu0 %v7507_v9 }
 0x918   : > { %6078 = vmatpush1.bf16.msra.mxu1 %v7502_v56  ;;  %6119 = vmatpush1.bf16.msra.mxu0 %v7505_v62 }
 0x919   : > { %6079 = vmatprep.subr.bf16.mxu1 %v7510_v58  ;;  %6120 = vmatprep.subr.bf16.mxu0 %v7513_v38 }
 0x91c   : > { %6080 = vmatpush1.bf16.msra.mxu1 %v7508_v40  ;;  %6121 = vmatpush1.bf16.msra.mxu0 %v7511_v43 }
 0x91d   : > { %6081 = vmatprep.subr.bf16.mxu1 %v7516_v49  ;;  %6122 = vmatprep.subr.bf16.mxu0 %v7519_v60 }
 0x920   : > { %6082 = vmatpush2.bf16.msra.mxu1 %v7514_v61  ;;  %6123 = vmatpush2.bf16.msra.mxu0 %v7517_v63 }
 0x921   : > { %6083 = vmatprep.subr.bf16.mxu1 %v7522_v1  ;;  %6124 = vmatprep.subr.bf16.mxu0 %v7525_v10 }
 0x924   : > { %6084 = vmatpush2.bf16.msra.mxu1 %v7520_v2  ;;  %6125 = vmatpush2.bf16.msra.mxu0 %v7523_v4 }
 0x925   : > { %6085 = vmatprep.subr.bf16.mxu1 %v7528_v5  ;;  %6126 = vmatprep.subr.bf16.mxu0 %v7531_v37  ;;  %v5331_v5 = vld [vmem:[#allocation19] sm:$0x3] }
 0x926   : > { %v5336_v37 = vrot.slane %v5331_v5, %v8815_v59 }
 0x928   : > { %6086 = vmatpush2.bf16.msra.mxu1 %v7526_v6  ;;  %6127 = vmatpush2.bf16.msra.mxu0 %v7529_v7  ;;  %v5340_v6 = vrot.slane %v5331_v5, %v8821_v47 }
 0x929   : > { %6087 = vmatprep.subr.bf16.mxu1 %v7534_v13  ;;  %6128 = vmatprep.subr.bf16.mxu0 %v7537_v16 }
 0x92c   : > { %6088 = vmatpush2.bf16.msra.mxu1 %v7532_v17  ;;  %6129 = vmatpush2.bf16.msra.mxu0 %v7535_v18 }
 0x92d   : > { %6089 = vmatprep.subr.bf16.mxu1 %v7540_v19  ;;  %6130 = vmatprep.subr.bf16.mxu0 %v7543_v21 }
 0x930   : > { %6090 = vmatpush2.bf16.msra.mxu1 %v7538_v22  ;;  %6131 = vmatpush2.bf16.msra.mxu0 %v7541_v8 }
 0x931   : > { %6091 = vmatprep.subr.bf16.mxu1 %v7546_v23  ;;  %6132 = vmatprep.subr.bf16.mxu0 %v7549_v24 }
 0x934   : > { %6092 = vmatpush2.bf16.msra.mxu1 %v7544_v27  ;;  %6133 = vmatpush2.bf16.msra.mxu0 %v7547_v11 }
 0x935   : > { %v5139_v0 = vpop.f32.mrf.mxu1  ;;  %v5180_v44 = vpop.f32.mrf.mxu0  ;;  %6093 = vmatprep.subr.bf16.mxu1 %v7552_v31  ;;  %6134 = vmatprep.subr.bf16.mxu0 %v7555_v32 }
 0x936   : > { %v5140_v14 = vadd.f32 %v5139_v0, %v4362_v33  ;;  %v5181_v12 = vadd.f32 %v5180_v44, %v4370_v34 }
 0x937   : > { %v5141_v15 = vpop.f32.mrf.mxu1  ;;  %v5182_v48 = vpop.f32.mrf.mxu0 }
 0x938   : > { %v5142_v35 = vadd.f32 %v5141_v15, %v4366_v36  ;;  %v5183_v3 = vadd.f32 %v5182_v48, %v4374_v53  ;;  %6094 = vmatpush2.bf16.msra.mxu1 %v7550_v41  ;;  %6135 = vmatpush2.bf16.msra.mxu0 %v7553_v42  ;;  %v5191_v39 = vmax.f32 %v5140_v14, 0.0  ;;  %v5193_v45 = vmax.f32 %v5181_v12, 0.0 }
 0x939   : > { %v5143_v54 = vpop.f32.mrf.mxu1  ;;  %v5184_v51 = vpop.f32.mrf.mxu0  ;;  %6095 = vmatprep.subr.bf16.mxu1 %v7558_v57  ;;  %6136 = vmatprep.subr.bf16.mxu0 %v7561_v46 }
 0x93a   : > { %v5192_v55 = vmax.f32 %v5142_v35, 0.0  ;;  %v5194_v9 = vmax.f32 %v5183_v3, 0.0  ;;  %v5199_v40 = vpack.c.bf16 %v5191_v39, %v5191_v39  ;;  %v5201_v43 = vpack.c.bf16 %v5193_v45, %v5193_v45 }
 0x93b   : > { %v5144_v56 = vpop.f32.mrf.mxu1  ;;  %v5185_v62 = vpop.f32.mrf.mxu0 }
 0x93c   : > { %v5200_v58 = vpack.c.bf16 %v5192_v55, %v5192_v55  ;;  %v5202_v38 = vpack.c.bf16 %v5194_v9, %v5194_v9  ;;  %6096 = vmatpush2.bf16.msra.mxu1 %v7556_v50  ;;  %6137 = vmatpush2.bf16.msra.mxu0 %v7559_v29 }
 0x93e   : > { %6097 = vmatprep.mubr.bf16.mxu1 %v5200_v58  ;;  %6138 = vmatprep.mubr.bf16.mxu0 %v5202_v38 }
 0x93f   : > { %6098 = vmatmul.mubr.bf16.vlgmr.msra.gmra.mxu1 %v5199_v40  ;;  %6139 = vmatmul.mubr.bf16.vlgmr.msra.gmra.mxu0 %v5201_v43 }
 0x9bf   : > { %v6017_v49 = vpop.f32.mrf.mxu1  ;;  %v6058_v60 = vpop.f32.mrf.mxu0 }
 0x9c0   : > { %v6018_v7 = vadd.f32 %v6017_v49, %v5336_v37 }
 0x9c1   : > { %v6019_v61 = vpop.f32.mrf.mxu1  ;;  %v6060_v63 = vpop.f32.mrf.mxu0 }
 0x9c2   : > { %v6020_v13 = vadd.f32 %v6019_v61, %v5340_v6  ;;  %v6059_v16 = vadd.f32 %v6058_v60, %v6018_v7 }
 0x9c3   : > { %v6021_v1 = vpop.f32.mrf.mxu1  ;;  %v6062_v10 = vpop.f32.mrf.mxu0 }
 0x9c4   : > { %v6061_v19 = vadd.f32 %v6060_v63, %v6020_v13 }
 0x9c5   : > { %v6022_v2 = vpop.f32.mrf.mxu1  ;;  %v6063_v4 = vpop.f32.mrf.mxu0 }
 0x9ff   : > { %v6099_v17 = vpop.f32.mrf.mxu1  ;;  %v6140_v18 = vpop.f32.mrf.mxu0 }
 0xa00   : > { %v6100_v21 = vadd.f32 %v6099_v17, %v6059_v16 }
 0xa01   : > { %v6101_v22 = vpop.f32.mrf.mxu1  ;;  %v6142_v8 = vpop.f32.mrf.mxu0 }
 0xa02   : > { %v6141_v23 = vadd.f32 %v6140_v18, %v6100_v21  ;;  %v6102_v24 = vadd.f32 %v6101_v22, %v6061_v19 }
 0xa03   : > { %v6103_v25 = vpop.f32.mrf.mxu1  ;;  %v6144_v26 = vpop.f32.mrf.mxu0 }
 0xa04   : > { %v6143_v27 = vadd.f32 %v6142_v8, %v6102_v24  ;;  %v6147_v30 = vadd.f32 %v6141_v23, %v8854_v52  ;;  %v6179_v52 = vld [vmem:[#allocation20] sm:$0x3] }
 0xa05   : > { %v6104_v11 = vpop.f32.mrf.mxu1  ;;  %v6145_v28 = vpop.f32.mrf.mxu0  ;;  %v6184_v3 = vrot.slane %v6179_v52, %v8815_v59  ;;  %v6188_v50 = vrot.slane %v6179_v52, %v8821_v47 }
 0xa06   : > { %v6148_v31 = vadd.f32 %v6143_v27, %v8852_v20  ;;  %v6165_v20 = vld [vmem:[%s9036_s0] sm:$0x3] }
 0xa07   : > { %v6170_v14 = vrot.slane %v6165_v20, %v8815_v59  ;;  %v6174_v12 = vrot.slane %v6165_v20, %v8821_v47 }
 0xa08   : > { %v6149_v32 = vadd.f32 %v6148_v31, %v6147_v30 }
 0xa0a   : > { %6150 = vadd.xlane.f32.xlu1 %v6149_v32 }
 0xa93   : > { %v6151_v33 = vpop.xlane.xlu1 %6150 }
 0xa94   : > { %v6152_v34 = vmul.f32 0.00390625, %v6151_v33 }
 0xa96   : > { %v6153_v36 = vsub.f32 %v6147_v30, %v6152_v34  ;;  %v6154_v53 = vsub.f32 %v6148_v31, %v6152_v34 }
 0xa98   : > { %v6155_v41 = vmul.f32 %v6153_v36, %v6153_v36  ;;  %v6156_v42 = vmul.f32 %v6154_v53, %v6154_v53 }
 0xa9a   : > { %v6157_v0 = vadd.f32 %v6156_v42, %v6155_v41 }
 0xa9c   : > { %6158 = vadd.xlane.f32.xlu1 %v6157_v0 }
 0xb25   : > { %v6159_v44 = vpop.xlane.xlu1 %6158 }
 0xb26   : > { %v6160_v57 = vmul.f32 0.00390625, %v6159_v44 }
 0xb28   : > { %v6161_v46 = vadd.f32 1e-05, %v6160_v57 }
 0xb2a   : > { %7596 = vrsqrt.f32 %v6161_v46 }
 0xb37   : > { %v7597_v15 = vpop.eup %7596 }
 0xb38   : > { %v6163_v48 = vmul.f32 %v7597_v15, %v6153_v36  ;;  %v6164_v35 = vmul.f32 %v7597_v15, %v6154_v53 }
 0xb3a   : > { %v6177_v29 = vmul.f32 %v6170_v14, %v6163_v48  ;;  %v6178_v39 = vmul.f32 %v6174_v12, %v6164_v35 }
 0xb3c   : > { %v6191_v45 = vadd.f32 %v6184_v3, %v6177_v29  ;;  %v6192_v54 = vadd.f32 %v6188_v50, %v6178_v39 }
 0xb3e   : > { %6193 = vst [vmem:[%s735_s21] sm:$0xff] %v6191_v45  ;;  %6194 = vst [vmem:[%s735_s21 + $0x8] sm:$0xff] %v6192_v54 }
 0xb3f   : > { %7931 = shalt.err (!%p7928_p10)
}
 0xb40   : > { %s7932_s9 = scalar_lea.hbm %s8903_s4, 256  ;;  %s7936_s29 = scalar_lea.hbm %s9038_s1, 512 }
 0xb41   : > { %p7933_p6 = scmp.ne.s32.totalorder %s8903_s4, %s7932_s9  ;;  %p7937_p11 = scmp.lt.s32.totalorder %s8903_s4, %s9038_s1 }
 0xb42   : > { %p7938_p12 = scmp.lt.s32.totalorder %s7936_s29, %s7932_s9 }
 0xb43   : > { %p7934_p7 = pnand %p7933_p6, %p9039_p13 }
 0xb44   : > { %p7939_p9 = por %p7938_p12, %p7937_p11 }
 0xb45   : > { %p7935_p0 = pneg %p7934_p7 }
 0xb47   : > { %p7940_p1 = pnand %p7939_p9, %p7935_p0 }
 0xb49   : > { %7943 = shalt.err (!%p7940_p1)
}
 0xb4a   : > { %7047 = dma.vmem_to_hbm [thread:$0]  (%p9039_p13), %s6211_s28, 256, %s8903_s4, %s6196_s5  }
 0xb4b PF: > { %s9040_s8 = sld [smem:[#allocation31_spill]] }
 0xb4c   : > { %s9041_s17 = sld [smem:[#allocation36_spill]] }
 0xb4d   : > { %s9042_s0 = sld [smem:[#allocation32_spill]] }
 0xb51   : > { %s6222_s3 = sand.u32 1, %s9040_s8  }
 0xb52   : > { %p9043_p5 = scmp.ne.s32.totalorder %s9041_s17, 0  ;;  %s6223_s21 = scalar_lea.sflag [#allocation4], %s6222_s3 }
 0xb53   : > { %p9044_p3 = scmp.ge.s32.totalorder %s9042_s0, 2 }
 0xb55   : > { %p7088_p4 = pnand %p9044_p3, %p9043_p5 }
 0xb57   : > { %p7089_p2 = pneg %p7088_p4 }
 0xb59   : > { %7989 = dma.done.wait (%p7089_p2), %s6223_s21, 256  }
 0xb5a   : > { %7991 = vsyncadd (%p7089_p2), %s6223_s21, 4294967040  ;;  %s9045_s24 = sld [smem:[#allocation33_spill]]  ;;  %s9047_s21 = smov %s7998_s22 }
 0xb5b   : > { %s9046_s14 = sld [smem:[#allocation34_spill]]  ;;  %s9048_s22 = smov %s8002_s23 }
 0xb60   : > { %p37_p8 = scmp.ge.s32.totalorder %s9045_s24, 4  }
 0xb61   : > { %s9049_s23 = smov %s9046_s14 }
 0xb62   :  { %39 = sbr.rel (!%p37_p8) target bundleno = 24 (0x18), region = 189 }
 0xb67   :  { %6228 = vsyncpa [#allocation3], 1 }
 0xb68   :  { %6230 = vsyncpa [#allocation3 + $0x1], 1 }
 0xb69   :  { %6231 = vsyncpa [#allocation6], 1 }
 0xb6a   :  { %6233 = vsyncpa [#allocation6 + $0x1], 1 }
 0xb6b   :  { %6234 = vsyncpa [#allocation9], 1 }
 0xb6c   :  { %6235 = vsyncpa [#allocation12], 1 }
 0xb6d   :  { %6236 = vsyncpa [#allocation15], 1 }
 0xb6e   :  { %6237 = vsyncpa [#allocation18], 1 }
 0xb6f   :  { %6238 = vsyncpa [#allocation21], 1 }
 0xb70   :  { %6239 = vsyncpa [#allocation4], 1 }
 0xb71   :  { %6241 = vsyncpa [#allocation4 + $0x1], 1 }

</bundles_post_ra>
